<compile_context>
chip_gen: v7x
topology: tpu7x:2x2x1
jax: 0.10.0
libtpu: 0.0.40
codegen_flags: <defaults>
</compile_context>

<pallas_src>
import jax
import jax.numpy as jnp
from jax.experimental import pallas as pl
from jax.experimental.pallas import tpu as pltpu

IN_DIM = 2
H_DIM = 400          # logical hidden width (PyTorch h_dim)
H_PAD = 512          # lane-aligned hidden width (multiple of 128)
MAX_TILE_B = 1024    # max batch tile (multiple of 128; fits v5e scoped VMEM)


def _discriminator_kernel(x_ref,
                          w1_ref, b1_ref,
                          w2_ref, b2_ref,
                          w3_ref, b3_ref,
                          w4_ref, b4_ref,
                          o_ref):
    # Feature-major shapes (batch on the lane axis):
    #   x_ref : (2, TILE_B)                     layer-1 dtype (bf16 or f32)
    #   w1_ref: (H_PAD, 2), b1_ref: (H_PAD, 1)  layer-1 dtype
    #   w2/w3 : (H_PAD, H_PAD) bf16, b2/b3: (H_PAD, 1) f32
    #   w4_ref: (1, H_PAD) bf16, b4_ref: (1, 1) f32
    #   o_ref : (1, TILE_B) f32
    x = x_ref[...]
    w1 = w1_ref[...]

    # Layer 1 (K=2): two broadcast FMAs on the VPU; no MXU wind-up for a
    # 2-deep contraction.
    h = w1[:, 0:1] * x[0:1, :] + w1[:, 1:2] * x[1:2, :] + b1_ref[...]
    h = jnp.maximum(h, 0.0).astype(jnp.bfloat16)

    # Layers 2 & 3: bf16 operands into the MXU, f32 accumulation.
    h = jnp.dot(w2_ref[...], h, preferred_element_type=jnp.float32) + b2_ref[...]
    h = jnp.maximum(h, 0.0).astype(jnp.bfloat16)
    h = jnp.dot(w3_ref[...], h, preferred_element_type=jnp.float32) + b3_ref[...]
    h = jnp.maximum(h, 0.0).astype(jnp.bfloat16)

    # Layer 4 (N=1): in feature-major layout this is a (1,H)@(H,TILE_B) MXU
    # matmul (~8 vmatmul pushes) whose result is already a lane-dense row.
    logit = (jnp.dot(w4_ref[...], h, preferred_element_type=jnp.float32)
             + b4_ref[...])

    # Numerically stable sigmoid (sign-split): exp(-|z|) never overflows.
    e = jnp.exp(-jnp.abs(logit))
    r = pl.reciprocal(1.0 + e, approx=True)
    o_ref[...] = jnp.where(logit >= 0.0, r, e * r)


def _choose_tile_b(batch):
    # Big tiles amortize the ~0.35us per-grid-step pipeline overhead (cap at
    # 1024 so per-tile activations stay well inside scoped VMEM on every
    # generation).  Shrink for small batches so tiny inputs are not padded to
    # a huge tile and so that moderate batches still yield >=2 tiles for
    # v7x's two TensorCores.  128 is the lane-density floor.
    tile = MAX_TILE_B
    while tile > 128 and tile >= batch:
        tile //= 2
    return tile


def _default_layer1_dtype():
    # bf16 VALU exists on v6e / v7x; keep the layer-1 VPU path in f32 on
    # older generations (v2-v5).
    try:
        kind = jax.devices()[0].device_kind.lower()
    except Exception:
        return jnp.float32
    for old in ("v2", "v3", "v4", "v5"):
        if old in kind:
            return jnp.float32
    return jnp.bfloat16


def discriminator_forward(x, prepared):
    """x: [B, 2] float32 -> [B] float32 sigmoid probabilities."""
    B = x.shape[0]
    w1t, b1c, w2t, b2c, w3t, b3c, w4r, b4s = prepared
    layer1_dtype = w1t.dtype

    tile_b = _choose_tile_b(B)
    n_tiles = pl.cdiv(B, tile_b)
    b_pad = n_tiles * tile_b

    # Feature-major input: (2, b_pad), batch on the lane axis; cast once so
    # the kernel's layer-1 FMAs run directly in the chosen dtype.
    x_fm = jnp.pad(x, ((0, b_pad - B), (0, 0))).T.astype(layer1_dtype)

    # Constant index_map => weights/biases are DMA'd once and stay resident
    # in VMEM across all batch tiles.
    const = lambda a: pl.BlockSpec(a.shape, lambda i: (0,) * a.ndim)

    out = pl.pallas_call(
        _discriminator_kernel,
        out_shape=jax.ShapeDtypeStruct((1, b_pad), jnp.float32),
        grid_spec=pltpu.PrefetchScalarGridSpec(
            num_scalar_prefetch=0,
            grid=(n_tiles,),
            in_specs=[pl.BlockSpec((IN_DIM, tile_b), lambda i: (0, i)),
                      const(w1t), const(b1c),
                      const(w2t), const(b2c),
                      const(w3t), const(b3c),
                      const(w4r), const(b4s)],
            out_specs=pl.BlockSpec((1, tile_b), lambda i: (0, i)),
        ),
        compiler_params=pltpu.CompilerParams(
            dimension_semantics=("parallel",),
            vmem_limit_bytes=32 * 1024 * 1024),
    )(x_fm, w1t, b1c, w2t, b2c, w3t, b3c, w4r, b4s)

    return out[0, :B]          # matches output.view(-1)


def init_params(key):
    """Deterministic synthetic init at the PyTorch nn.Linear shapes."""
    dims = [(IN_DIM, H_DIM), (H_DIM, H_DIM), (H_DIM, H_DIM), (H_DIM, 1)]
    params = []
    for fan_in, fan_out in dims:
        key, kw, kb = jax.random.split(key, 3)
        bound = 1.0 / jnp.sqrt(fan_in)
        w = jax.random.uniform(kw, (fan_in, fan_out), jnp.float32, -bound, bound)
        b = jax.random.uniform(kb, (fan_out,), jnp.float32, -bound, bound)
        params.append((w, b))
    return params


def prepare_params(params, layer1_dtype=jnp.float32):
    """Zero-pad hidden width 400->512, transpose to feature-major
    (out_features, in_features), cast big weights to bf16 and the layer-1
    weights/bias to the layer-1 compute dtype."""
    (w1, b1), (w2, b2), (w3, b3), (w4, b4) = params
    p = H_PAD - H_DIM

    w1t = jnp.pad(w1, ((0, 0), (0, p))).T.astype(layer1_dtype)        # (512, 2)
    b1c = jnp.pad(b1, (0, p)).reshape(H_PAD, 1).astype(layer1_dtype)  # (512, 1)
    w2t = jnp.pad(w2, ((0, p), (0, p))).T.astype(jnp.bfloat16)        # (512, 512)
    b2c = jnp.pad(b2, (0, p)).reshape(H_PAD, 1)                       # (512, 1) f32
    w3t = jnp.pad(w3, ((0, p), (0, p))).T.astype(jnp.bfloat16)        # (512, 512)
    b3c = jnp.pad(b3, (0, p)).reshape(H_PAD, 1)                       # (512, 1) f32
    w4r = jnp.pad(w4, ((0, p), (0, 0))).reshape(1, H_PAD).astype(jnp.bfloat16)
    b4s = b4.reshape(1, 1)                                            # (1, 1) f32
    return (w1t, b1c, w2t, b2c, w3t, b3c, w4r, b4s)


def _reference_forward(x, params, layer1_dtype):
    """Pure-JAX reference mirroring the kernel's precision policy."""
    (w1, b1), (w2, b2), (w3, b3), (w4, b4) = params
    xd = x.astype(layer1_dtype)
    w1d = w1.astype(layer1_dtype)
    b1d = b1.astype(layer1_dtype)
    h = xd[:, 0:1] * w1d[0:1, :] + xd[:, 1:2] * w1d[1:2, :] + b1d
    h = jnp.maximum(h, 0.0).astype(jnp.bfloat16)
    h = jnp.maximum(
        jnp.dot(h, w2.astype(jnp.bfloat16),
                preferred_element_type=jnp.float32) + b2, 0.0).astype(jnp.bfloat16)
    h = jnp.maximum(
        jnp.dot(h, w3.astype(jnp.bfloat16),
                preferred_element_type=jnp.float32) + b3, 0.0).astype(jnp.bfloat16)
    logit = jnp.dot(h, w4.astype(jnp.bfloat16),
                    preferred_element_type=jnp.float32) + b4
    return jax.nn.sigmoid(logit).reshape(-1)


if __name__ == "__main__":
    key = jax.random.PRNGKey(0)
    k_params, k_x = jax.random.split(key)

    B = 200                                   # exercises 2 grid tiles + batch padding
    x = jax.random.normal(k_x, (B, IN_DIM), dtype=jnp.float32)

    params = init_params(k_params)
    layer1_dtype = _default_layer1_dtype()
    prepared = prepare_params(params, layer1_dtype)

    out = jax.block_until_ready(discriminator_forward(x, prepared))
    ref = _reference_forward(x, params, layer1_dtype)

    assert out.shape == (B,)
    assert bool(jnp.all(jnp.isfinite(out)))
    err = float(jnp.max(jnp.abs(out - ref)))
    assert err < 2e-3, err
    print("KERNEL_OK")
</pallas_src>

<mosaic_0001>
module attributes {stable_mosaic.version = 11 : i64} {
  func.func @_discriminator_kernel(%arg0: i32, %arg1: memref<2x128xbf16, #tpu.memory_space<vmem>>, %arg2: memref<512x2xbf16, #tpu.memory_space<vmem>>, %arg3: memref<512x1xbf16, #tpu.memory_space<vmem>>, %arg4: memref<512x512xbf16, #tpu.memory_space<vmem>>, %arg5: memref<512x1xf32, #tpu.memory_space<vmem>>, %arg6: memref<512x512xbf16, #tpu.memory_space<vmem>>, %arg7: memref<512x1xf32, #tpu.memory_space<vmem>>, %arg8: memref<1x512xbf16, #tpu.memory_space<vmem>>, %arg9: memref<1x1xf32, #tpu.memory_space<vmem>>, %arg10: memref<1x128xf32, #tpu.memory_space<vmem>>) attributes {dimension_semantics = [#tpu.dimension_semantics<parallel>], iteration_bounds = array<i64: 2>, scalar_prefetch = 0 : i64, scratch_operands = 0 : i64, tpu.core_type = #tpu.core_type<tc>, window_params = [{transform_indices = @transform_0, window_bounds = array<i64: 2, 128>}, {pipeline_mode = #tpu.pipeline_mode<synchronous>, transform_indices = @transform_1, window_bounds = array<i64: 512, 2>}, {pipeline_mode = #tpu.pipeline_mode<synchronous>, transform_indices = @transform_2, window_bounds = array<i64: 512, 1>}, {pipeline_mode = #tpu.pipeline_mode<synchronous>, transform_indices = @transform_3, window_bounds = array<i64: 512, 512>}, {pipeline_mode = #tpu.pipeline_mode<synchronous>, transform_indices = @transform_4, window_bounds = array<i64: 512, 1>}, {pipeline_mode = #tpu.pipeline_mode<synchronous>, transform_indices = @transform_5, window_bounds = array<i64: 512, 512>}, {pipeline_mode = #tpu.pipeline_mode<synchronous>, transform_indices = @transform_6, window_bounds = array<i64: 512, 1>}, {pipeline_mode = #tpu.pipeline_mode<synchronous>, transform_indices = @transform_7, window_bounds = array<i64: 1, 512>}, {pipeline_mode = #tpu.pipeline_mode<synchronous>, transform_indices = @transform_8, window_bounds = array<i64: 1, 1>}, {transform_indices = @transform_9, window_bounds = array<i64: 1, 128>}]} {
    %c0 = arith.constant 0 : index
    %c0_0 = arith.constant 0 : index
    %0 = vector.load %arg1[%c0, %c0_0] : memref<2x128xbf16, #tpu.memory_space<vmem>>, vector<2x128xbf16>
    %c0_1 = arith.constant 0 : index
    %c0_2 = arith.constant 0 : index
    %1 = vector.load %arg2[%c0_1, %c0_2] : memref<512x2xbf16, #tpu.memory_space<vmem>>, vector<512x2xbf16>
    %2 = vector.extract_strided_slice %1 {offsets = [0, 0], sizes = [512, 1], strides = [1, 1]} : vector<512x2xbf16> to vector<512x1xbf16>
    %3 = vector.extract_strided_slice %0 {offsets = [0, 0], sizes = [1, 128], strides = [1, 1]} : vector<2x128xbf16> to vector<1x128xbf16>
    %4 = vector.broadcast %2 : vector<512x1xbf16> to vector<512x128xbf16>
    %5 = vector.broadcast %3 : vector<1x128xbf16> to vector<512x128xbf16>
    %6 = arith.mulf %4, %5 : vector<512x128xbf16>
    %7 = vector.extract_strided_slice %1 {offsets = [0, 1], sizes = [512, 1], strides = [1, 1]} : vector<512x2xbf16> to vector<512x1xbf16>
    %8 = vector.extract_strided_slice %0 {offsets = [1, 0], sizes = [1, 128], strides = [1, 1]} : vector<2x128xbf16> to vector<1x128xbf16>
    %9 = vector.broadcast %7 : vector<512x1xbf16> to vector<512x128xbf16>
    %10 = vector.broadcast %8 : vector<1x128xbf16> to vector<512x128xbf16>
    %11 = arith.mulf %9, %10 : vector<512x128xbf16>
    %12 = arith.addf %6, %11 : vector<512x128xbf16>
    %c0_3 = arith.constant 0 : index
    %c0_4 = arith.constant 0 : index
    %13 = vector.load %arg3[%c0_3, %c0_4] : memref<512x1xbf16, #tpu.memory_space<vmem>>, vector<512x1xbf16>
    %14 = vector.broadcast %13 : vector<512x1xbf16> to vector<512x128xbf16>
    %15 = arith.addf %12, %14 : vector<512x128xbf16>
    %cst = arith.constant 0.000000e+00 : bf16
    %16 = vector.broadcast %cst : bf16 to vector<512x128xbf16>
    %17 = arith.maximumf %15, %16 : vector<512x128xbf16>
    %c0_5 = arith.constant 0 : index
    %c0_6 = arith.constant 0 : index
    %18 = vector.load %arg4[%c0_5, %c0_6] : memref<512x512xbf16, #tpu.memory_space<vmem>>, vector<512x512xbf16>
    %cst_7 = arith.constant dense<0.000000e+00> : vector<512x128xf32>
    %19 = tpu.matmul %18, %17, %cst_7 {dimension_numbers = #tpu.dot_dimension_numbers<[1], [0], [0], [1], [0, 0, 1, 1], [], []>} : vector<512x512xbf16>, vector<512x128xbf16>, vector<512x128xf32> -> vector<512x128xf32>
    %c0_8 = arith.constant 0 : index
    %c0_9 = arith.constant 0 : index
    %20 = vector.load %arg5[%c0_8, %c0_9] : memref<512x1xf32, #tpu.memory_space<vmem>>, vector<512x1xf32>
    %21 = vector.broadcast %20 : vector<512x1xf32> to vector<512x128xf32>
    %22 = arith.addf %19, %21 : vector<512x128xf32>
    %cst_10 = arith.constant 0.000000e+00 : f32
    %23 = vector.broadcast %cst_10 : f32 to vector<512x128xf32>
    %24 = arith.maximumf %22, %23 : vector<512x128xf32>
    %25 = arith.truncf %24 : vector<512x128xf32> to vector<512x128xbf16>
    %c0_11 = arith.constant 0 : index
    %c0_12 = arith.constant 0 : index
    %26 = vector.load %arg6[%c0_11, %c0_12] : memref<512x512xbf16, #tpu.memory_space<vmem>>, vector<512x512xbf16>
    %cst_13 = arith.constant dense<0.000000e+00> : vector<512x128xf32>
    %27 = tpu.matmul %26, %25, %cst_13 {dimension_numbers = #tpu.dot_dimension_numbers<[1], [0], [0], [1], [0, 0, 1, 1], [], []>} : vector<512x512xbf16>, vector<512x128xbf16>, vector<512x128xf32> -> vector<512x128xf32>
    %c0_14 = arith.constant 0 : index
    %c0_15 = arith.constant 0 : index
    %28 = vector.load %arg7[%c0_14, %c0_15] : memref<512x1xf32, #tpu.memory_space<vmem>>, vector<512x1xf32>
    %29 = vector.broadcast %28 : vector<512x1xf32> to vector<512x128xf32>
    %30 = arith.addf %27, %29 : vector<512x128xf32>
    %cst_16 = arith.constant 0.000000e+00 : f32
    %31 = vector.broadcast %cst_16 : f32 to vector<512x128xf32>
    %32 = arith.maximumf %30, %31 : vector<512x128xf32>
    %33 = arith.truncf %32 : vector<512x128xf32> to vector<512x128xbf16>
    %c0_17 = arith.constant 0 : index
    %c0_18 = arith.constant 0 : index
    %34 = vector.load %arg8[%c0_17, %c0_18] : memref<1x512xbf16, #tpu.memory_space<vmem>>, vector<1x512xbf16>
    %cst_19 = arith.constant dense<0.000000e+00> : vector<1x128xf32>
    %35 = tpu.matmul %34, %33, %cst_19 {dimension_numbers = #tpu.dot_dimension_numbers<[1], [0], [0], [1], [0, 0, 1, 1], [], []>} : vector<1x512xbf16>, vector<512x128xbf16>, vector<1x128xf32> -> vector<1x128xf32>
    %c0_20 = arith.constant 0 : index
    %c0_21 = arith.constant 0 : index
    %36 = vector.load %arg9[%c0_20, %c0_21] : memref<1x1xf32, #tpu.memory_space<vmem>>, vector<1x1xf32>
    %37 = vector.broadcast %36 : vector<1x1xf32> to vector<1x128xf32>
    %38 = arith.addf %35, %37 : vector<1x128xf32>
    %39 = math.absf %38 : vector<1x128xf32>
    %cst_22 = arith.constant 0.000000e+00 : f32
    %40 = vector.broadcast %cst_22 : f32 to vector<1x128xf32>
    %41 = arith.subf %40, %39 : vector<1x128xf32>
    %42 = math.exp %41 : vector<1x128xf32>
    %cst_23 = arith.constant 1.000000e+00 : f32
    %43 = vector.broadcast %cst_23 : f32 to vector<1x128xf32>
    %44 = arith.addf %43, %42 : vector<1x128xf32>
    %45 = tpu.reciprocal %44 {approx = true} : vector<1x128xf32> -> vector<1x128xf32>
    %cst_24 = arith.constant 0.000000e+00 : f32
    %46 = vector.broadcast %cst_24 : f32 to vector<1x128xf32>
    %47 = arith.cmpf oge, %38, %46 : vector<1x128xf32>
    %48 = arith.mulf %42, %45 : vector<1x128xf32>
    %49 = arith.select %47, %45, %48 : vector<1x128xi1>, vector<1x128xf32>
    %c0_25 = arith.constant 0 : index
    %c0_26 = arith.constant 0 : index
    %50 = vector.load %arg10[%c0_25, %c0_26] : memref<1x128xf32, #tpu.memory_space<vmem>>, vector<1x128xf32>
    tpu.vector_store %arg10[%c0_25, %c0_26], %49 {strides = array<i32>} : memref<1x128xf32, #tpu.memory_space<vmem>>, vector<1x128xf32>,
    return
  }
  func.func @transform_0(%arg0: i32) -> (i32, i32) {
    %c0_i32 = arith.constant 0 : i32
    %c0_i32_0 = arith.constant 0 : i32
    return %c0_i32, %arg0 : i32, i32
  }
  func.func @transform_1(%arg0: i32) -> (i32, i32) {
    %c0_i32 = arith.constant 0 : i32
    %c0_i32_0 = arith.constant 0 : i32
    %c0_i32_1 = arith.constant 0 : i32
    return %c0_i32, %c0_i32_0 : i32, i32
  }
  func.func @transform_2(%arg0: i32) -> (i32, i32) {
    %c0_i32 = arith.constant 0 : i32
    %c0_i32_0 = arith.constant 0 : i32
    %c0_i32_1 = arith.constant 0 : i32
    return %c0_i32, %c0_i32_0 : i32, i32
  }
  func.func @transform_3(%arg0: i32) -> (i32, i32) {
    %c0_i32 = arith.constant 0 : i32
    %c0_i32_0 = arith.constant 0 : i32
    %c0_i32_1 = arith.constant 0 : i32
    return %c0_i32, %c0_i32_0 : i32, i32
  }
  func.func @transform_4(%arg0: i32) -> (i32, i32) {
    %c0_i32 = arith.constant 0 : i32
    %c0_i32_0 = arith.constant 0 : i32
    %c0_i32_1 = arith.constant 0 : i32
    return %c0_i32, %c0_i32_0 : i32, i32
  }
  func.func @transform_5(%arg0: i32) -> (i32, i32) {
    %c0_i32 = arith.constant 0 : i32
    %c0_i32_0 = arith.constant 0 : i32
    %c0_i32_1 = arith.constant 0 : i32
    return %c0_i32, %c0_i32_0 : i32, i32
  }
  func.func @transform_6(%arg0: i32) -> (i32, i32) {
    %c0_i32 = arith.constant 0 : i32
    %c0_i32_0 = arith.constant 0 : i32
    %c0_i32_1 = arith.constant 0 : i32
    return %c0_i32, %c0_i32_0 : i32, i32
  }
  func.func @transform_7(%arg0: i32) -> (i32, i32) {
    %c0_i32 = arith.constant 0 : i32
    %c0_i32_0 = arith.constant 0 : i32
    %c0_i32_1 = arith.constant 0 : i32
    return %c0_i32, %c0_i32_0 : i32, i32
  }
  func.func @transform_8(%arg0: i32) -> (i32, i32) {
    %c0_i32 = arith.constant 0 : i32
    %c0_i32_0 = arith.constant 0 : i32
    %c0_i32_1 = arith.constant 0 : i32
    return %c0_i32, %c0_i32_0 : i32, i32
  }
  func.func @transform_9(%arg0: i32) -> (i32, i32) {
    %c0_i32 = arith.constant 0 : i32
    %c0_i32_0 = arith.constant 0 : i32
    return %c0_i32, %arg0 : i32, i32
  }
}

</mosaic_0001>

<bundles_post_ra>
// kernel: tpu_custom_call.1
= control target key start
LH: loop header
LB: loop body
LE: loop exit
PB: predicated region body
PF: predicated region fallthrough
CT: control target
= control target key end

     0   :  { %s11059_s0 = inlined_call_operand.vmem [shape: bf16[2,256], index: 0, kind: input, shape index: {}]   ;;  %s11060_s1 = inlined_call_operand.vmem [shape: bf16[512,2], index: 1, kind: input, shape index: {}]   ;;  %s11061_s2 = inlined_call_operand.vmem [shape: bf16[512,1], index: 2, kind: input, shape index: {}]   ;;  %s11062_s3 = inlined_call_operand.vmem [shape: bf16[512,512], index: 3, kind: input, shape index: {}]   ;;  %s11063_s4 = inlined_call_operand.vmem [shape: f32[512,1], index: 4, kind: input, shape index: {}]   ;;  %s11064_s5 = inlined_call_operand.hbm [shape: bf16[512,512], index: 5, kind: input, shape index: {}]   ;;  %s11065_s6 = inlined_call_operand.vmem [shape: f32[512,1], index: 6, kind: input, shape index: {}]   ;;  %s11066_s7 = inlined_call_operand.vmem [shape: bf16[1,512], index: 7, kind: input, shape index: {}]   ;;  %s11067_s8 = inlined_call_operand.<no memory space> [shape: f32[1,1], index: 8, kind: input, shape index: {}]   ;;  %s11068_s9 = inlined_call_operand.hbm [shape: f32[1,256], index: 9, kind: output, shape index: {}]  }
   0x1   :  { %v14_v0 = vstv %s11067_s8 }
   0x2   :  { %15 = vst [vmem:[#allocation2] sm:$0x1] %v14_v0 }
   0x3   :  { %16 = vsyncpa [#allocation4], 0 }
   0x4   :  { %17 = vsyncpa [#allocation5], 0 }
   0x5   :  { %19 = vsyncpa [#allocation5 + $0x1], 0  ;;  %s8515_s11 = smov 0   ;;  %s8517_s12 = smov 0  }
   0x6   :  { %s8519_s13 = smov 0   ;;  %s8521_s14 = smov 0  }
   0x7 LB: > { %s8536_s8 = sadd.s32 4294967295, %s8452_s14   ;;  %s7104_s15 = sadd.s32 4294967294, %s8452_s14   ;;  %s8452_s14 = sphi %s8521_s14, %s11103_s14   ;;  %s8448_s13 = sphi %s8519_s13, %s11102_s13   ;;  %s8444_s12 = sphi %s8517_s12, %s11101_s12   ;;  %s8440_s11 = sphi %s8515_s11, %s11100_s11  }
   0x8   : > { %s8540_s16 = sadd.s32 1, %s8452_s14   ;;  %s226_s17 = sadd.s32 1, %s8448_s13 }
   0x9   : > { %s223_s18 = ssub.s32 %s8452_s14, %s8540_s16  ;;  %p236_p0 = scmp.ne.s32.totalorder %s8448_s13, %s8444_s12 }
   0xa   : > { %p224_p1 = scmp.eq.s32.totalorder %s223_s18, 0  ;;  %p237_p2 = scmp.eq.s32.totalorder %s8536_s8, 1 }
   0xb   : > { %p242_p3 = scmp.ne.s32.totalorder %s8444_s12, %s8440_s11  ;;  %p243_p4 = scmp.eq.s32.totalorder %s7104_s15, 1 }
   0xc   : > { %s8551_s19 = scalar_select %p224_p1, %s8448_s13, %s226_s17  }
   0xd   : > { %p8553_p5 = por %p237_p2, %p236_p0  ;;  %p8557_p6 = por %p243_p4, %p242_p3 }
   0xe   : > { %p7105_p7 = scmp.ge.s32.totalorder %s8452_s14, 1  ;;  %p250_p8 = scmp.lt.s32.totalorder %s8452_s14, 3 }
   0xf   : > { %s11073_s20 = scalar_select %p8553_p5, 1, 0 }
  0x10   : > { %s11074_s21 = scalar_select %p8557_p6, 1, 0 }
  0x11   : > { %p11069_p9 = scmp.eq.s32.totalorder %s8536_s8, 0  ;;  %p8564_p10 = pnand %p7105_p7, %p250_p8 }
  0x12   : > { %s8454_s23 = smov [#allocation3]   ;;  %s8358_s28 = scalar_lea.hbm %s11064_s5, 16384 }
  0x13   : > { %s11075_s22 = scalar_select %p8564_p10, 1, 0 }
  0x14   : > { %s274_s24 = sshll.u32 %s8454_s23, 4  ;;  %p7838_p11 = pneg %p8564_p10  ;;  %s275_s24 = int_to_ptr.vmem [resolvable:$true] %s274_s24 }
  0x15   : > { %p8359_p13 = scmp.ne.s32.totalorder %s11064_s5, %s8358_s28  ;;  %p8365_p3 = scmp.lt.u32.totalorder %s8358_s28, %s11064_s5 }
  0x16   : > { %p8572_p12 = pnand %p11069_p9, %p7838_p11 }
  0x18   : > { %p8360_p0 = pneg %p8572_p12 }
  0x1a   : > { %p8361_p1 = pnand %p8360_p0, %p8359_p13 }
  0x1c   : > { %p8362_p2 = pneg %p8361_p1 }
  0x1e   : > { %p8367_p4 = pnand %p8365_p3, %p8362_p2 }
  0x20   : > { %8370 = shalt.err (!%p8367_p4)
}
  0x21   : > { %s8371_s17 = scalar_lea.vmem %s275_s24, 16384  ;;  %p8379_p9 = scmp.lt.s32.totalorder %s275_s24, %s275_s24 }
  0x22   : > { %p8372_p7 = scmp.ne.s32.totalorder %s275_s24, %s8371_s17  ;;  %p8380_p6 = scmp.lt.s32.totalorder %s8371_s17, %s8371_s17 }
  0x24   : > { %p8374_p8 = pnand %p8372_p7, %p8360_p0  ;;  %p8381_p5 = por %p8380_p6, %p8379_p9 }
  0x26   : > { %p8375_p11 = pneg %p8374_p8 }
  0x28   : > { %p8382_p10 = pnand %p8381_p5, %p8375_p11 }
  0x2a   : > { %8385 = shalt.err (!%p8382_p10)
}
  0x2b   : > { %s8455_s18 = smov 256   ;;  %s8456_s23 = smov 16  }
  0x2c   : > { %7841 = dma.hbm_to_vmem [thread:$0]  (!%p8572_p12), %s11064_s5, 16384, %s275_s24, [#allocation4], %s8455_s18, %s8455_s18, %s8456_s23  }
  0x2d   : > { %p11077_p13 = scmp.ne.s32.totalorder %s11075_s22, 0 }
  0x2f   : > { %305 = sbr.rel (%p11077_p13) target bundleno = 2097 (0x831), region = 56 }
  0x36   : > { %p11078_p1 = scmp.eq.s32.totalorder %s8536_s8, 0 }
  0x38   : > { %8431 = dma.done.wait (%p11078_p1), [#allocation4], 16384   ;;  %p11079_p0 = pmov %p11078_p1 }
  0x39   : > { %v8457_v1 = vmov 1   ;;  %v8458_v2 = vmov 0   ;;  %v8605_v3 = vld [vmem:[%s11060_s1 + $0x8] sm:$0xf]  ;;  %v343_v4 = vld [vmem:[%s11060_s1] sm:$0xf] }
  0x3a   : > { %8433 = vsyncadd (%p11079_p0), [#allocation4], 4294950912  ;;  %7890 = vset.pattern.permute.xlu0 %v8457_v1  ;;  %7888 = vset.pattern.permute.xlu1 %v8457_v1  ;;  %v347_v5 = vld [vmem:[%s11060_s1 + $0x10] sm:$0xf]  ;;  %v344_v6 = vld [vmem:[%s11060_s1 + $0x4] sm:$0xf] }
  0x3b   : > { %4397 = vmatprep.subr.bf16.mxu0 %v8458_v2  ;;  %6223 = vmatprep.subr.bf16.mxu1 %v8458_v2  ;;  %v349_v7 = vld [vmem:[%s11060_s1 + $0x18] sm:$0xf]  ;;  %v346_v8 = vld [vmem:[%s11060_s1 + $0xc] sm:$0xf]  ;;  %v351_v9 = vld [vmem:[%s11060_s1 + $0x20] sm:$0xf] }
  0x3c   : > { %1273 = vperm.xlu0 %7890, %v8605_v3   ;;  %1251 = vperm.xlu1 %7888, %v343_v4   ;;  %v353_v10 = vld [vmem:[%s11060_s1 + $0x28] sm:$0xf]  ;;  %v2093_v11 = vld [vmem:[%s11061_s2] sm:$0xf]  ;;  %v8637_v12 = vld [vmem:[%s11060_s1 + $0x30] sm:$0xf] }
  0x3d   : > { %v8644_v13 = vld [vmem:[%s11060_s1 + $0x38] sm:$0xf]  ;;  %v348_v14 = vld [vmem:[%s11060_s1 + $0x14] sm:$0xf]  ;;  %v8653_v15 = vld [vmem:[%s11060_s1 + $0x40] sm:$0xf] }
  0x3e   : > { %v8659_v16 = vld [vmem:[%s11060_s1 + $0x48] sm:$0xf]  ;;  %v8666_v17 = vld [vmem:[%s11060_s1 + $0x50] sm:$0xf]  ;;  %v8676_v19 = vld [vmem:[%s11060_s1 + $0x58] sm:$0xf] }
  0x3f   : > { %v2095_v18 = vld [vmem:[%s11061_s2 + $0x8] sm:$0xf]  ;;  %v8682_v20 = vld [vmem:[%s11060_s1 + $0x60] sm:$0xf]  ;;  %v350_v21 = vld [vmem:[%s11060_s1 + $0x1c] sm:$0xf] }
  0x40   : > { %1295 = vperm.xlu0 %7890, %v347_v5   ;;  %1262 = vperm.xlu1 %7888, %v344_v6   ;;  %v8691_v22 = vld [vmem:[%s11060_s1 + $0x68] sm:$0xf]  ;;  %v371_v23 = vld [vmem:[%s11060_s1 + $0x70] sm:$0xf]  ;;  %v373_v25 = vld [vmem:[%s11060_s1 + $0x78] sm:$0xf] }
  0x41   : > { %v2097_v24 = vld [vmem:[%s11061_s2 + $0x10] sm:$0xf]  ;;  %v352_v26 = vld [vmem:[%s11060_s1 + $0x24] sm:$0xf]  ;;  %v2099_v28 = vld [vmem:[%s11061_s2 + $0x18] sm:$0xf] }
  0x42   : > { %v2094_v27 = vld [vmem:[%s11061_s2 + $0x4] sm:$0xf]  ;;  %v2096_v29 = vld [vmem:[%s11061_s2 + $0xc] sm:$0xf]  ;;  %v2098_v30 = vld [vmem:[%s11061_s2 + $0x14] sm:$0xf] }
  0x43   : > { %v354_v31 = vld [vmem:[%s11060_s1 + $0x2c] sm:$0xf]  ;;  %v2100_v32 = vld [vmem:[%s11061_s2 + $0x1c] sm:$0xf]  ;;  %v2102_v33 = vld [vmem:[%s11061_s2 + $0x24] sm:$0xf] }
  0x44   : > { %1317 = vperm.xlu0 %7890, %v349_v7   ;;  %7889 = vset.pattern.permute.xlu1 %v8458_v2  ;;  %v2101_v34 = vld [vmem:[%s11061_s2 + $0x20] sm:$0xf]  ;;  %v2104_v35 = vld [vmem:[%s11061_s2 + $0x2c] sm:$0xf]  ;;  %v2106_v36 = vld [vmem:[%s11061_s2 + $0x34] sm:$0xf] }
  0x45   : > { %445 = vperm.xlu1 %7889, %v346_v8   ;;  %v356_v37 = vld [vmem:[%s11060_s1 + $0x34] sm:$0xf]  ;;  %v2108_v38 = vld [vmem:[%s11061_s2 + $0x3c] sm:$0xf]  ;;  %v2110_v39 = vld [vmem:[%s11061_s2 + $0x44] sm:$0xf] }
  0x46   : > { %v2112_v40 = vld [vmem:[%s11061_s2 + $0x4c] sm:$0xf]  ;;  %v2103_v41 = vld [vmem:[%s11061_s2 + $0x28] sm:$0xf]  ;;  %v2114_v42 = vld [vmem:[%s11061_s2 + $0x54] sm:$0xf] }
  0x47   : > { %v2116_v43 = vld [vmem:[%s11061_s2 + $0x5c] sm:$0xf]  ;;  %v2118_v45 = vld [vmem:[%s11061_s2 + $0x64] sm:$0xf]  ;;  %v2120_v46 = vld [vmem:[%s11061_s2 + $0x6c] sm:$0xf] }
  0x48   : > { %1339 = vperm.xlu0 %7890, %v351_v9   ;;  %v358_v44 = vld [vmem:[%s11060_s1 + $0x3c] sm:$0xf]  ;;  %v2105_v47 = vld [vmem:[%s11061_s2 + $0x30] sm:$0xf]  ;;  %v2122_v48 = vld [vmem:[%s11061_s2 + $0x74] sm:$0xf] }
  0x49   : > { %7891 = vset.pattern.permute.xlu1 %v8457_v1  ;;  %v8798_v53 = vld [vmem:[%s11060_s1 + $0x80] sm:$0xf]  ;;  %v360_v54 = vld [vmem:[%s11060_s1 + $0x44] sm:$0xf]  ;;  %v8810_v56 = vld [vmem:[%s11060_s1 + $0x90] sm:$0xf] }
  0x4a   : > { %1284 = vperm.xlu1 %7891, %v346_v8   ;;  %v8821_v59 = vld [vmem:[%s11060_s1 + $0x98] sm:$0xf]  ;;  %v383_v63 = vld [vmem:[%s11060_s1 + $0xa0] sm:$0xf]  ;;  %v387_v8 = vld [vmem:[%s11060_s1 + $0xb0] sm:$0xf] }
  0x4b   : > { %v2107_v61 = vld [vmem:[%s11061_s2 + $0x38] sm:$0xf]  ;;  %p338_p5 = scmp.lt.s32.totalorder %s8536_s8, 1  ;;  %s336_s18 = sand.u32 1, %s8444_s12  }
  0x4c   : > { %1361 = vperm.xlu0 %7890, %v353_v10   ;;  %s337_s26 = scalar_lea.vmem [#allocation6], %s336_s18  ;;  %s7028_s28 = scalar_lea.sflag [#allocation5], %s336_s18 }
  0x4d   : > { %s339_s30 = scalar_select %p338_p5, %s8536_s8, 1 }
  0x4e   : > { %7892 = vset.pattern.permute.xlu1 %v8458_v2  ;;  %s7040_s27 = sshll.u32 %s337_s26, 4  ;;  %p11098_p9 = scmp.ne.s32.totalorder %s11073_s20, 0  ;;  %s11019_s27 = int_to_ptr.vmem [resolvable:$true] %s7040_s27 }
  0x4f   : > { %2159 = vperm.xlu1 %7892, %v2093_v11   ;;  %v389_v11 = vld [vmem:[%s11060_s1 + $0xb8] sm:$0xf]  ;;  %s340_s23 = scalar_lea.vmem %s11059_s0, %s339_s30  ;;  %s8386_s29 = scalar_lea.vmem %s11019_s27, 16 }
  0x50   : > { %1383 = vperm.xlu0 %7890, %v8637_v12   ;;  %p8387_p6 = scmp.ne.s32.totalorder %s11019_s27, %s8386_s29 }
  0x52   : > { %p8388_p10 = pnand %p8387_p6, %p11098_p9 }
  0x53   : > { %457 = vperm.xlu1 %7892, %v347_v5  }
  0x54   : > { %1405 = vperm.xlu0 %7890, %v8644_v13   ;;  %p8389_p12 = pneg %p8388_p10 }
  0x57   : > { %469 = vperm.xlu1 %7892, %v348_v14  }
  0x58   : > { %1427 = vperm.xlu0 %7890, %v8653_v15  }
  0x5b   : > { %7893 = vset.pattern.permute.xlu1 %v8457_v1 }
  0x5c   : > { %1449 = vperm.xlu0 %7890, %v8659_v16   ;;  %1306 = vperm.xlu1 %7893, %v348_v14   ;;  %v391_v14 = vld [vmem:[%s11060_s1 + $0xc0] sm:$0xf] }
  0x60   : > { %1471 = vperm.xlu0 %7890, %v8666_v17   ;;  %7894 = vset.pattern.permute.xlu1 %v8458_v2 }
  0x61   : > { %2183 = vperm.xlu1 %7894, %v2095_v18   ;;  %v393_v18 = vld [vmem:[%s11060_s1 + $0xc8] sm:$0xf] }
  0x64   : > { %1493 = vperm.xlu0 %7890, %v8676_v19  }
  0x65   : > { %481 = vperm.xlu1 %7894, %v349_v7  }
  0x68   : > { %1515 = vperm.xlu0 %7890, %v8682_v20  }
  0x69   : > { %493 = vperm.xlu1 %7894, %v350_v21  }
  0x6c   : > { %1537 = vperm.xlu0 %7890, %v8691_v22  }
  0x6d   : > { %7895 = vset.pattern.permute.xlu1 %v8457_v1 }
  0x6e   : > { %1328 = vperm.xlu1 %7895, %v350_v21  }
  0x70   : > { %1559 = vperm.xlu0 %7890, %v371_v23  }
  0x72   : > { %7896 = vset.pattern.permute.xlu1 %v8458_v2 }
  0x73   : > { %2207 = vperm.xlu1 %7896, %v2097_v24   ;;  %v395_v24 = vld [vmem:[%s11060_s1 + $0xd0] sm:$0xf] }
  0x74   : > { %1581 = vperm.xlu0 %7890, %v373_v25  }
  0x77   : > { %505 = vperm.xlu1 %7896, %v351_v9  }
  0x78   : > { %7919 = vset.pattern.permute.xlu0 %v8458_v2 }
  0x79   : > { %409 = vperm.xlu0 %7919, %v343_v4   ;;  %v385_v4 = vld [vmem:[%s11060_s1 + $0xa8] sm:$0xf] }
  0x7b   : > { %517 = vperm.xlu1 %7896, %v352_v26  }
  0x7d   : > { %421 = vperm.xlu0 %7919, %v344_v6   ;;  %v362_v6 = vld [vmem:[%s11060_s1 + $0x4c] sm:$0xf] }
  0x7f   : > { %7897 = vset.pattern.permute.xlu1 %v8457_v1 }
  0x80   : > { %1350 = vperm.xlu1 %7897, %v352_v26   ;;  %v364_v26 = vld [vmem:[%s11060_s1 + $0x54] sm:$0xf] }
  0x81   : > { %433 = vperm.xlu0 %7919, %v8605_v3  }
  0x84   : > { %7898 = vset.pattern.permute.xlu1 %v8458_v2 }
  0x85   : > { %2171 = vperm.xlu0 %7919, %v2094_v27   ;;  %2231 = vperm.xlu1 %7898, %v2099_v28  }
  0x89   : > { %2195 = vperm.xlu0 %7919, %v2096_v29   ;;  %529 = vperm.xlu1 %7898, %v353_v10   ;;  %v415_v29 = vlaneseq }
  0x8d   : > { %2219 = vperm.xlu0 %7919, %v2098_v30   ;;  %541 = vperm.xlu1 %7898, %v354_v31  }
  0x91   : > { %2243 = vperm.xlu0 %7919, %v2100_v32   ;;  %7899 = vset.pattern.permute.xlu1 %v8457_v1  ;;  %v342_v32 = vld [vmem:[%s340_s23] sm:$0x1]  ;;  %s7401_s23 = sshll.u32 %s8536_s8, 4  ;;  %s8461_s8 = smov [#allocation6]  }
  0x92   : > { %1372 = vperm.xlu1 %7899, %v354_v31   ;;  %v399_v31 = vld [vmem:[%s11060_s1 + $0xe0] sm:$0xf]  ;;  %s11017_s22 = scalar_lea.hbm %s11068_s9, %s7401_s23  ;;  %s8390_s30 = sshll.u32 %s8461_s8, 4  ;;  %s8391_s30 = int_to_ptr.vmem [resolvable:$false] %s8390_s30 }
  0x93   : > { %s8392_s10 = scalar_lea.vmem %s8391_s30, 32  ;;  %p8393_p2 = scmp.lt.s32.totalorder %s11019_s27, %s8391_s30 }
  0x94   : > { %p8394_p3 = scmp.lt.s32.totalorder %s8392_s10, %s8386_s29 }
  0x95   : > { %2267 = vperm.xlu0 %7919, %v2102_v33  }
  0x96   : > { %7900 = vset.pattern.permute.xlu1 %v8458_v2  ;;  %p8395_p4 = por %p8394_p3, %p8393_p2 }
  0x97   : > { %2255 = vperm.xlu1 %7900, %v2101_v34   ;;  %v2111_v34 = vld [vmem:[%s11061_s2 + $0x48] sm:$0xf] }
  0x98   : > { %p8396_p7 = pnand %p8395_p4, %p8389_p12 }
  0x99   : > { %2291 = vperm.xlu0 %7919, %v2104_v35   ;;  %v8459_v35 = vmov 839922192  }
  0x9b   : > { %553 = vperm.xlu1 %7900, %v8637_v12  }
  0x9d   : > { %2315 = vperm.xlu0 %7919, %v2106_v36   ;;  %v413_v36 = vunpack.c.l.s4 %v8459_v35 }
  0x9f   : > { %565 = vperm.xlu1 %7900, %v356_v37  }
  0xa1   : > { %2339 = vperm.xlu0 %7919, %v2108_v38   ;;  %v1954_v38 = vshrl.u32 %v342_v32, 16 }
  0xa3   : > { %7901 = vset.pattern.permute.xlu1 %v8457_v1 }
  0xa4   : > { %1394 = vperm.xlu1 %7901, %v356_v37   ;;  %v8913_v37 = vshrl.u32 %v415_v29, 7 }
  0xa5   : > { %2363 = vperm.xlu0 %7919, %v2110_v39  }
  0xa8   : > { %7902 = vset.pattern.permute.xlu1 %v8458_v2 }
  0xa9   : > { %2387 = vperm.xlu0 %7919, %v2112_v40   ;;  %2279 = vperm.xlu1 %7902, %v2103_v41   ;;  %v401_v40 = vld [vmem:[%s11060_s1 + $0xe8] sm:$0xf] }
  0xad   : > { %2411 = vperm.xlu0 %7919, %v2114_v42   ;;  %577 = vperm.xlu1 %7902, %v8644_v13   ;;  %v414_v42 = vunpack.c.0.s8 %v413_v36  ;;  %v2113_v36 = vld [vmem:[%s11061_s2 + $0x50] sm:$0xf] }
  0xb1   : > { %2435 = vperm.xlu0 %7919, %v2116_v43   ;;  %589 = vperm.xlu1 %7902, %v358_v44   ;;  %v8924_v43 = vsub.s32 0, %v8913_v37 }
  0xb3   : > { %11080 = vst [vmem:[#allocation9_spill] sm:$0xff] %v8924_v43 }
  0xb5   : > { %2459 = vperm.xlu0 %7919, %v2118_v45   ;;  %7903 = vset.pattern.permute.xlu1 %v8457_v1  ;;  %v1176_v45 = vpack.i.b16 %v342_v32, %v342_v32 }
  0xb6   : > { %1416 = vperm.xlu1 %7903, %v358_v44   ;;  %v1955_v44 = vpack.i.b16 %v1954_v38, %v1954_v38 }
  0xb9   : > { %2483 = vperm.xlu0 %7919, %v2120_v46  }
  0xba   : > { %7904 = vset.pattern.permute.xlu1 %v8458_v2 }
  0xbb   : > { %2303 = vperm.xlu1 %7904, %v2105_v47   ;;  %v8786_v49 = vpop.permute.xlu1 %1251  ;;  %v8788_v50 = vpop.permute.xlu0 %1273  ;;  %v403_v47 = vld [vmem:[%s11060_s1 + $0xf0] sm:$0xf] }
  0xbd   : > { %2507 = vperm.xlu0 %7919, %v2122_v48  }
  0xbf   : > { %601 = vperm.xlu1 %7904, %v8653_v15   ;;  %v8791_v51 = vpop.permute.xlu1 %1262  ;;  %v8793_v52 = vpop.permute.xlu0 %1295  ;;  %v2109_v15 = vld [vmem:[%s11061_s2 + $0x40] sm:$0xf] }
  0xc1   : > { %7922 = vset.pattern.permute.xlu0 %v8457_v1 }
  0xc2   : > { %1603 = vperm.xlu0 %7922, %v8798_v53  }
  0xc3   : > { %613 = vperm.xlu1 %7904, %v360_v54   ;;  %v8805_v55 = vpop.permute.xlu0 %1317 }
  0xc4   : > { %v8812_v57 = vpop.permute.xlu1 %445 }
  0xc6   : > { %1647 = vperm.xlu0 %7922, %v8810_v56  }
  0xc7   : > { %7905 = vset.pattern.permute.xlu1 %v8457_v1  ;;  %v8816_v58 = vpop.permute.xlu0 %1339 }
  0xc8   : > { %1438 = vperm.xlu1 %7905, %v360_v54   ;;  %v366_v54 = vld [vmem:[%s11060_s1 + $0x5c] sm:$0xf] }
  0xc9   : > { %v8823_v60 = vpop.permute.xlu1 %1284 }
  0xca   : > { %1669 = vperm.xlu0 %7922, %v8821_v59  }
  0xcb   : > { %v8829_v62 = vpop.permute.xlu0 %1361 }
  0xcc   : > { %7906 = vset.pattern.permute.xlu1 %v8458_v2 }
  0xcd   : > { %2327 = vperm.xlu1 %7906, %v2107_v61   ;;  %v8938_v61 = vsub.s32 %v414_v42, %v8913_v37 }
  0xce   : > { %1691 = vperm.xlu0 %7922, %v383_v63   ;;  %v8835_v0 = vpop.permute.xlu1 %2159  ;;  %v1960_v63 = vrot.slane %v1955_v44, %v8924_v43 }
  0xcf   : > { %v8837_v3 = vpop.permute.xlu0 %1383 }
  0xd1   : > { %625 = vperm.xlu1 %7906, %v8659_v16  }
  0xd2   : > { %1713 = vperm.xlu0 %7922, %v385_v4   ;;  %v8843_v5 = vpop.permute.xlu1 %457  ;;  %v1181_v4 = vrot.slane %v1176_v45, %v8924_v43  ;;  %v1326_v45 = vrot.slane %v8805_v55, %v8938_v61  ;;  %v2125_v55 = vld [vmem:[%s11061_s2 + $0x80] sm:$0xf] }
  0xd3   : > { %v8848_v7 = vpop.permute.xlu0 %1405  ;;  %v466_v44 = vrot.slane %v8843_v5, %v8938_v61 }
  0xd5   : > { %637 = vperm.xlu1 %7906, %v362_v6  }
  0xd6   : > { %1735 = vperm.xlu0 %7922, %v387_v8   ;;  %v8853_v9 = vpop.permute.xlu1 %469 }
  0xd7   : > { %v8855_v10 = vpop.permute.xlu0 %1427 }
  0xd9   : > { %7907 = vset.pattern.permute.xlu1 %v8457_v1 }
  0xda   : > { %1757 = vperm.xlu0 %7922, %v389_v11   ;;  %1460 = vperm.xlu1 %7907, %v362_v6   ;;  %v405_v6 = vld [vmem:[%s11060_s1 + $0xf8] sm:$0xf] }
  0xdb   : > { %v8861_v12 = vpop.permute.xlu1 %1306  ;;  %v8863_v13 = vpop.permute.xlu0 %1449 }
  0xdc   : > { %v1315_v5 = vrot.slane %v8861_v12, %v8938_v61 }
  0xde   : > { %1779 = vperm.xlu0 %7922, %v391_v14   ;;  %7908 = vset.pattern.permute.xlu1 %v8458_v2  ;;  %v1260_v14 = vrot.slane %v8786_v49, %v8938_v61 }
  0xdf   : > { %2351 = vperm.xlu1 %7908, %v2109_v15   ;;  %v8872_v16 = vpop.permute.xlu0 %1471  ;;  %v8950_v15 = vcombine.low %v1960_v63, %v1960_v63 }
  0xe0   : > { %v8877_v21 = vpop.permute.xlu1 %2183 }
  0xe1   : > { %v1965_v49 = vmul.bf16 %v8950_v15, %v1260_v14 }
  0xe2   : > { %1801 = vperm.xlu0 %7922, %v393_v18   ;;  %v8952_v18 = vcombine.low %v1181_v4, %v1181_v4 }
  0xe3   : > { %649 = vperm.xlu1 %7908, %v8666_v17   ;;  %v8881_v23 = vpop.permute.xlu0 %1493  ;;  %v397_v17 = vld [vmem:[%s11060_s1 + $0xd8] sm:$0xf] }
  0xe4   : > { %v8886_v25 = vpop.permute.xlu1 %481 }
  0xe5   : > { %v490_v12 = vrot.slane %v8886_v25, %v8938_v61 }
  0xe6   : > { %1823 = vperm.xlu0 %7922, %v395_v24  }
  0xe7   : > { %661 = vperm.xlu1 %7908, %v364_v26   ;;  %v8892_v27 = vpop.permute.xlu0 %1515 }
  0xe8   : > { %v8897_v28 = vpop.permute.xlu1 %493 }
  0xea   : > { %1845 = vperm.xlu0 %7922, %v397_v17  }
  0xeb   : > { %7909 = vset.pattern.permute.xlu1 %v8457_v1  ;;  %v8903_v30 = vpop.permute.xlu0 %1537 }
  0xec   : > { %1482 = vperm.xlu1 %7909, %v364_v26   ;;  %v1282_v26 = vrot.slane %v8788_v50, %v8938_v61  ;;  %v1304_v50 = vrot.slane %v8793_v52, %v8938_v61 }
  0xed   : > { %v8908_v33 = vpop.permute.xlu1 %1328 }
  0xee   : > { %1867 = vperm.xlu0 %7922, %v399_v31   ;;  %v1271_v31 = vrot.slane %v8791_v51, %v8938_v61  ;;  %v8973_v51 = vld [vmem:[%s11060_s1 + $0x8c] sm:$0xf]  ;;  %v1969_v63 = vmul.bf16 %v8950_v15, %v1304_v50  ;;  %v1970_v50 = vmul.bf16 %v8950_v15, %v1315_v5 }
  0xef   : > { %v8915_v39 = vpop.permute.xlu0 %1559 }
  0xf0   : > { %7910 = vset.pattern.permute.xlu1 %v8458_v2  ;;  %v1966_v42 = vmul.bf16 %v8950_v15, %v1271_v31  ;;  %v2192_v31 = vrot.slane %v8877_v21, %v8938_v61  ;;  %v368_v21 = vld [vmem:[%s11060_s1 + $0x64] sm:$0xf] }
  0xf1   : > { %2375 = vperm.xlu1 %7910, %v2111_v34   ;;  %v1293_v34 = vrot.slane %v8823_v60, %v8938_v61  ;;  %v454_v60 = vrot.slane %v8812_v57, %v8938_v61 }
  0xf2   : > { %1889 = vperm.xlu0 %7922, %v401_v40   ;;  %v8921_v41 = vpop.permute.xlu1 %2207 }
  0xf3   : > { %v8926_v46 = vpop.permute.xlu0 %1581  ;;  %v1968_v57 = vmul.bf16 %v8950_v15, %v1293_v34  ;;  %v1337_v34 = vrot.slane %v8908_v33, %v8938_v61 }
  0xf5   : > { %673 = vperm.xlu1 %7910, %v8676_v19  }
  0xf6   : > { %1911 = vperm.xlu0 %7922, %v403_v47   ;;  %v8932_v48 = vpop.permute.xlu1 %505  ;;  %v2168_v47 = vrot.slane %v8835_v0, %v8938_v61 }
  0xf8   : > { %v410_v8 = vpop.permute.xlu0 %409 }
  0xf9   : > { %v418_v19 = vrot.slane %v410_v8, %v8938_v61  ;;  %685 = vperm.xlu1 %7910, %v366_v54  }
  0xfa   : > { %1933 = vperm.xlu0 %7922, %v405_v6   ;;  %v8946_v11 = vpop.permute.xlu1 %517 }
  0xfb   : > { %v1186_v17 = vmul.bf16 %v8952_v18, %v418_v19 }
  0xfc   : > { %v422_v24 = vpop.permute.xlu0 %421 }
  0xfd   : > { %v430_v29 = vrot.slane %v422_v24, %v8938_v61  ;;  %7911 = vset.pattern.permute.xlu1 %v8457_v1  ;;  %v2029_v38 = vadd.bf16 %v1965_v49, %v1186_v17  ;;  %v1189_v24 = vmul.bf16 %v8952_v18, %v454_v60  ;;  %v478_v17 = vrot.slane %v8853_v9, %v8938_v61 }
  0xfe   : > { %7953 = vset.pattern.permute.xlu0 %v8458_v2  ;;  %1504 = vperm.xlu1 %7911, %v366_v54   ;;  %v2216_v9 = vrot.slane %v8921_v41, %v8938_v61  ;;  %v502_v41 = vrot.slane %v8897_v28, %v8938_v61  ;;  %v2128_v28 = vld [vmem:[%s11061_s2 + $0x8c] sm:$0xf] }
  0xff   : > { %793 = vperm.xlu0 %7953, %v8798_v53   ;;  %v8964_v32 = vpop.permute.xlu1 %1350  ;;  %v1967_v53 = vmul.bf16 %v8950_v15, %v1282_v26  ;;  %v1187_v40 = vmul.bf16 %v8952_v18, %v430_v29  ;;  %v2925_v14 = vadd.bf16 %v2168_v47, %v2029_v38  ;;  %v1190_v26 = vmul.bf16 %v8952_v18, %v466_v44 }
 0x100   : > { %v434_v35 = vpop.permute.xlu0 %433  ;;  %v1971_v29 = vmul.bf16 %v8950_v15, %v1326_v45  ;;  %v1191_v33 = vmul.bf16 %v8952_v18, %v478_v17  ;;  %v1972_v45 = vmul.bf16 %v8950_v15, %v1337_v34 }
 0x101   : > { %v442_v52 = vrot.slane %v434_v35, %v8938_v61  ;;  %v2030_v8 = vadd.bf16 %v1966_v42, %v1187_v40  ;;  %v2033_v42 = vadd.bf16 %v1969_v63, %v1190_v26 }
 0x102   : > { %7912 = vset.pattern.permute.xlu1 %v8458_v2  ;;  %v2034_v5 = vadd.bf16 %v1970_v50, %v1191_v33 }
 0x103   : > { %v1188_v54 = vmul.bf16 %v8952_v18, %v442_v52  ;;  %829 = vperm.xlu0 %7953, %v8973_v51   ;;  %2399 = vperm.xlu1 %7912, %v2113_v36   ;;  %v2032_v36 = vadd.bf16 %v1968_v57, %v1189_v24  ;;  %v1192_v52 = vmul.bf16 %v8952_v18, %v490_v12 }
 0x104   : > { %v2172_v4 = vpop.permute.xlu0 %2171  ;;  %v8997_v6 = vpop.permute.xlu1 %2231  ;;  %v2929_v47 = vadd.bf16 %v2216_v9, %v2033_v42  ;;  %v2115_v9 = vld [vmem:[%s11061_s2 + $0x58] sm:$0xf] }
 0x105   : > { %v2031_v0 = vadd.bf16 %v1967_v53, %v1188_v54  ;;  %v2180_v19 = vrot.slane %v2172_v4, %v8938_v61  ;;  %v1359_v54 = vrot.slane %v8964_v32, %v8938_v61  ;;  %v2240_v63 = vrot.slane %v8997_v6, %v8938_v61 }
 0x106   : > { %v1348_v32 = vrot.slane %v8816_v58, %v8938_v61  ;;  %v514_v6 = vrot.slane %v8932_v48, %v8938_v61 }
 0x107   : > { %v2926_v49 = vadd.bf16 %v2180_v19, %v2030_v8  ;;  %2543 = vperm.xlu0 %7953, %v2125_v55   ;;  %697 = vperm.xlu1 %7912, %v8682_v20   ;;  %v2927_v53 = vadd.bf16 %v2192_v31, %v2031_v0  ;;  %v2989_v20 = vmax.bf16 %v8458_v2, %v2925_v14 }
 0x108   : > { %v2196_v35 = vpop.permute.xlu0 %2195  ;;  %v9018_v25 = vpop.permute.xlu1 %529  ;;  %v1193_v8 = vmul.bf16 %v8952_v18, %v502_v41  ;;  %v526_v19 = vrot.slane %v8946_v11, %v8938_v61  ;;  %v2035_v14 = vadd.bf16 %v1971_v29, %v1192_v52  ;;  %v1974_v17 = vmul.bf16 %v8950_v15, %v1359_v54  ;;  %v2130_v11 = vld [vmem:[%s11061_s2 + $0x94] sm:$0xf] }
 0x109   : > { %v2204_v38 = vrot.slane %v2196_v35, %v8938_v61  ;;  %v2990_v40 = vmax.bf16 %v8458_v2, %v2926_v49  ;;  %v2991_v0 = vmax.bf16 %v8458_v2, %v2927_v53  ;;  %v2993_v29 = vmax.bf16 %v8458_v2, %v2929_v47 }
 0x10a   : > { %v2036_v58 = vadd.bf16 %v1972_v45, %v1193_v8  ;;  %v2931_v31 = vadd.bf16 %v2240_v63, %v2035_v14  ;;  %v1195_v34 = vmul.bf16 %v8952_v18, %v526_v19  ;;  %v1973_v35 = vmul.bf16 %v8950_v15, %v1348_v32  ;;  %v370_v63 = vld [vmem:[%s11060_s1 + $0x6c] sm:$0xf] }
 0x10b   : > { %v2928_v60 = vadd.bf16 %v2204_v38, %v2032_v36  ;;  %841 = vperm.xlu0 %7953, %v8810_v56   ;;  %709 = vperm.xlu1 %7912, %v368_v21   ;;  %v7240_v44 = vcombine.low %v2989_v20, %v2990_v40  ;;  %v1194_v36 = vmul.bf16 %v8952_v18, %v514_v6  ;;  %v2132_v40 = vld [vmem:[%s11061_s2 + $0x9c] sm:$0xf]  ;;  %v2138_v6 = vld [vmem:[%s11061_s2 + $0xb4] sm:$0xf] }
 0x10c   : > { %v2220_v57 = vpop.permute.xlu0 %2219  ;;  %v9034_v4 = vpop.permute.xlu1 %541  ;;  %v2038_v20 = vadd.bf16 %v1974_v17, %v1195_v34  ;;  %v2995_v33 = vmax.bf16 %v8458_v2, %v2931_v31 }
 0x10d   : > { %v2992_v56 = vmax.bf16 %v8458_v2, %v2928_v60  ;;  %v2228_v55 = vrot.slane %v2220_v57, %v8938_v61  ;;  %4398 = vmatpush1.bf16.msra.mxu0 %v7240_v44  ;;  %v2037_v44 = vadd.bf16 %v1973_v35, %v1194_v36  ;;  %v2134_v57 = vld [vmem:[%s11061_s2 + $0xa4] sm:$0xf]  ;;  %v550_v17 = vrot.slane %v9034_v4, %v8938_v61 }
 0x10e   : > { %4399 = vmatprep.subr.bf16.mxu0 %v8458_v2 }
 0x10f   : > { %v2930_v24 = vadd.bf16 %v2228_v55, %v2034_v5  ;;  %2579 = vperm.xlu0 %7953, %v2128_v28   ;;  %7913 = vset.pattern.permute.xlu1 %v8457_v1  ;;  %v7241_v26 = vcombine.low %v2991_v0, %v2992_v56  ;;  %v1197_v31 = vmul.bf16 %v8952_v18, %v550_v17  ;;  %v2150_v17 = vld [vmem:[%s11061_s2 + $0xe4] sm:$0xf] }
 0x110   : > { %v2244_v12 = vpop.permute.xlu0 %2243  ;;  %1526 = vperm.xlu1 %7913, %v368_v21  }
 0x111   : > { %v2994_v49 = vmax.bf16 %v8458_v2, %v2930_v24  ;;  %v2252_v48 = vrot.slane %v2244_v12, %v8938_v61  ;;  %v1373_v50 = vpop.permute.xlu1 %1372  ;;  %4400 = vmatpush1.bf16.msra.mxu0 %v7241_v26  ;;  %v1370_v24 = vrot.slane %v8829_v62, %v8938_v61  ;;  %v538_v26 = vrot.slane %v9018_v25, %v8938_v61  ;;  %v2117_v62 = vld [vmem:[%s11061_s2 + $0x60] sm:$0xf] }
 0x112   : > { %4401 = vmatprep.subr.bf16.mxu0 %v8458_v2  ;;  %v1381_v19 = vrot.slane %v1373_v50, %v8938_v61 }
 0x113   : > { %v2932_v21 = vadd.bf16 %v2252_v48, %v2036_v58  ;;  %2603 = vperm.xlu0 %7953, %v2130_v11   ;;  %v7242_v53 = vcombine.low %v2993_v29, %v2994_v49  ;;  %v2140_v29 = vld [vmem:[%s11061_s2 + $0xbc] sm:$0xf]  ;;  %v1975_v25 = vmul.bf16 %v8950_v15, %v1370_v24  ;;  %v1196_v4 = vmul.bf16 %v8952_v18, %v538_v26 }
 0x114   : > { %v2268_v38 = vpop.permute.xlu0 %2267  ;;  %7914 = vset.pattern.permute.xlu1 %v8458_v2  ;;  %v1976_v12 = vmul.bf16 %v8950_v15, %v1381_v19 }
 0x115   : > { %v2996_v52 = vmax.bf16 %v8458_v2, %v2932_v21  ;;  %v2276_v41 = vrot.slane %v2268_v38, %v8938_v61  ;;  %2423 = vperm.xlu1 %7914, %v2115_v9   ;;  %4402 = vmatpush1.bf16.msra.mxu0 %v7242_v53  ;;  %v2142_v9 = vld [vmem:[%s11061_s2 + $0xc4] sm:$0xf]  ;;  %v2039_v36 = vadd.bf16 %v1975_v25, %v1196_v4  ;;  %v8344_v38 = vld [vmem:[%s11060_s1 + $0x70] sm:$0xf] }
 0x116   : > { %v2256_v42 = vpop.permute.xlu1 %2255  ;;  %4403 = vmatprep.subr.bf16.mxu0 %v8458_v2  ;;  %v2040_v48 = vadd.bf16 %v1976_v12, %v1197_v31  ;;  %v8345_v31 = vld [vmem:[%s11060_s1 + $0x78] sm:$0xf] }
 0x117   : > { %v2934_v60 = vadd.bf16 %v2276_v41, %v2038_v20  ;;  %v2264_v45 = vrot.slane %v2256_v42, %v8938_v61  ;;  %2627 = vperm.xlu0 %7953, %v2132_v40   ;;  %v7243_v47 = vcombine.low %v2995_v33, %v2996_v52  ;;  %v2144_v33 = vld [vmem:[%s11061_s2 + $0xcc] sm:$0xf]  ;;  %v372_v52 = vld [vmem:[%s11060_s1 + $0x74] sm:$0xf] }
 0x118   : > { %v2292_v54 = vpop.permute.xlu0 %2291 }
 0x119   : > { %v2933_v5 = vadd.bf16 %v2264_v45, %v2037_v44  ;;  %721 = vperm.xlu1 %7914, %v8691_v22   ;;  %4404 = vmatpush1.bf16.msra.mxu0 %v7243_v47  ;;  %v2998_v56 = vmax.bf16 %v8458_v2, %v2934_v60  ;;  %v2136_v22 = vld [vmem:[%s11061_s2 + $0xac] sm:$0xf]  ;;  %v2300_v49 = vrot.slane %v2292_v54, %v8938_v61  ;;  %v2146_v54 = vld [vmem:[%s11061_s2 + $0xd4] sm:$0xf] }
 0x11a   : > { %v9080_v28 = vpop.permute.xlu1 %553  ;;  %4405 = vmatprep.subr.bf16.mxu0 %v8458_v2 }
 0x11b   : > { %v2997_v55 = vmax.bf16 %v8458_v2, %v2933_v5  ;;  %2651 = vperm.xlu0 %7953, %v2134_v57   ;;  %v2936_v35 = vadd.bf16 %v2300_v49, %v2040_v48  ;;  %v1392_v5 = vrot.slane %v8837_v3, %v8938_v61  ;;  %v2119_v3 = vld [vmem:[%s11061_s2 + $0x68] sm:$0xf]  ;;  %v374_v48 = vld [vmem:[%s11060_s1 + $0x7c] sm:$0xf] }
 0x11c   : > { %v9088_v0 = vpop.permute.xlu0 %2315 }
 0x11d   : > { %733 = vperm.xlu1 %7914, %v370_v63   ;;  %v7244_v32 = vcombine.low %v2997_v55, %v2998_v56  ;;  %v3000_v41 = vmax.bf16 %v8458_v2, %v2936_v35  ;;  %v2154_v35 = vld [vmem:[%s11061_s2 + $0xf4] sm:$0xf] }
 0x11e   : > { %v566_v8 = vpop.permute.xlu1 %565 }
 0x11f   : > { %2675 = vperm.xlu0 %7953, %v2136_v22   ;;  %4406 = vmatpush1.bf16.msra.mxu0 %v7244_v32  ;;  %v574_v57 = vrot.slane %v566_v8, %v8938_v61  ;;  %v2148_v22 = vld [vmem:[%s11061_s2 + $0xdc] sm:$0xf] }
 0x120   : > { %v9094_v14 = vpop.permute.xlu0 %2339  ;;  %4407 = vmatprep.subr.bf16.mxu0 %v8458_v2 }
 0x121   : > { %7915 = vset.pattern.permute.xlu1 %v8457_v1  ;;  %v1199_v32 = vmul.bf16 %v8952_v18, %v574_v57  ;;  %v3183_v57 = vld [vmem:[%s11063_s4 + $0x10] sm:$0xff] }
 0x122   : > { %1548 = vperm.xlu1 %7915, %v370_v63   ;;  %v562_v63 = vrot.slane %v9080_v28, %v8938_v61  ;;  %v1977_v28 = vmul.bf16 %v8950_v15, %v1392_v5  ;;  %v2348_v5 = vrot.slane %v9094_v14, %v8938_v61 }
 0x123   : > { %2699 = vperm.xlu0 %7953, %v2138_v6   ;;  %v1395_v58 = vpop.permute.xlu1 %1394  ;;  %v2324_v6 = vrot.slane %v9088_v0, %v8938_v61  ;;  %v2152_v0 = vld [vmem:[%s11061_s2 + $0xec] sm:$0xf] }
 0x124   : > { %v9108_v11 = vpop.permute.xlu0 %2363  ;;  %v1403_v60 = vrot.slane %v1395_v58, %v8938_v61  ;;  %v1198_v19 = vmul.bf16 %v8952_v18, %v562_v63 }
 0x126   : > { %7916 = vset.pattern.permute.xlu1 %v8458_v2  ;;  %v1978_v56 = vmul.bf16 %v8950_v15, %v1403_v60 }
 0x127   : > { %2723 = vperm.xlu0 %7953, %v2140_v29   ;;  %2447 = vperm.xlu1 %7916, %v2117_v62   ;;  %v2041_v29 = vadd.bf16 %v1977_v28, %v1198_v19 }
 0x128   : > { %v2280_v50 = vpop.permute.xlu1 %2279  ;;  %v9121_v34 = vpop.permute.xlu0 %2387  ;;  %v2042_v24 = vadd.bf16 %v1978_v56, %v1199_v32 }
 0x129   : > { %v2288_v21 = vrot.slane %v2280_v50, %v8938_v61 }
 0x12a   : > { %v2938_v58 = vadd.bf16 %v2324_v6, %v2042_v24 }
 0x12b   : > { %v2935_v53 = vadd.bf16 %v2288_v21, %v2039_v36  ;;  %2747 = vperm.xlu0 %7953, %v2142_v9   ;;  %745 = vperm.xlu1 %7916, %v8344_v38  }
 0x12c   : > { %v9130_v20 = vpop.permute.xlu1 %577  ;;  %v9132_v40 = vpop.permute.xlu0 %2411  ;;  %v3002_v9 = vmax.bf16 %v8458_v2, %v2938_v58  ;;  %v2124_v58 = vld [vmem:[%s11061_s2 + $0x7c] sm:$0xf] }
 0x12d   : > { %v2999_v42 = vmax.bf16 %v8458_v2, %v2935_v53 }
 0x12f   : > { %2771 = vperm.xlu0 %7953, %v2144_v33   ;;  %757 = vperm.xlu1 %7916, %v372_v52   ;;  %v7245_v44 = vcombine.low %v2999_v42, %v3000_v41  ;;  %v1414_v41 = vrot.slane %v8848_v7, %v8938_v61  ;;  %v586_v42 = vrot.slane %v9130_v20, %v8938_v61  ;;  %v2121_v7 = vld [vmem:[%s11061_s2 + $0x70] sm:$0xf] }
 0x130   : > { %v590_v45 = vpop.permute.xlu1 %589  ;;  %v9143_v47 = vpop.permute.xlu0 %2435 }
 0x131   : > { %4408 = vmatpush1.bf16.msra.mxu0 %v7245_v44  ;;  %v598_v33 = vrot.slane %v590_v45, %v8938_v61  ;;  %v1979_v20 = vmul.bf16 %v8950_v15, %v1414_v41  ;;  %v1200_v63 = vmul.bf16 %v8952_v18, %v586_v42  ;;  %v3191_v41 = vld [vmem:[%s11063_s4 + $0x50] sm:$0xff] }
 0x132   : > { %4409 = vmatprep.subr.bf16.mxu0 %v8458_v2 }
 0x133   : > { %2795 = vperm.xlu0 %7953, %v2146_v54   ;;  %7917 = vset.pattern.permute.xlu1 %v8457_v1  ;;  %v1201_v45 = vmul.bf16 %v8952_v18, %v598_v33  ;;  %v2043_v14 = vadd.bf16 %v1979_v20, %v1200_v63 }
 0x134   : > { %1570 = vperm.xlu1 %7917, %v372_v52   ;;  %v9156_v55 = vpop.permute.xlu0 %2459  ;;  %v3181_v52 = vld [vmem:[%s11063_s4] sm:$0xff] }
 0x135   : > { %v1417_v8 = vpop.permute.xlu1 %1416 }
 0x136   : > { %v1425_v36 = vrot.slane %v1417_v8, %v8938_v61  ;;  %v3185_v8 = vld [vmem:[%s11063_s4 + $0x20] sm:$0xff] }
 0x137   : > { %2819 = vperm.xlu0 %7953, %v2148_v22  }
 0x138   : > { %7918 = vset.pattern.permute.xlu1 %v8458_v2  ;;  %v9170_v26 = vpop.permute.xlu0 %2483  ;;  %v1980_v60 = vmul.bf16 %v8950_v15, %v1425_v36 }
 0x139   : > { %2471 = vperm.xlu1 %7918, %v2119_v3   ;;  %v2123_v3 = vld [vmem:[%s11061_s2 + $0x78] sm:$0xf] }
 0x13a   : > { %v2304_v12 = vpop.permute.xlu1 %2303  ;;  %v2044_v56 = vadd.bf16 %v1980_v60, %v1201_v45  ;;  %v2372_v45 = vrot.slane %v9108_v11, %v8938_v61 }
 0x13b   : > { %v2312_v62 = vrot.slane %v2304_v12, %v8938_v61  ;;  %2843 = vperm.xlu0 %7953, %v2150_v17   ;;  %v3187_v12 = vld [vmem:[%s11063_s4 + $0x30] sm:$0xff] }
 0x13c   : > { %v9176_v25 = vpop.permute.xlu0 %2507  ;;  %v2940_v28 = vadd.bf16 %v2348_v5, %v2044_v56  ;;  %v377_v5 = vld [vmem:[%s11060_s1 + $0x88] sm:$0xf] }
 0x13d   : > { %v2937_v4 = vadd.bf16 %v2312_v62, %v2041_v29  ;;  %769 = vperm.xlu1 %7918, %v8345_v31  }
 0x13e   : > { %v9184_v49 = vpop.permute.xlu1 %601 }
 0x13f   : > { %v3001_v50 = vmax.bf16 %v8458_v2, %v2937_v4  ;;  %2867 = vperm.xlu0 %7953, %v2152_v0   ;;  %v3004_v0 = vmax.bf16 %v8458_v2, %v2940_v28  ;;  %v610_v33 = vrot.slane %v9184_v49, %v8938_v61 }
 0x141   : > { %781 = vperm.xlu1 %7918, %v374_v48   ;;  %v9195_v21 = vpop.permute.xlu0 %1603  ;;  %v7246_v53 = vcombine.low %v3001_v50, %v3002_v9  ;;  %v3189_v50 = vld [vmem:[%s11063_s4 + $0x40] sm:$0xff]  ;;  %v1202_v49 = vmul.bf16 %v8952_v18, %v610_v33 }
 0x142   : > { %v614_v38 = vpop.permute.xlu1 %613  ;;  %v376_v9 = vld [vmem:[%s11060_s1 + $0x84] sm:$0xf] }
 0x143   : > { %2891 = vperm.xlu0 %7953, %v2154_v35   ;;  %4410 = vmatpush1.bf16.msra.mxu0 %v7246_v53  ;;  %v622_v35 = vrot.slane %v614_v38, %v8938_v61  ;;  %v1436_v53 = vrot.slane %v8855_v10, %v8938_v61 }
 0x144   : > { %4411 = vmatprep.subr.bf16.mxu0 %v8458_v2 }
 0x145   : > { %7920 = vset.pattern.permute.xlu1 %v8457_v1  ;;  %v9208_v44 = vpop.permute.xlu0 %1647  ;;  %v1203_v38 = vmul.bf16 %v8952_v18, %v622_v35  ;;  %v1981_v10 = vmul.bf16 %v8950_v15, %v1436_v53 }
 0x146   : > { %1592 = vperm.xlu1 %7920, %v374_v48  }
 0x147   : > { %3247 = vperm.xlu0 %7953, %v3181_v52   ;;  %v1439_v54 = vpop.permute.xlu1 %1438  ;;  %v2045_v11 = vadd.bf16 %v1981_v10, %v1202_v49  ;;  %v380_v49 = vld [vmem:[%s11060_s1 + $0x94] sm:$0xf] }
 0x148   : > { %v1447_v4 = vrot.slane %v1439_v54, %v8938_v61 }
 0x149   : > { %v9221_v22 = vpop.permute.xlu0 %1669 }
 0x14a   : > { %7921 = vset.pattern.permute.xlu1 %v8458_v2  ;;  %v1982_v52 = vmul.bf16 %v8950_v15, %v1447_v4 }
 0x14b   : > { %3257 = vperm.xlu0 %7953, %v3183_v57   ;;  %2495 = vperm.xlu1 %7921, %v2121_v7   ;;  %v3193_v57 = vld [vmem:[%s11063_s4 + $0x60] sm:$0xff] }
 0x14c   : > { %v2328_v32 = vpop.permute.xlu1 %2327  ;;  %v2046_v54 = vadd.bf16 %v1982_v52, %v1203_v38  ;;  %v3201_v52 = vld [vmem:[%s11063_s4 + $0xa0] sm:$0xff] }
 0x14d   : > { %v2336_v19 = vrot.slane %v2328_v32, %v8938_v61  ;;  %v9231_v6 = vpop.permute.xlu0 %1691  ;;  %v3195_v32 = vld [vmem:[%s11063_s4 + $0x70] sm:$0xff] }
 0x14e   : > { %v2942_v63 = vadd.bf16 %v2372_v45, %v2046_v54  ;;  %v3203_v45 = vld [vmem:[%s11063_s4 + $0xb0] sm:$0xff] }
 0x14f   : > { %v2939_v24 = vadd.bf16 %v2336_v19, %v2043_v14  ;;  %3267 = vperm.xlu0 %7953, %v3185_v8   ;;  %2519 = vperm.xlu1 %7921, %v2123_v3  }
 0x150   : > { %v9233_v17 = vpop.permute.xlu1 %625  ;;  %v3006_v19 = vmax.bf16 %v8458_v2, %v2942_v63 }
 0x151   : > { %v3003_v29 = vmax.bf16 %v8458_v2, %v2939_v24  ;;  %v9242_v62 = vpop.permute.xlu0 %1713  ;;  %v3197_v24 = vld [vmem:[%s11063_s4 + $0x80] sm:$0xff] }
 0x153   : > { %3277 = vperm.xlu0 %7953, %v3187_v12   ;;  %2531 = vperm.xlu1 %7921, %v2124_v58   ;;  %v7247_v31 = vcombine.low %v3003_v29, %v3004_v0 }
 0x154   : > { %v638_v48 = vpop.permute.xlu1 %637 }
 0x155   : > { %4412 = vmatpush1.bf16.msra.mxu0 %v7247_v31  ;;  %v9253_v36 = vpop.permute.xlu0 %1735  ;;  %v646_v4 = vrot.slane %v638_v48, %v8938_v61  ;;  %v3199_v31 = vld [vmem:[%s11063_s4 + $0x90] sm:$0xff] }
 0x156   : > { %4413 = vmatprep.subr.bf16.mxu0 %v8458_v2 }
 0x157   : > { %3287 = vperm.xlu0 %7953, %v3189_v50   ;;  %805 = vperm.xlu1 %7921, %v376_v9   ;;  %v1458_v50 = vrot.slane %v8863_v13, %v8938_v61  ;;  %v1205_v48 = vmul.bf16 %v8952_v18, %v646_v4  ;;  %v2126_v13 = vld [vmem:[%s11061_s2 + $0x84] sm:$0xf] }
 0x159   : > { %v1461_v42 = vpop.permute.xlu1 %1460  ;;  %v9265_v60 = vpop.permute.xlu0 %1757 }
 0x15a   : > { %v1469_v12 = vrot.slane %v1461_v42, %v8938_v61 }
 0x15b   : > { %3297 = vperm.xlu0 %7953, %v3191_v41   ;;  %7923 = vset.pattern.permute.xlu1 %v8457_v1  ;;  %v2396_v41 = vrot.slane %v9121_v34, %v8938_v61 }
 0x15c   : > { %1614 = vperm.xlu1 %7923, %v376_v9   ;;  %v634_v9 = vrot.slane %v9233_v17, %v8938_v61  ;;  %v1984_v35 = vmul.bf16 %v8950_v15, %v1469_v12  ;;  %v1983_v17 = vmul.bf16 %v8950_v15, %v1458_v50  ;;  %v1480_v50 = vrot.slane %v8872_v16, %v8938_v61 }
 0x15d   : > { %v9275_v7 = vpop.permute.xlu0 %1779 }
 0x15e   : > { %v2352_v20 = vpop.permute.xlu1 %2351  ;;  %v1204_v38 = vmul.bf16 %v8952_v18, %v634_v9  ;;  %v1985_v16 = vmul.bf16 %v8950_v15, %v1480_v50 }
 0x15f   : > { %v2360_v56 = vrot.slane %v2352_v20, %v8938_v61  ;;  %3307 = vperm.xlu0 %7953, %v3193_v57  }
 0x160   : > { %7924 = vset.pattern.permute.xlu1 %v8458_v2  ;;  %v2047_v34 = vadd.bf16 %v1983_v17, %v1204_v38 }
 0x161   : > { %v2941_v8 = vadd.bf16 %v2360_v56, %v2045_v11  ;;  %817 = vperm.xlu1 %7924, %v377_v5   ;;  %v9285_v3 = vpop.permute.xlu0 %1801  ;;  %v3205_v11 = vld [vmem:[%s11063_s4 + $0xc0] sm:$0xff] }
 0x162   : > { %v9287_v28 = vpop.permute.xlu1 %649 }
 0x163   : > { %v3005_v14 = vmax.bf16 %v8458_v2, %v2941_v8  ;;  %3317 = vperm.xlu0 %7953, %v3195_v32   ;;  %v658_v9 = vrot.slane %v9287_v28, %v8938_v61  ;;  %v2420_v28 = vrot.slane %v9132_v40, %v8938_v61 }
 0x165   : > { %7925 = vset.pattern.permute.xlu1 %v8457_v1  ;;  %v9296_v58 = vpop.permute.xlu0 %1823  ;;  %v7248_v29 = vcombine.low %v3005_v14, %v3006_v19  ;;  %v7958_v14 = vld [vmem:[%s11062_s3 + $0x4] ss:$16 sps:$4 sm:$0xff]  }
 0x166   : > { %1625 = vperm.xlu1 %7925, %v377_v5   ;;  %v662_v0 = vpop.permute.xlu1 %661  ;;  %4429 = vmatprep.mubr.bf16.mxu0 %v7958_v14 }
 0x167   : > { %3327 = vperm.xlu0 %7953, %v3197_v24   ;;  %4414 = vmatpush1.bf16.msra.mxu0 %v7248_v29  ;;  %v3207_v29 = vld [vmem:[%s11063_s4 + $0xd0] sm:$0xff]  ;;  %v670_v4 = vrot.slane %v662_v0, %v8938_v61  ;;  %v3209_v0 = vld [vmem:[%s11063_s4 + $0xe0] sm:$0xff] }
 0x168   : > { %4415 = vmatprep.subr.bf16.mxu0 %v8458_v2 }
 0x169   : > { %v9308_v53 = vpop.permute.xlu0 %1845 }
 0x16a   : > { %1636 = vperm.xlu1 %7925, %v8973_v51   ;;  %v2048_v51 = vadd.bf16 %v1984_v35, %v1205_v48 }
 0x16b   : > { %3337 = vperm.xlu0 %7953, %v3199_v31   ;;  %v1483_v33 = vpop.permute.xlu1 %1482  ;;  %v2127_v31 = vld [vmem:[%s11061_s2 + $0x88] sm:$0xf] }
 0x16c   : > { %v2944_v54 = vadd.bf16 %v2396_v41, %v2048_v51  ;;  %v1491_v19 = vrot.slane %v1483_v33, %v8938_v61  ;;  %v1207_v33 = vmul.bf16 %v8952_v18, %v670_v4  ;;  %v3211_v41 = vld [vmem:[%s11063_s4 + $0xf0] sm:$0xff] }
 0x16d   : > { %v9322_v42 = vpop.permute.xlu0 %1867  ;;  %v2129_v4 = vld [vmem:[%s11061_s2 + $0x90] sm:$0xf] }
 0x16e   : > { %7926 = vset.pattern.permute.xlu1 %v8458_v2  ;;  %v3008_v8 = vmax.bf16 %v8458_v2, %v2944_v54  ;;  %v1986_v35 = vmul.bf16 %v8950_v15, %v1491_v19  ;;  %v3213_v54 = vld [vmem:[%s11063_s4 + $0x100] sm:$0xff] }
 0x16f   : > { %3347 = vperm.xlu0 %7953, %v3201_v52   ;;  %2555 = vperm.xlu1 %7926, %v2126_v13   ;;  %v1206_v13 = vmul.bf16 %v8952_v18, %v658_v9 }
 0x170   : > { %v2376_v10 = vpop.permute.xlu1 %2375  ;;  %v2050_v17 = vadd.bf16 %v1986_v35, %v1207_v33  ;;  %v3219_v33 = vld [vmem:[%s11063_s4 + $0x130] sm:$0xff] }
 0x171   : > { %v2384_v57 = vrot.slane %v2376_v10, %v8938_v61  ;;  %v9332_v20 = vpop.permute.xlu0 %1889  ;;  %v382_v10 = vld [vmem:[%s11060_s1 + $0x9c] sm:$0xf] }
 0x173   : > { %v2943_v5 = vadd.bf16 %v2384_v57, %v2047_v34  ;;  %3357 = vperm.xlu0 %7953, %v3203_v45   ;;  %853 = vperm.xlu1 %7926, %v380_v49   ;;  %v2946_v45 = vadd.bf16 %v2420_v28, %v2050_v17 }
 0x174   : > { %v9334_v63 = vpop.permute.xlu1 %673 }
 0x175   : > { %v3007_v56 = vmax.bf16 %v8458_v2, %v2943_v5  ;;  %v9340_v32 = vpop.permute.xlu0 %1911 }
 0x177   : > { %3367 = vperm.xlu0 %7953, %v3205_v11   ;;  %7927 = vset.pattern.permute.xlu1 %v8457_v1  ;;  %v7249_v24 = vcombine.low %v3007_v56, %v3008_v8  ;;  %v3010_v11 = vmax.bf16 %v8458_v2, %v2946_v45  ;;  %v3215_v56 = vld [vmem:[%s11063_s4 + $0x110] sm:$0xff] }
 0x178   : > { %1658 = vperm.xlu1 %7927, %v380_v49   ;;  %v686_v12 = vpop.permute.xlu1 %685  ;;  %v2049_v49 = vadd.bf16 %v1985_v16, %v1206_v13 }
 0x179   : > { %4416 = vmatpush1.bf16.msra.mxu0 %v7249_v24  ;;  %v9361_v48 = vpop.permute.xlu0 %1933  ;;  %v694_v24 = vrot.slane %v686_v12, %v8938_v61  ;;  %v1502_v12 = vrot.slane %v8881_v23, %v8938_v61  ;;  %v8346_v23 = vld [vmem:[%s11060_s1 + $0xa0] sm:$0xf] }
 0x17a   : > { %4417 = vmatprep.subr.bf16.mxu0 %v8458_v2 }
 0x17b   : > { %3377 = vperm.xlu0 %7953, %v3207_v29   ;;  %v3217_v29 = vld [vmem:[%s11063_s4 + $0x120] sm:$0xff]  ;;  %v1209_v35 = vmul.bf16 %v8952_v18, %v694_v24  ;;  %v1987_v28 = vmul.bf16 %v8950_v15, %v1502_v12 }
 0x17c   : > { %7928 = vset.pattern.permute.xlu1 %v8458_v2  ;;  %v3225_v24 = vld [vmem:[%s11063_s4 + $0x160] sm:$0xff] }
 0x17d   : > { %2567 = vperm.xlu1 %7928, %v2127_v31   ;;  %v1505_v52 = vpop.permute.xlu1 %1504  ;;  %v682_v31 = vrot.slane %v9334_v63, %v8938_v61  ;;  %v2444_v63 = vrot.slane %v9143_v47, %v8938_v61  ;;  %v384_v47 = vld [vmem:[%s11060_s1 + $0xa4] sm:$0xf] }
 0x17e   : > { %v9375_v38 = vpop.permute.xlu0 %793  ;;  %v1513_v8 = vrot.slane %v1505_v52, %v8938_v61 }
 0x17f   : > { %3387 = vperm.xlu0 %7953, %v3209_v0   ;;  %v1208_v52 = vmul.bf16 %v8952_v18, %v682_v31 }
 0x180   : > { %v1988_v50 = vmul.bf16 %v8950_v15, %v1513_v8 }
 0x181   : > { %865 = vperm.xlu1 %7928, %v8821_v59  }
 0x182   : > { %v2400_v51 = vpop.permute.xlu1 %2399  ;;  %v9387_v5 = vpop.permute.xlu0 %829  ;;  %v2052_v16 = vadd.bf16 %v1988_v50, %v1209_v35  ;;  %v1524_v35 = vrot.slane %v8892_v27, %v8938_v61  ;;  %v8347_v27 = vld [vmem:[%s11060_s1 + $0xa8] sm:$0xf] }
 0x183   : > { %v2408_v40 = vrot.slane %v2400_v51, %v8938_v61  ;;  %3397 = vperm.xlu0 %7953, %v3211_v41   ;;  %v3221_v41 = vld [vmem:[%s11063_s4 + $0x140] sm:$0xff] }
 0x184   : > { %v2948_v51 = vadd.bf16 %v2444_v63, %v2052_v16  ;;  %v3229_v16 = vld [vmem:[%s11063_s4 + $0x180] sm:$0xff] }
 0x185   : > { %v2945_v34 = vadd.bf16 %v2408_v40, %v2049_v49  ;;  %877 = vperm.xlu1 %7928, %v382_v10  }
 0x186   : > { %v9385_v57 = vpop.permute.xlu1 %697  ;;  %v9407_v9 = vpop.permute.xlu0 %2543 }
 0x187   : > { %v3009_v59 = vmax.bf16 %v8458_v2, %v2945_v34  ;;  %3407 = vperm.xlu0 %7953, %v3213_v54   ;;  %v3223_v54 = vld [vmem:[%s11063_s4 + $0x150] sm:$0xff]  ;;  %v706_v31 = vrot.slane %v9385_v57, %v8938_v61  ;;  %v2468_v57 = vrot.slane %v9156_v55, %v8938_v61  ;;  %v386_v55 = vld [vmem:[%s11060_s1 + $0xac] sm:$0xf] }
 0x189   : > { %7929 = vset.pattern.permute.xlu1 %v8457_v1  ;;  %v7250_v14 = vcombine.low %v3009_v59, %v3010_v11  ;;  %v3012_v11 = vmax.bf16 %v8458_v2, %v2948_v51  ;;  %v1210_v63 = vmul.bf16 %v8952_v18, %v706_v31  ;;  %v3235_v31 = vld [vmem:[%s11063_s4 + $0x1b0] sm:$0xff] }
 0x18a   : > { %1680 = vperm.xlu1 %7929, %v382_v10   ;;  %v710_v19 = vpop.permute.xlu1 %709  ;;  %v9420_v13 = vpop.permute.xlu0 %841  ;;  %v2051_v10 = vadd.bf16 %v1987_v28, %v1208_v52  ;;  %v1989_v28 = vmul.bf16 %v8950_v15, %v1524_v35 }
 0x18b   : > { %3417 = vperm.xlu0 %7953, %v3215_v56   ;;  %4418 = vmatpush1.bf16.msra.mxu0 %v7250_v14 }
 0x18c   : > { %4419 = vmatprep.subr.bf16.mxu0 %v8458_v2 }
 0x18e   : > { %7930 = vset.pattern.permute.xlu1 %v8458_v2  ;;  %v9437_v34 = vpop.permute.xlu0 %2579 }
 0x18f   : > { %3427 = vperm.xlu0 %7953, %v3217_v29   ;;  %2591 = vperm.xlu1 %7930, %v2129_v4   ;;  %v1527_v0 = vpop.permute.xlu1 %1526  ;;  %v718_v29 = vrot.slane %v710_v19, %v8938_v61  ;;  %v2131_v4 = vld [vmem:[%s11061_s2 + $0x98] sm:$0xf]  ;;  %v3227_v19 = vld [vmem:[%s11063_s4 + $0x170] sm:$0xff] }
 0x190   : > { %v1535_v56 = vrot.slane %v1527_v0, %v8938_v61 }
 0x191   : > { %v1211_v0 = vmul.bf16 %v8952_v18, %v718_v29 }
 0x192   : > { %v1990_v50 = vmul.bf16 %v8950_v15, %v1535_v56  ;;  %v9454_v12 = vpop.permute.xlu0 %2603  ;;  %v3233_v56 = vld [vmem:[%s11063_s4 + $0x1a0] sm:$0xff] }
 0x193   : > { %3437 = vperm.xlu0 %7953, %v3219_v33   ;;  %889 = vperm.xlu1 %7930, %v8346_v23  }
 0x194   : > { %v2424_v17 = vpop.permute.xlu1 %2423  ;;  %v2054_v52 = vadd.bf16 %v1990_v50, %v1211_v0  ;;  %v2133_v50 = vld [vmem:[%s11061_s2 + $0xa0] sm:$0xf] }
 0x195   : > { %v2432_v45 = vrot.slane %v2424_v17, %v8938_v61 }
 0x196   : > { %v9470_v23 = vpop.permute.xlu0 %2627 }
 0x197   : > { %v2947_v49 = vadd.bf16 %v2432_v45, %v2051_v10  ;;  %3447 = vperm.xlu0 %7953, %v3221_v41   ;;  %901 = vperm.xlu1 %7930, %v384_v47   ;;  %v2950_v41 = vadd.bf16 %v2468_v57, %v2054_v52  ;;  %v3231_v10 = vld [vmem:[%s11063_s4 + $0x190] sm:$0xff] }
 0x198   : > { %v9432_v40 = vpop.permute.xlu1 %721 }
 0x199   : > { %v3011_v59 = vmax.bf16 %v8458_v2, %v2947_v49 }
 0x19b   : > { %3457 = vperm.xlu0 %7953, %v3223_v54   ;;  %7931 = vset.pattern.permute.xlu1 %v8457_v1  ;;  %v7251_v8 = vcombine.low %v3011_v59, %v3012_v11  ;;  %v9484_v54 = vpop.permute.xlu0 %2651  ;;  %v3014_v11 = vmax.bf16 %v8458_v2, %v2950_v41 }
 0x19c   : > { %1702 = vperm.xlu1 %7931, %v384_v47   ;;  %v734_v14 = vpop.permute.xlu1 %733  ;;  %v2053_v47 = vadd.bf16 %v1989_v28, %v1210_v63  ;;  %v3237_v63 = vld [vmem:[%s11063_s4 + $0x1c0] sm:$0xff] }
 0x19d   : > { %4420 = vmatpush1.bf16.msra.mxu0 %v7251_v8 }
 0x19e   : > { %4421 = vmatprep.subr.bf16.mxu0 %v8458_v2 }
 0x19f   : > { %3467 = vperm.xlu0 %7953, %v3225_v24   ;;  %v9503_v35 = vpop.permute.xlu0 %2675 }
 0x1a0   : > { %7932 = vset.pattern.permute.xlu1 %v8458_v2 }
 0x1a1   : > { %2615 = vperm.xlu1 %7932, %v2131_v4   ;;  %v1549_v33 = vpop.permute.xlu1 %1548  ;;  %v742_v4 = vrot.slane %v734_v14, %v8938_v61  ;;  %v1546_v14 = vrot.slane %v8903_v30, %v8938_v61  ;;  %v8348_v30 = vld [vmem:[%s11060_s1 + $0xb0] sm:$0xf] }
 0x1a2   : > { %v1557_v8 = vrot.slane %v1549_v33, %v8938_v61 }
 0x1a3   : > { %3477 = vperm.xlu0 %7953, %v3227_v19   ;;  %v730_v19 = vrot.slane %v9432_v40, %v8938_v61  ;;  %v1213_v33 = vmul.bf16 %v8952_v18, %v742_v4  ;;  %v2492_v40 = vrot.slane %v9170_v26, %v8938_v61  ;;  %v1991_v28 = vmul.bf16 %v8950_v15, %v1546_v14  ;;  %v388_v26 = vld [vmem:[%s11060_s1 + $0xb4] sm:$0xf] }
 0x1a4   : > { %v1992_v0 = vmul.bf16 %v8950_v15, %v1557_v8 }
 0x1a5   : > { %913 = vperm.xlu1 %7932, %v8347_v27   ;;  %v1212_v52 = vmul.bf16 %v8952_v18, %v730_v19  ;;  %v9517_v27 = vpop.permute.xlu0 %2699 }
 0x1a6   : > { %v2448_v17 = vpop.permute.xlu1 %2447 }
 0x1a7   : > { %v2456_v51 = vrot.slane %v2448_v17, %v8938_v61  ;;  %3487 = vperm.xlu0 %7953, %v3229_v16   ;;  %v2056_v16 = vadd.bf16 %v1992_v0, %v1213_v33  ;;  %v2135_v0 = vld [vmem:[%s11061_s2 + $0xa8] sm:$0xf] }
 0x1a9   : > { %v2949_v45 = vadd.bf16 %v2456_v51, %v2053_v47  ;;  %925 = vperm.xlu1 %7932, %v386_v55   ;;  %v2952_v41 = vadd.bf16 %v2492_v40, %v2056_v16  ;;  %v2055_v47 = vadd.bf16 %v1991_v28, %v1212_v52 }
 0x1aa   : > { %v9482_v49 = vpop.permute.xlu1 %745 }
 0x1ab   : > { %v3013_v59 = vmax.bf16 %v8458_v2, %v2949_v45  ;;  %3497 = vperm.xlu0 %7953, %v3231_v10   ;;  %v3016_v8 = vmax.bf16 %v8458_v2, %v2952_v41  ;;  %v754_v33 = vrot.slane %v9482_v49, %v8938_v61  ;;  %v5199_v49 = vld [vmem:[%s11065_s6] sm:$0xff]  ;;  %v1590_v41 = vrot.slane %v8926_v46, %v8938_v61 }
 0x1ad   : > { %7933 = vset.pattern.permute.xlu1 %v8457_v1  ;;  %v7252_v24 = vcombine.low %v3013_v59, %v3014_v11  ;;  %v3241_v59 = vld [vmem:[%s11063_s4 + $0x1e0] sm:$0xff]  ;;  %v9532_v11 = vpop.permute.xlu0 %2723  ;;  %v1214_v16 = vmul.bf16 %v8952_v18, %v754_v33 }
 0x1ae   : > { %1724 = vperm.xlu1 %7933, %v386_v55   ;;  %v758_v29 = vpop.permute.xlu1 %757  ;;  %v3239_v55 = vld [vmem:[%s11063_s4 + $0x1d0] sm:$0xff] }
 0x1af   : > { %3507 = vperm.xlu0 %7953, %v3233_v56   ;;  %4422 = vmatpush1.bf16.msra.mxu0 %v7252_v24  ;;  %v766_v19 = vrot.slane %v758_v29, %v8938_v61  ;;  %v5215_v29 = vld [vmem:[%s11065_s6 + $0x80] sm:$0xff] }
 0x1b0   : > { %4423 = vmatprep.subr.bf16.mxu0 %v8458_v2 }
 0x1b1   : > { %v9546_v14 = vpop.permute.xlu0 %2747  ;;  %v1215_v40 = vmul.bf16 %v8952_v18, %v766_v19 }
 0x1b2   : > { %7934 = vset.pattern.permute.xlu1 %v8458_v2 }
 0x1b3   : > { %3517 = vperm.xlu0 %7953, %v3235_v31   ;;  %2639 = vperm.xlu1 %7934, %v2133_v50   ;;  %v1571_v57 = vpop.permute.xlu1 %1570  ;;  %v3243_v50 = vld [vmem:[%s11063_s4 + $0x1f0] sm:$0xff] }
 0x1b4   : > { %v1579_v24 = vrot.slane %v1571_v57, %v8938_v61 }
 0x1b6   : > { %v1994_v57 = vmul.bf16 %v8950_v15, %v1579_v24 }
 0x1b7   : > { %3527 = vperm.xlu0 %7953, %v3237_v63   ;;  %937 = vperm.xlu1 %7934, %v8348_v30   ;;  %v1568_v63 = vrot.slane %v8915_v39, %v8938_v61 }
 0x1b8   : > { %v2472_v17 = vpop.permute.xlu1 %2471  ;;  %v2058_v28 = vadd.bf16 %v1994_v57, %v1215_v40 }
 0x1b9   : > { %v2480_v51 = vrot.slane %v2472_v17, %v8938_v61  ;;  %v1993_v30 = vmul.bf16 %v8950_v15, %v1568_v63  ;;  %v2516_v17 = vrot.slane %v9176_v25, %v8938_v61 }
 0x1bb   : > { %v2951_v10 = vadd.bf16 %v2480_v51, %v2055_v47  ;;  %3537 = vperm.xlu0 %7953, %v3239_v55   ;;  %949 = vperm.xlu1 %7934, %v388_v26   ;;  %v9565_v55 = vpop.permute.xlu0 %2771  ;;  %v390_v51 = vld [vmem:[%s11060_s1 + $0xbc] sm:$0xf] }
 0x1bc   : > { %v770_v45 = vpop.permute.xlu1 %769 }
 0x1bd   : > { %v3015_v56 = vmax.bf16 %v8458_v2, %v2951_v10  ;;  %v778_v39 = vrot.slane %v770_v45, %v8938_v61  ;;  %v2954_v10 = vadd.bf16 %v2516_v17, %v2058_v28  ;;  %v5247_v45 = vld [vmem:[%s11065_s6 + $0x180] sm:$0xff]  ;;  %v5217_v17 = vld [vmem:[%s11065_s6 + $0x90] sm:$0xff] }
 0x1bf   : > { %3547 = vperm.xlu0 %7953, %v3241_v59   ;;  %7935 = vset.pattern.permute.xlu1 %v8457_v1  ;;  %v7253_v4 = vcombine.low %v3015_v56, %v3016_v8  ;;  %v2057_v59 = vadd.bf16 %v1993_v30, %v1214_v16  ;;  %v1216_v8 = vmul.bf16 %v8952_v18, %v778_v39  ;;  %v9584_v19 = vpop.permute.xlu0 %2795  ;;  %v2137_v39 = vld [vmem:[%s11061_s2 + $0xb0] sm:$0xf] }
 0x1c0   : > { %1746 = vperm.xlu1 %7935, %v388_v26   ;;  %v782_v31 = vpop.permute.xlu1 %781  ;;  %v8349_v26 = vld [vmem:[%s11060_s1 + $0xb8] sm:$0xf] }
 0x1c1   : > { %4424 = vmatpush1.bf16.msra.mxu0 %v7253_v4  ;;  %v790_v46 = vrot.slane %v782_v31, %v8938_v61  ;;  %v1995_v4 = vmul.bf16 %v8950_v15, %v1590_v41  ;;  %v5231_v31 = vld [vmem:[%s11065_s6 + $0x100] sm:$0xff] }
 0x1c2   : > { %4425 = vmatprep.subr.bf16.mxu0 %v8458_v2 }
 0x1c3   : > { %3557 = vperm.xlu0 %7953, %v3243_v50   ;;  %v1217_v63 = vmul.bf16 %v8952_v18, %v790_v46  ;;  %v2059_v40 = vadd.bf16 %v1995_v4, %v1216_v8  ;;  %v5249_v46 = vld [vmem:[%s11065_s6 + $0x190] sm:$0xff] }
 0x1c4   : > { %7936 = vset.pattern.permute.xlu1 %v8458_v2  ;;  %v7956_v4 = vld [vmem:[%s11062_s3] ss:$16 sps:$4 sm:$0xff]  }
 0x1c5   : > { %2663 = vperm.xlu1 %7936, %v2135_v0   ;;  %v1593_v52 = vpop.permute.xlu1 %1592 }
 0x1c6   : > { %v1601_v25 = vrot.slane %v1593_v52, %v8938_v61 }
 0x1c7   : > { %5345 = vperm.xlu0 %7953, %v5215_v29   ;;  %v3018_v29 = vmax.bf16 %v8458_v2, %v2954_v10 }
 0x1c8   : > { %v1996_v0 = vmul.bf16 %v8950_v15, %v1601_v25  ;;  %v5201_v25 = vld [vmem:[%s11065_s6 + $0x10] sm:$0xff] }
 0x1c9   : > { %961 = vperm.xlu1 %7936, %v8349_v26   ;;  %v9603_v26 = vpop.permute.xlu0 %2819 }
 0x1ca   : > { %v2496_v47 = vpop.permute.xlu1 %2495 }
 0x1cb   : > { %v2504_v56 = vrot.slane %v2496_v47, %v8938_v61  ;;  %5265 = vperm.xlu0 %7953, %v5199_v49   ;;  %v2060_v49 = vadd.bf16 %v1996_v0, %v1217_v63  ;;  %v5219_v63 = vld [vmem:[%s11065_s6 + $0xa0] sm:$0xff] }
 0x1cd   : > { %v2953_v24 = vadd.bf16 %v2504_v56, %v2057_v59  ;;  %973 = vperm.xlu1 %7936, %v390_v51   ;;  %v9611_v56 = vpop.permute.xlu0 %2843 }
 0x1ce   : > { %v2520_v50 = vpop.permute.xlu1 %2519 }
 0x1cf   : > { %v3017_v33 = vmax.bf16 %v8458_v2, %v2953_v24  ;;  %v2528_v57 = vrot.slane %v2520_v50, %v8938_v61  ;;  %5505 = vperm.xlu0 %7953, %v5247_v45   ;;  %v8350_v45 = vld [vmem:[%s11060_s1 + $0xc0] sm:$0xf]  ;;  %v392_v24 = vld [vmem:[%s11060_s1 + $0xc4] sm:$0xf] }
 0x1d0   : > { %v7959_v50 = vld [vmem:[%s11062_s3 + $0x24] ss:$16 sps:$4 sm:$0xff]  }
 0x1d1   : > { %7937 = vset.pattern.permute.xlu1 %v8457_v1  ;;  %v7254_v52 = vcombine.low %v3017_v33, %v3018_v29  ;;  %v2955_v28 = vadd.bf16 %v2528_v57, %v2059_v40  ;;  %v5233_v33 = vld [vmem:[%s11065_s6 + $0x110] sm:$0xff]  ;;  %v1612_v57 = vrot.slane %v9195_v21, %v8938_v61  ;;  %v802_v29 = vrot.slane %v9375_v38, %v8938_v61 }
 0x1d2   : > { %1768 = vperm.xlu1 %7937, %v390_v51   ;;  %v2532_v16 = vpop.permute.xlu1 %2531  ;;  %v7961_v40 = vld [vmem:[%s11062_s3 + $0x20] ss:$16 sps:$4 sm:$0xff]  }
 0x1d3   : > { %v2540_v30 = vrot.slane %v2532_v16, %v8938_v61  ;;  %5425 = vperm.xlu0 %7953, %v5231_v31   ;;  %4426 = vmatpush1.bf16.msra.mxu0 %v7254_v52  ;;  %v3019_v51 = vmax.bf16 %v8458_v2, %v2955_v28  ;;  %v9638_v31 = vpop.permute.xlu0 %2867  ;;  %v1997_v21 = vmul.bf16 %v8950_v15, %v1612_v57  ;;  %v7962_v16 = vld [vmem:[%s11062_s3 + $0x44] ss:$16 sps:$4 sm:$0xff]   ;;  %v2139_v28 = vld [vmem:[%s11061_s2 + $0xb8] sm:$0xf] }
 0x1d4   : > { %4427 = vmatprep.subr.bf16.mxu0 %v8458_v2  ;;  %v1218_v52 = vmul.bf16 %v8952_v18, %v802_v29  ;;  %v838_v29 = vrot.slane %v9387_v5, %v8938_v61  ;;  %v5221_v5 = vld [vmem:[%s11065_s6 + $0xb0] sm:$0xff] }
 0x1d5   : > { %v2956_v41 = vadd.bf16 %v2540_v30, %v2060_v49 }
 0x1d6   : > { %7938 = vset.pattern.permute.xlu1 %v8458_v2  ;;  %v806_v47 = vpop.permute.xlu1 %805 }
 0x1d7   : > { %v3020_v10 = vmax.bf16 %v8458_v2, %v2956_v41  ;;  %5355 = vperm.xlu0 %7953, %v5217_v17   ;;  %2687 = vperm.xlu1 %7938, %v2137_v39   ;;  %v9655_v49 = vpop.permute.xlu0 %2891  ;;  %v5203_v17 = vld [vmem:[%s11065_s6 + $0x20] sm:$0xff]  ;;  %v2061_v39 = vadd.bf16 %v1997_v21, %v1218_v52  ;;  %v2552_v41 = vrot.slane %v9407_v9, %v8938_v61 }
 0x1d9   : > { %v7255_v59 = vcombine.low %v3019_v51, %v3020_v10  ;;  %v814_v51 = vrot.slane %v806_v47, %v8938_v61  ;;  %v8351_v47 = vld [vmem:[%s11060_s1 + $0xc8] sm:$0xf] }
 0x1db   : > { %5275 = vperm.xlu0 %7953, %v5201_v25   ;;  %985 = vperm.xlu1 %7938, %v8350_v45   ;;  %v1615_v8 = vpop.permute.xlu1 %1614  ;;  %v7964_v45 = vld [vmem:[%s11062_s3 + $0x40] ss:$16 sps:$4 sm:$0xff]   ;;  %v1219_v9 = vmul.bf16 %v8952_v18, %v814_v51 }
 0x1dc   : > { %4428 = vmatpush1.bf16.msra.mxu0 %v7255_v59  ;;  %v1623_v30 = vrot.slane %v1615_v8, %v8938_v61  ;;  %v5251_v59 = vld [vmem:[%s11065_s6 + $0x1a0] sm:$0xff]  ;;  %v2957_v8 = vadd.bf16 %v2552_v41, %v2061_v39  ;;  %v1221_v39 = vmul.bf16 %v8952_v18, %v838_v29 }
 0x1dd   : > { %4686 = vmatprep.subr.bf16.mxu0 %v8458_v2 }
 0x1de   : > { %v1998_v25 = vmul.bf16 %v8950_v15, %v1623_v30 }
 0x1df   : > { %5515 = vperm.xlu0 %7953, %v5249_v46   ;;  %997 = vperm.xlu1 %7938, %v392_v24   ;;  %v9672_v46 = vpop.permute.xlu0 %3247 }
 0x1e0   : > { %v9629_v0 = vpop.permute.xlu1 %817  ;;  %4430 = vmatmul.mubr.bf16.vlgmr.msra.gmra.mrb[0].mxu0 %v7956_v4 }
 0x1e1   : > { %4437 = vmatprep.mubr.bf16.mxu0 %v7959_v50  ;;  %v394_v50 = vld [vmem:[%s11060_s1 + $0xcc] sm:$0xf] }
 0x1e3   : > { %5435 = vperm.xlu0 %7953, %v5233_v33   ;;  %7939 = vset.pattern.permute.xlu1 %v8457_v1  ;;  %v2062_v33 = vadd.bf16 %v1998_v25, %v1219_v9  ;;  %v7968_v25 = vld [vmem:[%s11062_s3 + $0x84] ss:$16 sps:$4 sm:$0xff]   ;;  %v2588_v9 = vrot.slane %v9437_v34, %v8938_v61  ;;  %v7970_v34 = vld [vmem:[%s11062_s3 + $0x80] ss:$16 sps:$4 sm:$0xff]  }
 0x1e4   : > { %1790 = vperm.xlu1 %7939, %v392_v24   ;;  %v7965_v24 = vld [vmem:[%s11062_s3 + $0x64] ss:$16 sps:$4 sm:$0xff]  }
 0x1e5   : > { %v1626_v38 = vpop.permute.xlu1 %1625 }
 0x1e6   : > { %v1634_v41 = vrot.slane %v1626_v38, %v8938_v61  ;;  %v5205_v38 = vld [vmem:[%s11065_s6 + $0x30] sm:$0xff] }
 0x1e7   : > { %5365 = vperm.xlu0 %7953, %v5219_v63   ;;  %v5235_v63 = vld [vmem:[%s11065_s6 + $0x120] sm:$0xff] }
 0x1e8   : > { %7940 = vset.pattern.permute.xlu1 %v8458_v2  ;;  %4438 = vmatmul.mubr.bf16.gmra.mrb[4].mxu0 %v7961_v40  ;;  %v3021_v40 = vmax.bf16 %v8458_v2, %v2957_v8  ;;  %v2141_v8 = vld [vmem:[%s11061_s2 + $0xc0] sm:$0xf] }
 0x1e9   : > { %2711 = vperm.xlu1 %7940, %v2139_v28   ;;  %v1637_v10 = vpop.permute.xlu1 %1636  ;;  %4445 = vmatprep.mubr.bf16.mxu0 %v7962_v16  ;;  %v9694_v28 = vpop.permute.xlu0 %3257 }
 0x1ea   : > { %v1645_v21 = vrot.slane %v1637_v10, %v8938_v61 }
 0x1eb   : > { %5285 = vperm.xlu0 %7953, %v5203_v17   ;;  %v7967_v17 = vld [vmem:[%s11062_s3 + $0x60] ss:$16 sps:$4 sm:$0xff]  }
 0x1ec   : > { %v2000_v51 = vmul.bf16 %v8950_v15, %v1645_v21 }
 0x1ed   : > { %1009 = vperm.xlu1 %7940, %v8351_v47   ;;  %v9721_v47 = vpop.permute.xlu0 %3267 }
 0x1ee   : > { %v2556_v4 = vpop.permute.xlu1 %2555 }
 0x1ef   : > { %v2564_v57 = vrot.slane %v2556_v4, %v8938_v61  ;;  %5525 = vperm.xlu0 %7953, %v5251_v59   ;;  %v826_v59 = vrot.slane %v9629_v0, %v8938_v61  ;;  %v1999_v0 = vmul.bf16 %v8950_v15, %v1634_v41 }
 0x1f0   : > { %4446 = vmatmul.mubr.bf16.gmra.mrb[8].mxu0 %v7964_v45 }
 0x1f1   : > { %v2958_v52 = vadd.bf16 %v2564_v57, %v2062_v33  ;;  %1021 = vperm.xlu1 %7940, %v394_v50   ;;  %4453 = vmatprep.mubr.bf16.mxu0 %v7965_v24  ;;  %v2064_v24 = vadd.bf16 %v2000_v51, %v1221_v39  ;;  %v1220_v4 = vmul.bf16 %v8952_v18, %v826_v59  ;;  %v5253_v33 = vld [vmem:[%s11065_s6 + $0x1b0] sm:$0xff]  ;;  %v9736_v21 = vpop.permute.xlu0 %3277 }
 0x1f2   : > { %v9692_v16 = vpop.permute.xlu1 %853  ;;  %v396_v39 = vld [vmem:[%s11060_s1 + $0xd4] sm:$0xf] }
 0x1f3   : > { %v3022_v30 = vmax.bf16 %v8458_v2, %v2958_v52  ;;  %5445 = vperm.xlu0 %7953, %v5235_v63   ;;  %v2960_v57 = vadd.bf16 %v2588_v9, %v2064_v24  ;;  %v2063_v29 = vadd.bf16 %v1999_v0, %v1220_v4  ;;  %v1656_v9 = vrot.slane %v9208_v44, %v8938_v61  ;;  %v7974_v4 = vld [vmem:[%s11062_s3 + $0xc4] ss:$16 sps:$4 sm:$0xff]  }
 0x1f4   : > { %v850_v0 = vrot.slane %v9420_v13, %v8938_v61  ;;  %v862_v24 = vrot.slane %v9692_v16, %v8938_v61  ;;  %v5207_v44 = vld [vmem:[%s11065_s6 + $0x40] sm:$0xff] }
 0x1f5   : > { %7941 = vset.pattern.permute.xlu1 %v8457_v1  ;;  %v7256_v10 = vcombine.low %v3021_v40, %v3022_v30  ;;  %v7971_v40 = vld [vmem:[%s11062_s3 + $0xa4] ss:$16 sps:$4 sm:$0xff]   ;;  %v8352_v30 = vld [vmem:[%s11060_s1 + $0xd0] sm:$0xf]  ;;  %v3024_v51 = vmax.bf16 %v8458_v2, %v2960_v57  ;;  %v2001_v13 = vmul.bf16 %v8950_v15, %v1656_v9  ;;  %v2143_v57 = vld [vmem:[%s11061_s2 + $0xc8] sm:$0xf] }
 0x1f6   : > { %1812 = vperm.xlu1 %7941, %v394_v50   ;;  %v1222_v16 = vmul.bf16 %v8952_v18, %v850_v0  ;;  %v398_v0 = vld [vmem:[%s11060_s1 + $0xdc] sm:$0xf] }
 0x1f7   : > { %5375 = vperm.xlu0 %7953, %v5221_v5   ;;  %v1659_v45 = vpop.permute.xlu1 %1658  ;;  %4687 = vmatpush1.bf16.msra.mxu0 %v7256_v10 }
 0x1f8   : > { %4688 = vmatprep.subr.bf16.mxu0 %v8458_v2  ;;  %4454 = vmatmul.mubr.bf16.gmra.mrb[12].mxu0 %v7967_v17  ;;  %v5237_v17 = vld [vmem:[%s11065_s6 + $0x130] sm:$0xff]  ;;  %v1667_v10 = vrot.slane %v1659_v45, %v8938_v61  ;;  %v9764_v45 = vpop.permute.xlu0 %3287 }
 0x1f9   : > { %4461 = vmatprep.mubr.bf16.mxu0 %v7968_v25 }
 0x1fa   : > { %7942 = vset.pattern.permute.xlu1 %v8458_v2 }
 0x1fb   : > { %5295 = vperm.xlu0 %7953, %v5205_v38   ;;  %2735 = vperm.xlu1 %7942, %v2141_v8   ;;  %v5223_v38 = vld [vmem:[%s11065_s6 + $0xc0] sm:$0xff] }
 0x1fc   : > { %v2568_v50 = vpop.permute.xlu1 %2567  ;;  %v7973_v8 = vld [vmem:[%s11062_s3 + $0xa0] ss:$16 sps:$4 sm:$0xff]  }
 0x1fd   : > { %v2576_v63 = vrot.slane %v2568_v50, %v8938_v61  ;;  %v2002_v50 = vmul.bf16 %v8950_v15, %v1667_v10  ;;  %v5239_v10 = vld [vmem:[%s11065_s6 + $0x140] sm:$0xff] }
 0x1ff   : > { %v2959_v52 = vadd.bf16 %v2576_v63, %v2063_v29  ;;  %5535 = vperm.xlu0 %7953, %v5253_v33   ;;  %1033 = vperm.xlu1 %7942, %v8352_v30   ;;  %v1223_v33 = vmul.bf16 %v8952_v18, %v862_v24  ;;  %v2612_v29 = vrot.slane %v9454_v12, %v8938_v61  ;;  %v9785_v63 = vpop.permute.xlu0 %3297  ;;  %v7976_v30 = vld [vmem:[%s11062_s3 + $0xc0] ss:$16 sps:$4 sm:$0xff]   ;;  %v7977_v12 = vld [vmem:[%s11062_s3 + $0xe4] ss:$16 sps:$4 sm:$0xff]  }
 0x200   : > { %v9741_v5 = vpop.permute.xlu1 %865  ;;  %4462 = vmatmul.mubr.bf16.gmra.mrb[16].mxu0 %v7970_v34 }
 0x201   : > { %v3023_v41 = vmax.bf16 %v8458_v2, %v2959_v52  ;;  %4469 = vmatprep.mubr.bf16.mxu0 %v7971_v40  ;;  %v2066_v40 = vadd.bf16 %v2002_v50, %v1223_v33  ;;  %v5255_v52 = vld [vmem:[%s11065_s6 + $0x1c0] sm:$0xff]  ;;  %v5225_v50 = vld [vmem:[%s11065_s6 + $0xd0] sm:$0xff] }
 0x202   : > { %v7980_v33 = vld [vmem:[%s11062_s3 + $0x104] ss:$16 sps:$4 sm:$0xff]  }
 0x203   : > { %5455 = vperm.xlu0 %7953, %v5237_v17   ;;  %1045 = vperm.xlu1 %7942, %v396_v39   ;;  %v7257_v25 = vcombine.low %v3023_v41, %v3024_v51  ;;  %v2065_v17 = vadd.bf16 %v2001_v13, %v1222_v16  ;;  %v2962_v41 = vadd.bf16 %v2612_v29, %v2066_v40 }
 0x204   : > { %v9752_v59 = vpop.permute.xlu1 %877 }
 0x205   : > { %4689 = vmatpush1.bf16.msra.mxu0 %v7257_v25  ;;  %v9801_v25 = vpop.permute.xlu0 %3307  ;;  %v886_v40 = vrot.slane %v9752_v59, %v8938_v61 }
 0x206   : > { %4690 = vmatprep.subr.bf16.mxu0 %v8458_v2 }
 0x207   : > { %5385 = vperm.xlu0 %7953, %v5223_v38   ;;  %7943 = vset.pattern.permute.xlu1 %v8457_v1  ;;  %v1225_v59 = vmul.bf16 %v8952_v18, %v886_v40 }
 0x208   : > { %1834 = vperm.xlu1 %7943, %v396_v39   ;;  %4470 = vmatmul.mubr.bf16.gmra.mrb[20].mxu0 %v7973_v8  ;;  %v8353_v8 = vld [vmem:[%s11060_s1 + $0xd8] sm:$0xf] }
 0x209   : > { %v1681_v34 = vpop.permute.xlu1 %1680  ;;  %4477 = vmatprep.mubr.bf16.mxu0 %v7974_v4  ;;  %v3026_v4 = vmax.bf16 %v8458_v2, %v2962_v41  ;;  %v9825_v29 = vpop.permute.xlu0 %3317 }
 0x20a   : > { %v1689_v13 = vrot.slane %v1681_v34, %v8938_v61  ;;  %v1678_v34 = vrot.slane %v9221_v22, %v8938_v61  ;;  %v2145_v22 = vld [vmem:[%s11061_s2 + $0xd0] sm:$0xf] }
 0x20b   : > { %5305 = vperm.xlu0 %7953, %v5207_v44   ;;  %v7979_v44 = vld [vmem:[%s11062_s3 + $0xe0] ss:$16 sps:$4 sm:$0xff]  }
 0x20c   : > { %7944 = vset.pattern.permute.xlu1 %v8458_v2  ;;  %v2003_v41 = vmul.bf16 %v8950_v15, %v1678_v34  ;;  %v400_v34 = vld [vmem:[%s11060_s1 + $0xe4] sm:$0xf] }
 0x20d   : > { %2759 = vperm.xlu1 %7944, %v2143_v57  }
 0x20e   : > { %v2592_v39 = vpop.permute.xlu1 %2591 }
 0x20f   : > { %v2600_v51 = vrot.slane %v2592_v39, %v8938_v61  ;;  %5545 = vperm.xlu0 %7953, %v5255_v52   ;;  %v5209_v52 = vld [vmem:[%s11065_s6 + $0x50] sm:$0xff] }
 0x210   : > { %4478 = vmatmul.mubr.bf16.gmra.mrb[24].mxu0 %v7976_v30  ;;  %v874_v30 = vrot.slane %v9741_v5, %v8938_v61  ;;  %v5257_v39 = vld [vmem:[%s11065_s6 + $0x1d0] sm:$0xff] }
 0x211   : > { %v2961_v38 = vadd.bf16 %v2600_v51, %v2065_v17  ;;  %1057 = vperm.xlu1 %7944, %v8353_v8   ;;  %4485 = vmatprep.mubr.bf16.mxu0 %v7977_v12  ;;  %v2004_v17 = vmul.bf16 %v8950_v15, %v1689_v13  ;;  %v7982_v5 = vld [vmem:[%s11062_s3 + $0x100] ss:$16 sps:$4 sm:$0xff]   ;;  %v2636_v51 = vrot.slane %v9470_v23, %v8938_v61 }
 0x212   : > { %v9806_v9 = vpop.permute.xlu1 %889 }
 0x213   : > { %v3025_v24 = vmax.bf16 %v8458_v2, %v2961_v38  ;;  %5465 = vperm.xlu0 %7953, %v5239_v10   ;;  %v9852_v10 = vpop.permute.xlu0 %3327  ;;  %v1224_v38 = vmul.bf16 %v8952_v18, %v874_v30  ;;  %v2068_v8 = vadd.bf16 %v2004_v17, %v1225_v59  ;;  %v7985_v30 = vld [vmem:[%s11062_s3 + $0x120] ss:$16 sps:$4 sm:$0xff]  }
 0x215   : > { %1069 = vperm.xlu1 %7944, %v398_v0   ;;  %v7258_v16 = vcombine.low %v3025_v24, %v3026_v4  ;;  %v5241_v4 = vld [vmem:[%s11065_s6 + $0x150] sm:$0xff]  ;;  %v2964_v23 = vadd.bf16 %v2636_v51, %v2068_v8  ;;  %v5211_v51 = vld [vmem:[%s11065_s6 + $0x60] sm:$0xff] }
 0x216   : > { %v9823_v57 = vpop.permute.xlu1 %901 }
 0x217   : > { %5395 = vperm.xlu0 %7953, %v5225_v50   ;;  %4691 = vmatpush1.bf16.msra.mxu0 %v7258_v16  ;;  %v2067_v50 = vadd.bf16 %v2003_v41, %v1224_v38  ;;  %v9863_v13 = vpop.permute.xlu0 %3337  ;;  %v3028_v59 = vmax.bf16 %v8458_v2, %v2964_v23  ;;  %v910_v8 = vrot.slane %v9823_v57, %v8938_v61  ;;  %v5259_v57 = vld [vmem:[%s11065_s6 + $0x1e0] sm:$0xff] }
 0x218   : > { %4692 = vmatprep.subr.bf16.mxu0 %v8458_v2  ;;  %4486 = vmatmul.mubr.bf16.gmra.mrb[28].mxu0 %v7979_v44 }
 0x219   : > { %7945 = vset.pattern.permute.xlu1 %v8457_v1  ;;  %4493 = vmatprep.mubr.bf16.mxu0 %v7980_v33  ;;  %v8354_v33 = vld [vmem:[%s11060_s1 + $0xe0] sm:$0xf]  ;;  %v1227_v23 = vmul.bf16 %v8952_v18, %v910_v8 }
 0x21a   : > { %1856 = vperm.xlu1 %7945, %v398_v0   ;;  %v7983_v0 = vld [vmem:[%s11062_s3 + $0x124] ss:$16 sps:$4 sm:$0xff]  }
 0x21b   : > { %5315 = vperm.xlu0 %7953, %v5209_v52   ;;  %v1703_v12 = vpop.permute.xlu1 %1702  ;;  %v5227_v52 = vld [vmem:[%s11065_s6 + $0xe0] sm:$0xff]  ;;  %v9890_v38 = vpop.permute.xlu0 %3347 }
 0x21e   : > { %7946 = vset.pattern.permute.xlu1 %v8458_v2 }
 0x21f   : > { %5555 = vperm.xlu0 %7953, %v5257_v39   ;;  %2783 = vperm.xlu1 %7946, %v2145_v22   ;;  %v7986_v39 = vld [vmem:[%s11062_s3 + $0x144] ss:$16 sps:$4 sm:$0xff]   ;;  %v1711_v22 = vrot.slane %v1703_v12, %v8938_v61  ;;  %v1700_v12 = vrot.slane %v9231_v6, %v8938_v61 }
 0x220   : > { %v2616_v24 = vpop.permute.xlu1 %2615  ;;  %4494 = vmatmul.mubr.bf16.gmra.mrb[32].mxu0 %v7982_v5 }
 0x221   : > { %v2624_v44 = vrot.slane %v2616_v24, %v8938_v61  ;;  %4501 = vmatprep.mubr.bf16.mxu0 %v7983_v0  ;;  %v898_v0 = vrot.slane %v9806_v9, %v8938_v61  ;;  %v2006_v24 = vmul.bf16 %v8950_v15, %v1711_v22  ;;  %v7989_v9 = vld [vmem:[%s11062_s3 + $0x164] ss:$16 sps:$4 sm:$0xff]  }
 0x222   : > { %v5229_v22 = vld [vmem:[%s11065_s6 + $0xf0] sm:$0xff] }
 0x223   : > { %v2963_v16 = vadd.bf16 %v2624_v44, %v2067_v50  ;;  %5475 = vperm.xlu0 %7953, %v5241_v4   ;;  %1081 = vperm.xlu1 %7946, %v8354_v33   ;;  %v7988_v4 = vld [vmem:[%s11062_s3 + $0x140] ss:$16 sps:$4 sm:$0xff]   ;;  %v2147_v50 = vld [vmem:[%s11061_s2 + $0xd8] sm:$0xf]  ;;  %v2005_v44 = vmul.bf16 %v8950_v15, %v1700_v12  ;;  %v9917_v33 = vpop.permute.xlu0 %3357  ;;  %v8355_v12 = vld [vmem:[%s11060_s1 + $0xe8] sm:$0xf] }
 0x224   : > { %v9868_v40 = vpop.permute.xlu1 %913 }
 0x225   : > { %v3027_v17 = vmax.bf16 %v8458_v2, %v2963_v16  ;;  %v2660_v16 = vrot.slane %v9484_v54, %v8938_v61 }
 0x227   : > { %5405 = vperm.xlu0 %7953, %v5227_v52   ;;  %1093 = vperm.xlu1 %7946, %v400_v34   ;;  %v7259_v5 = vcombine.low %v3027_v17, %v3028_v59  ;;  %v1226_v52 = vmul.bf16 %v8952_v18, %v898_v0  ;;  %v7992_v0 = vld [vmem:[%s11062_s3 + $0x184] ss:$16 sps:$4 sm:$0xff]  }
 0x228   : > { %v9885_v41 = vpop.permute.xlu1 %925  ;;  %4502 = vmatmul.mubr.bf16.gmra.mrb[36].mxu0 %v7985_v30  ;;  %v5243_v30 = vld [vmem:[%s11065_s6 + $0x160] sm:$0xff] }
 0x229   : > { %4693 = vmatpush1.bf16.msra.mxu0 %v7259_v5  ;;  %4509 = vmatprep.mubr.bf16.mxu0 %v7986_v39  ;;  %v2069_v39 = vadd.bf16 %v2005_v44, %v1226_v52  ;;  %v7991_v5 = vld [vmem:[%s11062_s3 + $0x160] ss:$16 sps:$4 sm:$0xff]  }
 0x22a   : > { %4694 = vmatprep.subr.bf16.mxu0 %v8458_v2 }
 0x22b   : > { %5325 = vperm.xlu0 %7953, %v5211_v51   ;;  %7947 = vset.pattern.permute.xlu1 %v8457_v1  ;;  %v9931_v51 = vpop.permute.xlu0 %3367 }
 0x22c   : > { %1878 = vperm.xlu1 %7947, %v400_v34   ;;  %v2070_v34 = vadd.bf16 %v2006_v24, %v1227_v23 }
 0x22d   : > { %v1725_v6 = vpop.permute.xlu1 %1724 }
 0x22e   : > { %v2966_v59 = vadd.bf16 %v2660_v16, %v2070_v34  ;;  %v934_v34 = vrot.slane %v9885_v41, %v8938_v61 }
 0x22f   : > { %5565 = vperm.xlu0 %7953, %v5259_v57   ;;  %v402_v57 = vld [vmem:[%s11060_s1 + $0xec] sm:$0xf]  ;;  %v9952_v52 = vpop.permute.xlu0 %3377 }
 0x230   : > { %7948 = vset.pattern.permute.xlu1 %v8458_v2  ;;  %4510 = vmatmul.mubr.bf16.gmra.mrb[40].mxu0 %v7988_v4  ;;  %v3030_v23 = vmax.bf16 %v8458_v2, %v2966_v59  ;;  %v922_v59 = vrot.slane %v9868_v40, %v8938_v61  ;;  %v2149_v40 = vld [vmem:[%s11061_s2 + $0xe0] sm:$0xf] }
 0x231   : > { %2807 = vperm.xlu1 %7948, %v2147_v50   ;;  %4517 = vmatprep.mubr.bf16.mxu0 %v7989_v9  ;;  %v5213_v9 = vld [vmem:[%s11065_s6 + $0x70] sm:$0xff]  ;;  %v1733_v50 = vrot.slane %v1725_v6, %v8938_v61 }
 0x232   : > { %v2640_v17 = vpop.permute.xlu1 %2639  ;;  %v7994_v6 = vld [vmem:[%s11062_s3 + $0x180] ss:$16 sps:$4 sm:$0xff]  }
 0x233   : > { %v2648_v54 = vrot.slane %v2640_v17, %v8938_v61  ;;  %5485 = vperm.xlu0 %7953, %v5243_v30   ;;  %v5261_v30 = vld [vmem:[%s11065_s6 + $0x1f0] sm:$0xff]  ;;  %v1722_v17 = vrot.slane %v9242_v62, %v8938_v61  ;;  %v2008_v41 = vmul.bf16 %v8950_v15, %v1733_v50 }
 0x234   : > { %v5245_v62 = vld [vmem:[%s11065_s6 + $0x170] sm:$0xff] }
 0x235   : > { %v2965_v8 = vadd.bf16 %v2648_v54, %v2069_v39  ;;  %1105 = vperm.xlu1 %7948, %v8355_v12   ;;  %v7995_v39 = vld [vmem:[%s11062_s3 + $0x1a4] ss:$16 sps:$4 sm:$0xff]   ;;  %v1229_v54 = vmul.bf16 %v8952_v18, %v934_v34  ;;  %v9982_v12 = vpop.permute.xlu0 %3387 }
 0x236   : > { %v9939_v24 = vpop.permute.xlu1 %937  ;;  %v7998_v34 = vld [vmem:[%s11062_s3 + $0x1c4] ss:$16 sps:$4 sm:$0xff]  }
 0x237   : > { %v3029_v4 = vmax.bf16 %v8458_v2, %v2965_v8  ;;  %5415 = vperm.xlu0 %7953, %v5229_v22   ;;  %v2684_v8 = vrot.slane %v9503_v35, %v8938_v61 }
 0x238   : > { %4518 = vmatmul.mubr.bf16.gmra.mrb[44].mxu0 %v7991_v5  ;;  %v2007_v5 = vmul.bf16 %v8950_v15, %v1722_v17  ;;  %v8356_v17 = vld [vmem:[%s11060_s1 + $0xf0] sm:$0xf] }
 0x239   : > { %1117 = vperm.xlu1 %7948, %v402_v57   ;;  %v7260_v44 = vcombine.low %v3029_v4, %v3030_v23  ;;  %4525 = vmatprep.mubr.bf16.mxu0 %v7992_v0  ;;  %v1228_v0 = vmul.bf16 %v8952_v18, %v922_v59  ;;  %v6898_v23 = vld [vmem:[#allocation2] sm:$0x1] }
 0x23a   : > { %v9950_v16 = vpop.permute.xlu1 %949 }
 0x23b   : > { %5335 = vperm.xlu0 %7953, %v5213_v9   ;;  %4695 = vmatpush1.bf16.msra.mxu0 %v7260_v44  ;;  %v7997_v9 = vld [vmem:[%s11062_s3 + $0x1a0] ss:$16 sps:$4 sm:$0xff]   ;;  %v2071_v44 = vadd.bf16 %v2007_v5, %v1228_v0  ;;  %v958_v0 = vrot.slane %v9950_v16, %v8938_v61 }
 0x23c   : > { %4696 = vmatprep.subr.bf16.mxu0 %v8458_v2 }
 0x23d   : > { %7949 = vset.pattern.permute.xlu1 %v8457_v1  ;;  %v1231_v16 = vmul.bf16 %v8952_v18, %v958_v0 }
 0x23e   : > { %1900 = vperm.xlu1 %7949, %v402_v57   ;;  %v2072_v57 = vadd.bf16 %v2008_v41, %v1229_v54  ;;  %v404_v41 = vld [vmem:[%s11060_s1 + $0xf4] sm:$0xf] }
 0x23f   : > { %5575 = vperm.xlu0 %7953, %v5261_v30   ;;  %v1747_v22 = vpop.permute.xlu1 %1746  ;;  %v9993_v30 = vpop.permute.xlu0 %3397 }
 0x240   : > { %4526 = vmatmul.mubr.bf16.gmra.mrb[48].mxu0 %v7994_v6  ;;  %v2968_v50 = vadd.bf16 %v2684_v8, %v2072_v57  ;;  %v8000_v8 = vld [vmem:[%s11062_s3 + $0x1c0] ss:$16 sps:$4 sm:$0xff]   ;;  %v8001_v57 = vld [vmem:[%s11062_s3 + $0x1e4] ss:$16 sps:$4 sm:$0xff]  }
 0x241   : > { %4533 = vmatprep.mubr.bf16.mxu0 %v7995_v39 }
 0x242   : > { %7950 = vset.pattern.permute.xlu1 %v8458_v2  ;;  %v3032_v54 = vmax.bf16 %v8458_v2, %v2968_v50  ;;  %v2151_v50 = vld [vmem:[%s11061_s2 + $0xe8] sm:$0xf] }
 0x243   : > { %5495 = vperm.xlu0 %7953, %v5245_v62   ;;  %2831 = vperm.xlu1 %7950, %v2149_v40   ;;  %v1755_v62 = vrot.slane %v1747_v22, %v8938_v61  ;;  %v1744_v22 = vrot.slane %v9253_v36, %v8938_v61  ;;  %v2708_v36 = vrot.slane %v9517_v27, %v8938_v61 }
 0x244   : > { %v2664_v4 = vpop.permute.xlu1 %2663 }
 0x245   : > { %v2672_v35 = vrot.slane %v2664_v4, %v8938_v61  ;;  %v946_v4 = vrot.slane %v9939_v24, %v8938_v61 }
 0x247   : > { %v2967_v6 = vadd.bf16 %v2672_v35, %v2071_v44  ;;  %6901 = vperm.xlu0 %7953, %v6898_v23   ;;  %1129 = vperm.xlu1 %7950, %v8356_v17   ;;  %v2010_v23 = vmul.bf16 %v8950_v15, %v1755_v62  ;;  %v2009_v44 = vmul.bf16 %v8950_v15, %v1744_v22  ;;  %v8357_v62 = vld [vmem:[%s11060_s1 + $0xf8] sm:$0xf]  ;;  %v8006_v22 = vld [vmem:[%s11062_s3 + $0x200] ss:$16 sps:$4 sm:$0xff]  }
 0x248   : > { %v9998_v59 = vpop.permute.xlu1 %961  ;;  %4534 = vmatmul.mubr.bf16.gmra.mrb[52].mxu0 %v7997_v9  ;;  %v1230_v24 = vmul.bf16 %v8952_v18, %v946_v4 }
 0x249   : > { %v3031_v39 = vmax.bf16 %v8458_v2, %v2967_v6  ;;  %4541 = vmatprep.mubr.bf16.mxu0 %v7998_v34  ;;  %v2074_v35 = vadd.bf16 %v2010_v23, %v1231_v16  ;;  %v8003_v34 = vld [vmem:[%s11062_s3 + $0x1e0] ss:$16 sps:$4 sm:$0xff]   ;;  %v8004_v6 = vld [vmem:[%s11062_s3 + $0x204] ss:$16 sps:$4 sm:$0xff]  }
 0x24a   : > { %v8007_v16 = vld [vmem:[%s11062_s3 + $0x224] ss:$16 sps:$4 sm:$0xff]  }
 0x24b   : > { %1141 = vperm.xlu1 %7950, %v404_v41   ;;  %v7261_v40 = vcombine.low %v3031_v39, %v3032_v54  ;;  %v2073_v39 = vadd.bf16 %v2009_v44, %v1230_v24  ;;  %v970_v24 = vrot.slane %v9998_v59, %v8938_v61  ;;  %v2732_v59 = vrot.slane %v9532_v11, %v8938_v61 }
 0x24c   : > { %v974_v5 = vpop.permute.xlu1 %973 }
 0x24d   : > { %4697 = vmatpush1.bf16.msra.mxu0 %v7261_v40  ;;  %v982_v44 = vrot.slane %v974_v5, %v8938_v61  ;;  %v2153_v5 = vld [vmem:[%s11061_s2 + $0xf0] sm:$0xf] }
 0x24e   : > { %4698 = vmatprep.subr.bf16.mxu0 %v8458_v2 }
 0x24f   : > { %7951 = vset.pattern.permute.xlu1 %v8457_v1 }
 0x250   : > { %1922 = vperm.xlu1 %7951, %v404_v41   ;;  %4542 = vmatmul.mubr.bf16.gmra.mrb[56].mxu0 %v8000_v8  ;;  %v2970_v41 = vadd.bf16 %v2708_v36, %v2074_v35  ;;  %v406_v8 = vld [vmem:[%s11060_s1 + $0xfc] sm:$0xf]  ;;  %v1766_v36 = vrot.slane %v9265_v60, %v8938_v61  ;;  %v1233_v35 = vmul.bf16 %v8952_v18, %v982_v44  ;;  %v8009_v60 = vld [vmem:[%s11062_s3 + $0x220] ss:$16 sps:$4 sm:$0xff]  }
 0x251   : > { %v1769_v9 = vpop.permute.xlu1 %1768  ;;  %4549 = vmatprep.mubr.bf16.mxu0 %v8001_v57 }
 0x252   : > { %v3034_v57 = vmax.bf16 %v8458_v2, %v2970_v41  ;;  %v1777_v4 = vrot.slane %v1769_v9, %v8938_v61  ;;  %v8010_v41 = vld [vmem:[%s11062_s3 + $0x244] ss:$16 sps:$4 sm:$0xff]  }
 0x254   : > { %7952 = vset.pattern.permute.xlu1 %v8458_v2  ;;  %v2012_v9 = vmul.bf16 %v8950_v15, %v1777_v4 }
 0x255   : > { %2855 = vperm.xlu1 %7952, %v2151_v50  }
 0x256   : > { %v2688_v17 = vpop.permute.xlu1 %2687 }
 0x257   : > { %v2696_v54 = vrot.slane %v2688_v17, %v8938_v61  ;;  %v2076_v17 = vadd.bf16 %v2012_v9, %v1233_v35  ;;  %v3182_v9 = vld [vmem:[%s11063_s4 + $0x8] sm:$0xff] }
 0x258   : > { %4550 = vmatmul.mubr.bf16.gmra.mrb[60].mxu0 %v8003_v34 }
 0x259   : > { %v2969_v27 = vadd.bf16 %v2696_v54, %v2073_v39  ;;  %1153 = vperm.xlu1 %7952, %v8357_v62   ;;  %4557 = vmatprep.mubr.bf16.mxu0 %v8004_v6  ;;  %v2011_v6 = vmul.bf16 %v8950_v15, %v1766_v36  ;;  %v2155_v54 = vld [vmem:[%s11061_s2 + $0xf8] sm:$0xf] }
 0x25a   : > { %v10040_v40 = vpop.permute.xlu1 %985 }
 0x25b   : > { %v3033_v0 = vmax.bf16 %v8458_v2, %v2969_v27  ;;  %v2972_v27 = vadd.bf16 %v2732_v59, %v2076_v17  ;;  %v2756_v17 = vrot.slane %v9546_v14, %v8938_v61  ;;  %v3188_v14 = vld [vmem:[%s11063_s4 + $0x38] sm:$0xff] }
 0x25d   : > { %1165 = vperm.xlu1 %7952, %v406_v8   ;;  %v7262_v23 = vcombine.low %v3033_v0, %v3034_v57  ;;  %v2156_v57 = vld [vmem:[%s11061_s2 + $0xfc] sm:$0xf] }
 0x25e   : > { %v998_v50 = vpop.permute.xlu1 %997 }
 0x25f   : > { %4699 = vmatpush1.bf16.msra.mxu0 %v7262_v23  ;;  %v3036_v23 = vmax.bf16 %v8458_v2, %v2972_v27  ;;  %v1006_v35 = vrot.slane %v998_v50, %v8938_v61  ;;  %v8015_v50 = vld [vmem:[%s11062_s3 + $0x260] ss:$16 sps:$4 sm:$0xff]  }
 0x260   : > { %4700 = vmatprep.subr.bf16.mxu0 %v8458_v2  ;;  %4558 = vmatmul.mubr.bf16.gmra.mrb[64].mxu0 %v8006_v22  ;;  %v8012_v22 = vld [vmem:[%s11062_s3 + $0x240] ss:$16 sps:$4 sm:$0xff]  }
 0x261   : > { %7954 = vset.pattern.permute.xlu1 %v8457_v1  ;;  %4565 = vmatprep.mubr.bf16.mxu0 %v8007_v16  ;;  %v1232_v1 = vmul.bf16 %v8952_v18, %v970_v24  ;;  %v8013_v16 = vld [vmem:[%s11062_s3 + $0x264] ss:$16 sps:$4 sm:$0xff]   ;;  %v1235_v59 = vmul.bf16 %v8952_v18, %v1006_v35 }
 0x262   : > { %1944 = vperm.xlu1 %7954, %v406_v8  }
 0x263   : > { %v1791_v34 = vpop.permute.xlu1 %1790  ;;  %v2075_v62 = vadd.bf16 %v2011_v6, %v1232_v1  ;;  %v3184_v6 = vld [vmem:[%s11063_s4 + $0x18] sm:$0xff] }
 0x264   : > { %v1799_v44 = vrot.slane %v1791_v34, %v8938_v61  ;;  %v994_v34 = vrot.slane %v10040_v40, %v8938_v61 }
 0x266   : > { %7955 = vset.pattern.permute.xlu1 %v8458_v2 }
 0x267   : > { %2879 = vperm.xlu1 %7955, %v2153_v5   ;;  %v1788_v5 = vrot.slane %v9275_v7, %v8938_v61  ;;  %v8016_v7 = vld [vmem:[%s11062_s3 + $0x284] ss:$16 sps:$4 sm:$0xff]  }
 0x268   : > { %v2712_v39 = vpop.permute.xlu1 %2711  ;;  %4566 = vmatmul.mubr.bf16.gmra.mrb[68].mxu0 %v8009_v60  ;;  %v2014_v60 = vmul.bf16 %v8950_v15, %v1799_v44 }
 0x269   : > { %v2720_v11 = vrot.slane %v2712_v39, %v8938_v61  ;;  %4573 = vmatprep.mubr.bf16.mxu0 %v8010_v41  ;;  %v2013_v40 = vmul.bf16 %v8950_v15, %v1788_v5  ;;  %v1234_v41 = vmul.bf16 %v8952_v18, %v994_v34 }
 0x26a   : > { %v2078_v39 = vadd.bf16 %v2014_v60, %v1235_v59  ;;  %v3192_v60 = vld [vmem:[%s11063_s4 + $0x58] sm:$0xff] }
 0x26b   : > { %v2971_v8 = vadd.bf16 %v2720_v11, %v2075_v62  ;;  %2903 = vperm.xlu1 %7955, %v2155_v54   ;;  %v3186_v54 = vld [vmem:[%s11063_s4 + $0x28] sm:$0xff]  ;;  %v2077_v11 = vadd.bf16 %v2013_v40, %v1234_v41 }
 0x26c   : > { %v10081_v0 = vpop.permute.xlu1 %1009  ;;  %v2974_v62 = vadd.bf16 %v2756_v17, %v2078_v39  ;;  %v3194_v17 = vld [vmem:[%s11063_s4 + $0x68] sm:$0xff] }
 0x26d   : > { %v3035_v4 = vmax.bf16 %v8458_v2, %v2971_v8 }
 0x26e   : > { %v3038_v44 = vmax.bf16 %v8458_v2, %v2974_v62  ;;  %v8024_v62 = vld [vmem:[%s11062_s3 + $0x2c0] ss:$16 sps:$4 sm:$0xff]  }
 0x26f   : > { %2915 = vperm.xlu1 %7955, %v2156_v57   ;;  %v7263_v36 = vcombine.low %v3035_v4, %v3036_v23  ;;  %v8018_v57 = vld [vmem:[%s11062_s3 + $0x280] ss:$16 sps:$4 sm:$0xff]   ;;  %v8019_v4 = vld [vmem:[%s11062_s3 + $0x2a4] ss:$16 sps:$4 sm:$0xff]  }
 0x270   : > { %v1022_v24 = vpop.permute.xlu1 %1021  ;;  %4574 = vmatmul.mubr.bf16.gmra.mrb[72].mxu0 %v8012_v22 }
 0x271   : > { %4701 = vmatpush1.bf16.msra.mxu0 %v7263_v36  ;;  %4581 = vmatprep.mubr.bf16.mxu0 %v8013_v16  ;;  %v3190_v36 = vld [vmem:[%s11063_s4 + $0x48] sm:$0xff]  ;;  %v1030_v34 = vrot.slane %v1022_v24, %v8938_v61  ;;  %v8022_v24 = vld [vmem:[%s11062_s3 + $0x2c4] ss:$16 sps:$4 sm:$0xff]  }
 0x272   : > { %4702 = vmatprep.subr.bf16.mxu0 %v8458_v2 }
 0x273   : > { %3252 = vperm.xlu1 %7955, %v3182_v9  }
 0x275   : > { %v1813_v1 = vpop.permute.xlu1 %1812 }
 0x276   : > { %v1821_v9 = vrot.slane %v1813_v1, %v8938_v61  ;;  %v1810_v1 = vrot.slane %v9285_v3, %v8938_v61 }
 0x277   : > { %3262 = vperm.xlu1 %7955, %v3184_v6   ;;  %v8021_v6 = vld [vmem:[%s11062_s3 + $0x2a0] ss:$16 sps:$4 sm:$0xff]  }
 0x278   : > { %4582 = vmatmul.mubr.bf16.gmra.mrb[76].mxu0 %v8015_v50  ;;  %v1018_v50 = vrot.slane %v10081_v0, %v8938_v61  ;;  %v2016_v59 = vmul.bf16 %v8950_v15, %v1821_v9  ;;  %v2780_v0 = vrot.slane %v9565_v55, %v8938_v61 }
 0x279   : > { %4589 = vmatprep.mubr.bf16.mxu0 %v8016_v7  ;;  %v1237_v7 = vmul.bf16 %v8952_v18, %v1030_v34  ;;  %v3200_v34 = vld [vmem:[%s11063_s4 + $0x98] sm:$0xff] }
 0x27a   : > { %v2736_v27 = vpop.permute.xlu1 %2735  ;;  %v1236_v41 = vmul.bf16 %v8952_v18, %v1018_v50  ;;  %v8028_v50 = vld [vmem:[%s11062_s3 + $0x304] ss:$16 sps:$4 sm:$0xff]  }
 0x27b   : > { %v2744_v8 = vrot.slane %v2736_v27, %v8938_v61  ;;  %3272 = vperm.xlu1 %7955, %v3186_v54   ;;  %v2080_v39 = vadd.bf16 %v2016_v59, %v1237_v7  ;;  %v2015_v54 = vmul.bf16 %v8950_v15, %v1810_v1  ;;  %v3196_v27 = vld [vmem:[%s11063_s4 + $0x78] sm:$0xff]  ;;  %v3202_v1 = vld [vmem:[%s11063_s4 + $0xa8] sm:$0xff] }
 0x27d   : > { %v2973_v22 = vadd.bf16 %v2744_v8, %v2077_v11  ;;  %v2976_v11 = vadd.bf16 %v2780_v0, %v2080_v39  ;;  %v2079_v8 = vadd.bf16 %v2015_v54, %v1236_v41  ;;  %v3204_v41 = vld [vmem:[%s11063_s4 + $0xb8] sm:$0xff]  ;;  %v8030_v39 = vld [vmem:[%s11062_s3 + $0x300] ss:$16 sps:$4 sm:$0xff]   ;;  %v8031_v54 = vld [vmem:[%s11062_s3 + $0x324] ss:$16 sps:$4 sm:$0xff]  }
 0x27e   : > { %v10132_v23 = vpop.permute.xlu1 %1033 }
 0x27f   : > { %v3037_v16 = vmax.bf16 %v8458_v2, %v2973_v22  ;;  %3282 = vperm.xlu1 %7955, %v3188_v14   ;;  %v8025_v14 = vld [vmem:[%s11062_s3 + $0x2e4] ss:$16 sps:$4 sm:$0xff]   ;;  %v1042_v59 = vrot.slane %v10132_v23, %v8938_v61 }
 0x280   : > { %4590 = vmatmul.mubr.bf16.gmra.mrb[80].mxu0 %v8018_v57 }
 0x281   : > { %v7264_v35 = vcombine.low %v3037_v16, %v3038_v44  ;;  %4597 = vmatprep.mubr.bf16.mxu0 %v8019_v4  ;;  %v3198_v4 = vld [vmem:[%s11063_s4 + $0x88] sm:$0xff]  ;;  %v3040_v44 = vmax.bf16 %v8458_v2, %v2976_v11  ;;  %v1238_v23 = vmul.bf16 %v8952_v18, %v1042_v59 }
 0x282   : > { %v1046_v5 = vpop.permute.xlu1 %1045  ;;  %v3206_v11 = vld [vmem:[%s11063_s4 + $0xc8] sm:$0xff] }
 0x283   : > { %3292 = vperm.xlu1 %7955, %v3190_v36   ;;  %4703 = vmatpush1.bf16.msra.mxu0 %v7264_v35 }
 0x284   : > { %4704 = vmatprep.subr.bf16.mxu0 %v8458_v2 }
 0x287   : > { %3302 = vperm.xlu1 %7955, %v3192_v60   ;;  %v1835_v40 = vpop.permute.xlu1 %1834  ;;  %v8027_v60 = vld [vmem:[%s11062_s3 + $0x2e0] ss:$16 sps:$4 sm:$0xff]  }
 0x288   : > { %4598 = vmatmul.mubr.bf16.gmra.mrb[84].mxu0 %v8021_v6  ;;  %v1843_v36 = vrot.slane %v1835_v40, %v8938_v61  ;;  %v1054_v6 = vrot.slane %v1046_v5, %v8938_v61  ;;  %v1832_v5 = vrot.slane %v9296_v58, %v8938_v61 }
 0x289   : > { %4605 = vmatprep.mubr.bf16.mxu0 %v8022_v24 }
 0x28a   : > { %v2018_v24 = vmul.bf16 %v8950_v15, %v1843_v36  ;;  %v1239_v7 = vmul.bf16 %v8952_v18, %v1054_v6  ;;  %v2017_v58 = vmul.bf16 %v8950_v15, %v1832_v5  ;;  %v3210_v6 = vld [vmem:[%s11063_s4 + $0xe8] sm:$0xff]  ;;  %v3212_v5 = vld [vmem:[%s11063_s4 + $0xf8] sm:$0xff] }
 0x28b   : > { %3312 = vperm.xlu1 %7955, %v3194_v17   ;;  %v2804_v17 = vrot.slane %v9584_v19, %v8938_v61 }
 0x28c   : > { %v2760_v3 = vpop.permute.xlu1 %2759  ;;  %v2082_v0 = vadd.bf16 %v2018_v24, %v1239_v7  ;;  %v1854_v24 = vrot.slane %v9308_v53, %v8938_v61  ;;  %v8036_v7 = vld [vmem:[%s11062_s3 + $0x340] ss:$16 sps:$4 sm:$0xff]   ;;  %v8037_v53 = vld [vmem:[%s11062_s3 + $0x364] ss:$16 sps:$4 sm:$0xff]  }
 0x28d   : > { %v2768_v55 = vrot.slane %v2760_v3, %v8938_v61 }
 0x28e   : > { %v2978_v19 = vadd.bf16 %v2804_v17, %v2082_v0 }
 0x28f   : > { %v2975_v57 = vadd.bf16 %v2768_v55, %v2079_v8  ;;  %3322 = vperm.xlu1 %7955, %v3196_v27   ;;  %v2081_v27 = vadd.bf16 %v2017_v58, %v1238_v23  ;;  %v2019_v23 = vmul.bf16 %v8950_v15, %v1854_v24 }
 0x290   : > { %v10174_v22 = vpop.permute.xlu1 %1057  ;;  %4606 = vmatmul.mubr.bf16.gmra.mrb[88].mxu0 %v8024_v62 }
 0x291   : > { %v3039_v16 = vmax.bf16 %v8458_v2, %v2975_v57  ;;  %4613 = vmatprep.mubr.bf16.mxu0 %v8025_v14  ;;  %v3042_v57 = vmax.bf16 %v8458_v2, %v2978_v19  ;;  %v3216_v19 = vld [vmem:[%s11063_s4 + $0x118] sm:$0xff] }
 0x293   : > { %3332 = vperm.xlu1 %7955, %v3198_v4   ;;  %v7265_v9 = vcombine.low %v3039_v16, %v3040_v44  ;;  %v3208_v4 = vld [vmem:[%s11063_s4 + $0xd8] sm:$0xff]  ;;  %v8033_v16 = vld [vmem:[%s11062_s3 + $0x320] ss:$16 sps:$4 sm:$0xff]  }
 0x294   : > { %v1070_v35 = vpop.permute.xlu1 %1069 }
 0x295   : > { %4705 = vmatpush1.bf16.msra.mxu0 %v7265_v9  ;;  %v8034_v9 = vld [vmem:[%s11062_s3 + $0x344] ss:$16 sps:$4 sm:$0xff]  }
 0x296   : > { %4706 = vmatprep.subr.bf16.mxu0 %v8458_v2 }
 0x297   : > { %3342 = vperm.xlu1 %7955, %v3200_v34  }
 0x298   : > { %4614 = vmatmul.mubr.bf16.gmra.mrb[92].mxu0 %v8027_v60  ;;  %v1078_v60 = vrot.slane %v1070_v35, %v8938_v61 }
 0x299   : > { %v1857_v40 = vpop.permute.xlu1 %1856  ;;  %4621 = vmatprep.mubr.bf16.mxu0 %v8028_v50  ;;  %v1066_v50 = vrot.slane %v10174_v22, %v8938_v61  ;;  %v2828_v22 = vrot.slane %v9603_v26, %v8938_v61 }
 0x29a   : > { %v1865_v44 = vrot.slane %v1857_v40, %v8938_v61  ;;  %v1241_v35 = vmul.bf16 %v8952_v18, %v1078_v60  ;;  %v3220_v60 = vld [vmem:[%s11063_s4 + $0x138] sm:$0xff] }
 0x29b   : > { %3352 = vperm.xlu1 %7955, %v3202_v1   ;;  %v1240_v40 = vmul.bf16 %v8952_v18, %v1066_v50 }
 0x29c   : > { %v2020_v59 = vmul.bf16 %v8950_v15, %v1865_v44 }
 0x29d   : > { %v2083_v58 = vadd.bf16 %v2019_v23, %v1240_v40  ;;  %v8045_v23 = vld [vmem:[%s11062_s3 + $0x3a0] ss:$16 sps:$4 sm:$0xff]  }
 0x29e   : > { %v2784_v3 = vpop.permute.xlu1 %2783  ;;  %v2084_v17 = vadd.bf16 %v2020_v59, %v1241_v35 }
 0x29f   : > { %v2792_v62 = vrot.slane %v2784_v3, %v8938_v61  ;;  %3362 = vperm.xlu1 %7955, %v3204_v41   ;;  %v3214_v41 = vld [vmem:[%s11063_s4 + $0x108] sm:$0xff] }
 0x2a0   : > { %4622 = vmatmul.mubr.bf16.gmra.mrb[96].mxu0 %v8030_v39  ;;  %v2980_v39 = vadd.bf16 %v2828_v22, %v2084_v17 }
 0x2a1   : > { %v2977_v8 = vadd.bf16 %v2792_v62, %v2081_v27  ;;  %4629 = vmatprep.mubr.bf16.mxu0 %v8031_v54  ;;  %v8039_v27 = vld [vmem:[%s11062_s3 + $0x360] ss:$16 sps:$4 sm:$0xff]  }
 0x2a2   : > { %v10219_v55 = vpop.permute.xlu1 %1081 }
 0x2a3   : > { %v3041_v14 = vmax.bf16 %v8458_v2, %v2977_v8  ;;  %3372 = vperm.xlu1 %7955, %v3206_v11   ;;  %v3044_v11 = vmax.bf16 %v8458_v2, %v2980_v39  ;;  %v8040_v8 = vld [vmem:[%s11062_s3 + $0x384] ss:$16 sps:$4 sm:$0xff]  }
 0x2a5   : > { %v7266_v36 = vcombine.low %v3041_v14, %v3042_v57 }
 0x2a6   : > { %v1094_v34 = vpop.permute.xlu1 %1093 }
 0x2a7   : > { %3382 = vperm.xlu1 %7955, %v3208_v4   ;;  %4707 = vmatpush1.bf16.msra.mxu0 %v7266_v36  ;;  %v1102_v44 = vrot.slane %v1094_v34, %v8938_v61  ;;  %v1090_v36 = vrot.slane %v10219_v55, %v8938_v61  ;;  %v1876_v34 = vrot.slane %v9322_v42, %v8938_v61  ;;  %v8043_v55 = vld [vmem:[%s11062_s3 + $0x3a4] ss:$16 sps:$4 sm:$0xff]  }
 0x2a8   : > { %4708 = vmatprep.subr.bf16.mxu0 %v8458_v2  ;;  %4630 = vmatmul.mubr.bf16.gmra.mrb[100].mxu0 %v8033_v16  ;;  %v3218_v16 = vld [vmem:[%s11063_s4 + $0x128] sm:$0xff]  ;;  %v2852_v42 = vrot.slane %v9611_v56, %v8938_v61  ;;  %v8046_v56 = vld [vmem:[%s11062_s3 + $0x3c4] ss:$16 sps:$4 sm:$0xff]  }
 0x2a9   : > { %4637 = vmatprep.mubr.bf16.mxu0 %v8034_v9  ;;  %v1243_v50 = vmul.bf16 %v8952_v18, %v1102_v44  ;;  %v1242_v24 = vmul.bf16 %v8952_v18, %v1090_v36 }
 0x2ab   : > { %3392 = vperm.xlu1 %7955, %v3210_v6   ;;  %v1879_v1 = vpop.permute.xlu1 %1878  ;;  %v8042_v6 = vld [vmem:[%s11062_s3 + $0x380] ss:$16 sps:$4 sm:$0xff]  }
 0x2ac   : > { %v1887_v14 = vrot.slane %v1879_v1, %v8938_v61  ;;  %v3222_v1 = vld [vmem:[%s11063_s4 + $0x148] sm:$0xff] }
 0x2ae   : > { %v2022_v9 = vmul.bf16 %v8950_v15, %v1887_v14 }
 0x2af   : > { %3402 = vperm.xlu1 %7955, %v3212_v5   ;;  %v2021_v5 = vmul.bf16 %v8950_v15, %v1876_v34  ;;  %v2876_v34 = vrot.slane %v9638_v31, %v8938_v61 }
 0x2b0   : > { %v2808_v0 = vpop.permute.xlu1 %2807  ;;  %4638 = vmatmul.mubr.bf16.gmra.mrb[104].mxu0 %v8036_v7  ;;  %v2086_v35 = vadd.bf16 %v2022_v9, %v1243_v50  ;;  %v3230_v9 = vld [vmem:[%s11063_s4 + $0x188] sm:$0xff]  ;;  %v3232_v50 = vld [vmem:[%s11063_s4 + $0x198] sm:$0xff] }
 0x2b1   : > { %v2816_v26 = vrot.slane %v2808_v0, %v8938_v61  ;;  %4645 = vmatprep.mubr.bf16.mxu0 %v8037_v53  ;;  %v2085_v40 = vadd.bf16 %v2021_v5, %v1242_v24  ;;  %v3224_v53 = vld [vmem:[%s11063_s4 + $0x158] sm:$0xff] }
 0x2b2   : > { %v2982_v22 = vadd.bf16 %v2852_v42, %v2086_v35  ;;  %v3234_v42 = vld [vmem:[%s11063_s4 + $0x1a8] sm:$0xff] }
 0x2b3   : > { %v2979_v54 = vadd.bf16 %v2816_v26, %v2083_v58  ;;  %3412 = vperm.xlu1 %7955, %v3214_v41   ;;  %v3226_v26 = vld [vmem:[%s11063_s4 + $0x168] sm:$0xff] }
 0x2b4   : > { %v10261_v3 = vpop.permute.xlu1 %1105  ;;  %v3046_v58 = vmax.bf16 %v8458_v2, %v2982_v22 }
 0x2b5   : > { %v3043_v62 = vmax.bf16 %v8458_v2, %v2979_v54  ;;  %v1114_v14 = vrot.slane %v10261_v3, %v8938_v61 }
 0x2b7   : > { %3422 = vperm.xlu1 %7955, %v3216_v19   ;;  %v7267_v57 = vcombine.low %v3043_v62, %v3044_v11  ;;  %v3228_v11 = vld [vmem:[%s11063_s4 + $0x178] sm:$0xff]  ;;  %v1244_v3 = vmul.bf16 %v8952_v18, %v1114_v14 }
 0x2b8   : > { %v1118_v4 = vpop.permute.xlu1 %1117  ;;  %4646 = vmatmul.mubr.bf16.gmra.mrb[108].mxu0 %v8039_v27 }
 0x2b9   : > { %4709 = vmatpush1.bf16.msra.mxu0 %v7267_v57  ;;  %4653 = vmatprep.mubr.bf16.mxu0 %v8040_v8  ;;  %v1126_v62 = vrot.slane %v1118_v4, %v8938_v61  ;;  %v8048_v8 = vld [vmem:[%s11062_s3 + $0x3c0] ss:$16 sps:$4 sm:$0xff]   ;;  %v8049_v4 = vld [vmem:[%s11062_s3 + $0x3e4] ss:$16 sps:$4 sm:$0xff]  }
 0x2ba   : > { %4710 = vmatprep.subr.bf16.mxu0 %v8458_v2 }
 0x2bb   : > { %3432 = vperm.xlu1 %7955, %v3218_v16   ;;  %v1898_v16 = vrot.slane %v9332_v20, %v8938_v61  ;;  %v1245_v44 = vmul.bf16 %v8952_v18, %v1126_v62 }
 0x2bd   : > { %v1901_v59 = vpop.permute.xlu1 %1900 }
 0x2be   : > { %v1909_v54 = vrot.slane %v1901_v59, %v8938_v61  ;;  %v8051_v59 = vld [vmem:[%s11062_s3 + $0x3e0] ss:$16 sps:$4 sm:$0xff]  }
 0x2bf   : > { %3442 = vperm.xlu1 %7955, %v3220_v60  }
 0x2c0   : > { %4654 = vmatmul.mubr.bf16.gmra.mrb[112].mxu0 %v8042_v6  ;;  %v2024_v57 = vmul.bf16 %v8950_v15, %v1909_v54  ;;  %v2023_v6 = vmul.bf16 %v8950_v15, %v1898_v16 }
 0x2c1   : > { %4661 = vmatprep.mubr.bf16.mxu0 %v8043_v55 }
 0x2c2   : > { %v2832_v7 = vpop.permute.xlu1 %2831  ;;  %v2088_v60 = vadd.bf16 %v2024_v57, %v1245_v44  ;;  %v2087_v24 = vadd.bf16 %v2023_v6, %v1244_v3 }
 0x2c3   : > { %v2840_v17 = vrot.slane %v2832_v7, %v8938_v61  ;;  %3452 = vperm.xlu1 %7955, %v3222_v1   ;;  %v8054_v1 = vld [vmem:[%s11062_s3 + $0xc] ss:$16 sps:$4 sm:$0xff]  }
 0x2c4   : > { %v2984_v55 = vadd.bf16 %v2876_v34, %v2088_v60 }
 0x2c5   : > { %v2981_v0 = vadd.bf16 %v2840_v17, %v2085_v40 }
 0x2c6   : > { %v1130_v41 = vpop.permute.xlu1 %1129  ;;  %v3048_v22 = vmax.bf16 %v8458_v2, %v2984_v55  ;;  %v3244_v55 = vld [vmem:[%s11063_s4 + $0x1f8] sm:$0xff] }
 0x2c7   : > { %v3045_v39 = vmax.bf16 %v8458_v2, %v2981_v0  ;;  %3462 = vperm.xlu1 %7955, %v3224_v53  }
 0x2c8   : > { %4662 = vmatmul.mubr.bf16.gmra.mrb[116].mxu0 %v8045_v23  ;;  %v3236_v23 = vld [vmem:[%s11063_s4 + $0x1b8] sm:$0xff] }
 0x2c9   : > { %v7268_v19 = vcombine.low %v3045_v39, %v3046_v58  ;;  %4669 = vmatprep.mubr.bf16.mxu0 %v8046_v56  ;;  %v1138_v56 = vrot.slane %v1130_v41, %v8938_v61  ;;  %v3238_v58 = vld [vmem:[%s11063_s4 + $0x1c8] sm:$0xff]  ;;  %v3240_v41 = vld [vmem:[%s11063_s4 + $0x1d8] sm:$0xff] }
 0x2ca   : > { %v1142_v27 = vpop.permute.xlu1 %1141 }
 0x2cb   : > { %3472 = vperm.xlu1 %7955, %v3226_v26   ;;  %4711 = vmatpush1.bf16.msra.mxu0 %v7268_v19  ;;  %v1150_v0 = vrot.slane %v1142_v27, %v8938_v61  ;;  %v1920_v26 = vrot.slane %v9340_v32, %v8938_v61  ;;  %v1246_v27 = vmul.bf16 %v8952_v18, %v1138_v56  ;;  %v5232_v56 = vld [vmem:[%s11065_s6 + $0x108] sm:$0xff] }
 0x2cc   : > { %4712 = vmatprep.subr.bf16.mxu0 %v8458_v2  ;;  %v1942_v32 = vrot.slane %v9361_v48, %v8938_v61 }
 0x2cd   : > { %v1247_v54 = vmul.bf16 %v8952_v18, %v1150_v0  ;;  %v5248_v0 = vld [vmem:[%s11065_s6 + $0x188] sm:$0xff] }
 0x2ce   : > { %v2027_v6 = vmul.bf16 %v8950_v15, %v1942_v32  ;;  %v5204_v32 = vld [vmem:[%s11065_s6 + $0x28] sm:$0xff] }
 0x2cf   : > { %3482 = vperm.xlu1 %7955, %v3228_v11   ;;  %v1923_v36 = vpop.permute.xlu1 %1922  ;;  %v2025_v11 = vmul.bf16 %v8950_v15, %v1920_v26  ;;  %v5218_v26 = vld [vmem:[%s11065_s6 + $0x98] sm:$0xff] }
 0x2d0   : > { %4670 = vmatmul.mubr.bf16.gmra.mrb[120].mxu0 %v8048_v8  ;;  %v1931_v40 = vrot.slane %v1923_v36, %v8938_v61  ;;  %v2900_v8 = vrot.slane %v9655_v49, %v8938_v61 }
 0x2d1   : > { %4677 = vmatprep.mubr.bf16.mxu0 %v8049_v4  ;;  %v2089_v44 = vadd.bf16 %v2025_v11, %v1246_v27  ;;  %v8061_v27 = vld [vmem:[%s11062_s3 + $0x6c] ss:$16 sps:$4 sm:$0xff]   ;;  %v8063_v11 = vld [vmem:[%s11062_s3 + $0x68] ss:$16 sps:$4 sm:$0xff]  }
 0x2d2   : > { %v2026_v39 = vmul.bf16 %v8950_v15, %v1931_v40 }
 0x2d3   : > { %3492 = vperm.xlu1 %7955, %v3230_v9   ;;  %v3242_v9 = vld [vmem:[%s11063_s4 + $0x1e8] sm:$0xff] }
 0x2d4   : > { %v2856_v20 = vpop.permute.xlu1 %2855  ;;  %v2090_v62 = vadd.bf16 %v2026_v39, %v1247_v54  ;;  %v8057_v39 = vld [vmem:[%s11062_s3 + $0x28] ss:$16 sps:$4 sm:$0xff]  }
 0x2d5   : > { %v2864_v35 = vrot.slane %v2856_v20, %v8938_v61  ;;  %v5202_v54 = vld [vmem:[%s11065_s6 + $0x18] sm:$0xff] }
 0x2d6   : > { %v2986_v4 = vadd.bf16 %v2900_v8, %v2090_v62  ;;  %v5250_v62 = vld [vmem:[%s11065_s6 + $0x198] sm:$0xff] }
 0x2d7   : > { %v2983_v5 = vadd.bf16 %v2864_v35, %v2087_v24  ;;  %3502 = vperm.xlu1 %7955, %v3232_v50   ;;  %v8064_v8 = vld [vmem:[%s11062_s3 + $0x8c] ss:$16 sps:$4 sm:$0xff]  }
 0x2d8   : > { %v1154_v31 = vpop.permute.xlu1 %1153  ;;  %4678 = vmatmul.mubr.bf16.gmra.mrb[124].mxu0 %v8051_v59  ;;  %v3050_v59 = vmax.bf16 %v8458_v2, %v2986_v4  ;;  %v8067_v4 = vld [vmem:[%s11062_s3 + $0xac] ss:$16 sps:$4 sm:$0xff]  }
 0x2d9   : > { %v3047_v7 = vmax.bf16 %v8458_v2, %v2983_v5  ;;  %4718 = vmatprep.mubr.bf16.mxu0 %v8054_v1  ;;  %v1162_v14 = vrot.slane %v1154_v31, %v8938_v61 }
 0x2db   : > { %3512 = vperm.xlu1 %7955, %v3234_v42   ;;  %v7269_v17 = vcombine.low %v3047_v7, %v3048_v22  ;;  %v1248_v3 = vmul.bf16 %v8952_v18, %v1162_v14  ;;  %v5216_v7 = vld [vmem:[%s11065_s6 + $0x88] sm:$0xff] }
 0x2dc   : > { %v1166_v53 = vpop.permute.xlu1 %1165  ;;  %v5220_v14 = vld [vmem:[%s11065_s6 + $0xa8] sm:$0xff] }
 0x2dd   : > { %4713 = vmatpush1.bf16.msra.mxu0 %v7269_v17  ;;  %v1174_v49 = vrot.slane %v1166_v53, %v8938_v61  ;;  %v2091_v35 = vadd.bf16 %v2027_v6, %v1248_v3  ;;  %v5200_v17 = vld [vmem:[%s11065_s6 + $0x8] sm:$0xff]  ;;  %v5206_v6 = vld [vmem:[%s11065_s6 + $0x38] sm:$0xff] }
 0x2de   : > { %4714 = vmatprep.subr.bf16.mxu0 %v8458_v2  ;;  %v8070_v3 = vld [vmem:[%s11062_s3 + $0xcc] ss:$16 sps:$4 sm:$0xff]  }
 0x2df   : > { %3522 = vperm.xlu1 %7955, %v3236_v23   ;;  %v1249_v24 = vmul.bf16 %v8952_v18, %v1174_v49  ;;  %v8055_v23 = vld [vmem:[%s11062_s3 + $0x2c] ss:$16 sps:$4 sm:$0xff]  }
 0x2e0   : > { %v5222_v49 = vld [vmem:[%s11065_s6 + $0xb8] sm:$0xff] }
 0x2e1   : > { %v1945_v19 = vpop.permute.xlu1 %1944 }
 0x2e2   : > { %v1953_v16 = vrot.slane %v1945_v19, %v8938_v61  ;;  %v8060_v19 = vld [vmem:[%s11062_s3 + $0x48] ss:$16 sps:$4 sm:$0xff]  }
 0x2e3   : > { %3532 = vperm.xlu1 %7955, %v3238_v58   ;;  %v8058_v58 = vld [vmem:[%s11062_s3 + $0x4c] ss:$16 sps:$4 sm:$0xff]  }
 0x2e4   : > { %v2028_v34 = vmul.bf16 %v8950_v15, %v1953_v16  ;;  %v5252_v16 = vld [vmem:[%s11065_s6 + $0x1a8] sm:$0xff] }
 0x2e6   : > { %v2880_v57 = vpop.permute.xlu1 %2879  ;;  %v2092_v42 = vadd.bf16 %v2028_v34, %v1249_v24  ;;  %v8075_v24 = vld [vmem:[%s11062_s3 + $0xe8] ss:$16 sps:$4 sm:$0xff]  }
 0x2e7   : > { %v2888_v36 = vrot.slane %v2880_v57, %v8938_v61  ;;  %3542 = vperm.xlu1 %7955, %v3240_v41   ;;  %v5234_v41 = vld [vmem:[%s11065_s6 + $0x118] sm:$0xff] }
 0x2e8   : > { %v8066_v57 = vld [vmem:[%s11062_s3 + $0x88] ss:$16 sps:$4 sm:$0xff]  }
 0x2e9   : > { %v2985_v60 = vadd.bf16 %v2888_v36, %v2089_v44  ;;  %v5236_v36 = vld [vmem:[%s11065_s6 + $0x128] sm:$0xff] }
 0x2ea   : > { %v2904_v48 = vpop.permute.xlu1 %2903 }
 0x2eb   : > { %v3049_v20 = vmax.bf16 %v8458_v2, %v2985_v60  ;;  %v2912_v50 = vrot.slane %v2904_v48, %v8938_v61  ;;  %3552 = vperm.xlu1 %7955, %v3242_v9   ;;  %v8069_v9 = vld [vmem:[%s11062_s3 + $0xa8] ss:$16 sps:$4 sm:$0xff]  }
 0x2ec   : > { %v8072_v48 = vld [vmem:[%s11062_s3 + $0xc8] ss:$16 sps:$4 sm:$0xff]  }
 0x2ed   : > { %v7270_v1 = vcombine.low %v3049_v20, %v3050_v59  ;;  %v2987_v31 = vadd.bf16 %v2912_v50, %v2091_v35  ;;  %v8073_v20 = vld [vmem:[%s11062_s3 + $0xec] ss:$16 sps:$4 sm:$0xff]  }
 0x2ee   : > { %v2916_v5 = vpop.permute.xlu1 %2915  ;;  %v5254_v50 = vld [vmem:[%s11065_s6 + $0x1b8] sm:$0xff] }
 0x2ef   : > { %v2924_v15 = vrot.slane %v2916_v5, %v8938_v61  ;;  %3562 = vperm.xlu1 %7955, %v3244_v55   ;;  %4715 = vmatpush1.bf16.msra.mxu0 %v7270_v1  ;;  %v3051_v40 = vmax.bf16 %v8458_v2, %v2987_v31  ;;  %v8052_v61 = vld [vmem:[%s11062_s3 + $0x8] ss:$16 sps:$4 sm:$0xff]   ;;  %v8076_v35 = vld [vmem:[%s11062_s3 + $0x10c] ss:$16 sps:$4 sm:$0xff]  }
 0x2f0   : > { %4716 = vmatprep.subr.bf16.mxu0 %v8458_v2  ;;  %v5238_v59 = vld [vmem:[%s11065_s6 + $0x138] sm:$0xff]  ;;  %v5224_v1 = vld [vmem:[%s11065_s6 + $0xc8] sm:$0xff] }
 0x2f1   : > { %v2988_v22 = vadd.bf16 %v2924_v15, %v2092_v42  ;;  %v5208_v31 = vld [vmem:[%s11065_s6 + $0x48] sm:$0xff] }
 0x2f2   : > { %v10464_v44 = vpop.permute.xlu1 %3252  ;;  %v8078_v42 = vld [vmem:[%s11062_s3 + $0x108] ss:$16 sps:$4 sm:$0xff]   ;;  %v8079_v15 = vld [vmem:[%s11062_s3 + $0x12c] ss:$16 sps:$4 sm:$0xff]  }
 0x2f3   : > { %v3052_v18 = vmax.bf16 %v8458_v2, %v2988_v22  ;;  %5350 = vperm.xlu1 %7955, %v5216_v7   ;;  %v5256_v7 = vld [vmem:[%s11065_s6 + $0x1c8] sm:$0xff] }
 0x2f5   : > { %v7271_v53 = vcombine.low %v3051_v40, %v3052_v18  ;;  %v5240_v40 = vld [vmem:[%s11065_s6 + $0x148] sm:$0xff] }
 0x2f6   : > { %v10478_v60 = vpop.permute.xlu1 %3262  ;;  %v8081_v18 = vld [vmem:[%s11062_s3 + $0x128] ss:$16 sps:$4 sm:$0xff]  }
 0x2f7   : > { %5270 = vperm.xlu1 %7955, %v5200_v17   ;;  %4717 = vmatpush1.bf16.msra.mxu0 %v7271_v53  ;;  %v8082_v53 = vld [vmem:[%s11062_s3 + $0x14c] ss:$16 sps:$4 sm:$0xff]  }
 0x2fa   : > { %4719 = vmatmul.mubr.bf16.vlgmr.msra.gmra.mrb[0].mxu0 %v8052_v61  ;;  %v10486_v34 = vpop.permute.xlu1 %3272  ;;  %v5226_v61 = vld [vmem:[%s11065_s6 + $0xd8] sm:$0xff] }
 0x2fb   : > { %5510 = vperm.xlu1 %7955, %v5248_v0   ;;  %4726 = vmatprep.mubr.bf16.mxu0 %v8055_v23  ;;  %v5210_v23 = vld [vmem:[%s11065_s6 + $0x58] sm:$0xff] }
 0x2fe   : > { %v10497_v55 = vpop.permute.xlu1 %3282 }
 0x2ff   : > { %5430 = vperm.xlu1 %7955, %v5232_v56   ;;  %v8084_v56 = vld [vmem:[%s11062_s3 + $0x148] ss:$16 sps:$4 sm:$0xff]  }
 0x302   : > { %4727 = vmatmul.mubr.bf16.gmra.mrb[4].mxu0 %v8057_v39  ;;  %v10508_v5 = vpop.permute.xlu1 %3292  ;;  %v8085_v39 = vld [vmem:[%s11062_s3 + $0x16c] ss:$16 sps:$4 sm:$0xff]  }
 0x303   : > { %5360 = vperm.xlu1 %7955, %v5218_v26   ;;  %4734 = vmatprep.mubr.bf16.mxu0 %v8058_v58  ;;  %v5258_v58 = vld [vmem:[%s11065_s6 + $0x1d8] sm:$0xff] }
 0x306   : > { %v10522_v22 = vpop.permute.xlu1 %3302 }
 0x307   : > { %5280 = vperm.xlu1 %7955, %v5202_v54   ;;  %v5242_v54 = vld [vmem:[%s11065_s6 + $0x158] sm:$0xff] }
 0x30a   : > { %4735 = vmatmul.mubr.bf16.gmra.mrb[8].mxu0 %v8060_v19  ;;  %v10530_v17 = vpop.permute.xlu1 %3312  ;;  %v8087_v19 = vld [vmem:[%s11062_s3 + $0x168] ss:$16 sps:$4 sm:$0xff]  }
 0x30b   : > { %5520 = vperm.xlu1 %7955, %v5250_v62   ;;  %4742 = vmatprep.mubr.bf16.mxu0 %v8061_v27  ;;  %v8088_v27 = vld [vmem:[%s11062_s3 + $0x18c] ss:$16 sps:$4 sm:$0xff]  }
 0x30c   : > { %v5228_v62 = vld [vmem:[%s11065_s6 + $0xe8] sm:$0xff] }
 0x30e   : > { %v10541_v0 = vpop.permute.xlu1 %3322 }
 0x30f   : > { %5440 = vperm.xlu1 %7955, %v5234_v41  }
 0x312   : > { %4743 = vmatmul.mubr.bf16.gmra.mrb[12].mxu0 %v8063_v11  ;;  %v10552_v26 = vpop.permute.xlu1 %3332  ;;  %v5212_v11 = vld [vmem:[%s11065_s6 + $0x68] sm:$0xff] }
 0x313   : > { %5370 = vperm.xlu1 %7955, %v5220_v14   ;;  %4750 = vmatprep.mubr.bf16.mxu0 %v8064_v8  ;;  %v8090_v8 = vld [vmem:[%s11062_s3 + $0x188] ss:$16 sps:$4 sm:$0xff]  }
 0x316   : > { %v10566_v41 = vpop.permute.xlu1 %3342 }
 0x317   : > { %5290 = vperm.xlu1 %7955, %v5204_v32   ;;  %v8091_v32 = vld [vmem:[%s11062_s3 + $0x1ac] ss:$16 sps:$4 sm:$0xff]  }
 0x31a   : > { %4751 = vmatmul.mubr.bf16.gmra.mrb[16].mxu0 %v8066_v57  ;;  %v10574_v14 = vpop.permute.xlu1 %3352  ;;  %v5260_v57 = vld [vmem:[%s11065_s6 + $0x1e8] sm:$0xff] }
 0x31b   : > { %5530 = vperm.xlu1 %7955, %v5252_v16   ;;  %4758 = vmatprep.mubr.bf16.mxu0 %v8067_v4  ;;  %v5244_v4 = vld [vmem:[%s11065_s6 + $0x168] sm:$0xff] }
 0x31e   : > { %v10585_v16 = vpop.permute.xlu1 %3362 }
 0x31f   : > { %5450 = vperm.xlu1 %7955, %v5236_v36   ;;  %v8093_v36 = vld [vmem:[%s11062_s3 + $0x1a8] ss:$16 sps:$4 sm:$0xff]  }
 0x322   : > { %4759 = vmatmul.mubr.bf16.gmra.mrb[20].mxu0 %v8069_v9  ;;  %v8094_v9 = vld [vmem:[%s11062_s3 + $0x1cc] ss:$16 sps:$4 sm:$0xff]  }
 0x323   : > { %5380 = vperm.xlu1 %7955, %v5222_v49   ;;  %4766 = vmatprep.mubr.bf16.mxu0 %v8070_v3  ;;  %v5230_v3 = vld [vmem:[%s11065_s6 + $0xf8] sm:$0xff]  ;;  %v10596_v49 = vpop.permute.xlu1 %3372 }
 0x327   : > { %5300 = vperm.xlu1 %7955, %v5206_v6   ;;  %v5214_v6 = vld [vmem:[%s11065_s6 + $0x78] sm:$0xff] }
 0x32a   : > { %4767 = vmatmul.mubr.bf16.gmra.mrb[24].mxu0 %v8072_v48  ;;  %v8096_v48 = vld [vmem:[%s11062_s3 + $0x1c8] ss:$16 sps:$4 sm:$0xff]  }
 0x32b   : > { %5540 = vperm.xlu1 %7955, %v5254_v50   ;;  %4774 = vmatprep.mubr.bf16.mxu0 %v8073_v20  ;;  %v8097_v20 = vld [vmem:[%s11062_s3 + $0x1ec] ss:$16 sps:$4 sm:$0xff]  }
 0x32c   : > { %v5262_v50 = vld [vmem:[%s11065_s6 + $0x1f8] sm:$0xff] }
 0x32f   : > { %5460 = vperm.xlu1 %7955, %v5238_v59   ;;  %v10610_v59 = vpop.permute.xlu1 %3382 }
 0x332   : > { %4775 = vmatmul.mubr.bf16.gmra.mrb[28].mxu0 %v8075_v24  ;;  %v5246_v24 = vld [vmem:[%s11065_s6 + $0x178] sm:$0xff] }
 0x333   : > { %5390 = vperm.xlu1 %7955, %v5224_v1   ;;  %4782 = vmatprep.mubr.bf16.mxu0 %v8076_v35  ;;  %v8099_v35 = vld [vmem:[%s11062_s3 + $0x1e8] ss:$16 sps:$4 sm:$0xff]   ;;  %v10618_v1 = vpop.permute.xlu1 %3392 }
 0x337   : > { %5310 = vperm.xlu1 %7955, %v5208_v31   ;;  %v8100_v31 = vld [vmem:[%s11062_s3 + $0x20c] ss:$16 sps:$4 sm:$0xff]  }
 0x33a   : > { %4783 = vmatmul.mubr.bf16.gmra.mrb[32].mxu0 %v8078_v42  ;;  %v8102_v42 = vld [vmem:[%s11062_s3 + $0x208] ss:$16 sps:$4 sm:$0xff]  }
 0x33b   : > { %5550 = vperm.xlu1 %7955, %v5256_v7   ;;  %4790 = vmatprep.mubr.bf16.mxu0 %v8079_v15  ;;  %v8103_v15 = vld [vmem:[%s11062_s3 + $0x22c] ss:$16 sps:$4 sm:$0xff]   ;;  %v8105_v7 = vld [vmem:[%s11062_s3 + $0x228] ss:$16 sps:$4 sm:$0xff]  }
 0x33f   : > { %5470 = vperm.xlu1 %7955, %v5240_v40   ;;  %v8106_v40 = vld [vmem:[%s11062_s3 + $0x24c] ss:$16 sps:$4 sm:$0xff]  }
 0x342   : > { %4791 = vmatmul.mubr.bf16.gmra.mrb[36].mxu0 %v8081_v18  ;;  %v8108_v18 = vld [vmem:[%s11062_s3 + $0x248] ss:$16 sps:$4 sm:$0xff]  }
 0x343   : > { %5400 = vperm.xlu1 %7955, %v5226_v61   ;;  %4798 = vmatprep.mubr.bf16.mxu0 %v8082_v53  ;;  %v8109_v53 = vld [vmem:[%s11062_s3 + $0x26c] ss:$16 sps:$4 sm:$0xff]   ;;  %v8111_v61 = vld [vmem:[%s11062_s3 + $0x268] ss:$16 sps:$4 sm:$0xff]  }
 0x347   : > { %5320 = vperm.xlu1 %7955, %v5210_v23   ;;  %v8112_v23 = vld [vmem:[%s11062_s3 + $0x28c] ss:$16 sps:$4 sm:$0xff]  }
 0x34a   : > { %4799 = vmatmul.mubr.bf16.gmra.mrb[40].mxu0 %v8084_v56  ;;  %v8114_v56 = vld [vmem:[%s11062_s3 + $0x288] ss:$16 sps:$4 sm:$0xff]  }
 0x34b   : > { %5560 = vperm.xlu1 %7955, %v5258_v58   ;;  %4806 = vmatprep.mubr.bf16.mxu0 %v8085_v39  ;;  %v8115_v39 = vld [vmem:[%s11062_s3 + $0x2ac] ss:$16 sps:$4 sm:$0xff]   ;;  %v8117_v58 = vld [vmem:[%s11062_s3 + $0x2a8] ss:$16 sps:$4 sm:$0xff]  }
 0x34f   : > { %5480 = vperm.xlu1 %7955, %v5242_v54   ;;  %v8118_v54 = vld [vmem:[%s11062_s3 + $0x2cc] ss:$16 sps:$4 sm:$0xff]  }
 0x352   : > { %4807 = vmatmul.mubr.bf16.gmra.mrb[44].mxu0 %v8087_v19  ;;  %v8120_v19 = vld [vmem:[%s11062_s3 + $0x2c8] ss:$16 sps:$4 sm:$0xff]  }
 0x353   : > { %5410 = vperm.xlu1 %7955, %v5228_v62   ;;  %4814 = vmatprep.mubr.bf16.mxu0 %v8088_v27  ;;  %v8121_v27 = vld [vmem:[%s11062_s3 + $0x2ec] ss:$16 sps:$4 sm:$0xff]   ;;  %v8123_v62 = vld [vmem:[%s11062_s3 + $0x2e8] ss:$16 sps:$4 sm:$0xff]  }
 0x357   : > { %5330 = vperm.xlu1 %7955, %v5212_v11   ;;  %v8124_v11 = vld [vmem:[%s11062_s3 + $0x30c] ss:$16 sps:$4 sm:$0xff]  }
 0x35a   : > { %4815 = vmatmul.mubr.bf16.gmra.mrb[48].mxu0 %v8090_v8  ;;  %v8126_v8 = vld [vmem:[%s11062_s3 + $0x308] ss:$16 sps:$4 sm:$0xff]  }
 0x35b   : > { %5570 = vperm.xlu1 %7955, %v5260_v57   ;;  %4822 = vmatprep.mubr.bf16.mxu0 %v8091_v32  ;;  %v8127_v32 = vld [vmem:[%s11062_s3 + $0x32c] ss:$16 sps:$4 sm:$0xff]   ;;  %v8129_v57 = vld [vmem:[%s11062_s3 + $0x328] ss:$16 sps:$4 sm:$0xff]  }
 0x35f   : > { %5490 = vperm.xlu1 %7955, %v5244_v4   ;;  %v8130_v4 = vld [vmem:[%s11062_s3 + $0x34c] ss:$16 sps:$4 sm:$0xff]  }
 0x362   : > { %4823 = vmatmul.mubr.bf16.gmra.mrb[52].mxu0 %v8093_v36  ;;  %v8132_v36 = vld [vmem:[%s11062_s3 + $0x348] ss:$16 sps:$4 sm:$0xff]  }
 0x363   : > { %5420 = vperm.xlu1 %7955, %v5230_v3   ;;  %4830 = vmatprep.mubr.bf16.mxu0 %v8094_v9  ;;  %v8133_v9 = vld [vmem:[%s11062_s3 + $0x36c] ss:$16 sps:$4 sm:$0xff]  }
 0x367   : > { %5340 = vperm.xlu1 %7955, %v5214_v6  }
 0x36a   : > { %4831 = vmatmul.mubr.bf16.gmra.mrb[56].mxu0 %v8096_v48 }
 0x36b   : > { %5580 = vperm.xlu1 %7955, %v5262_v50   ;;  %4838 = vmatprep.mubr.bf16.mxu0 %v8097_v20  ;;  %v8135_v20 = vld [vmem:[%s11062_s3 + $0x368] ss:$16 sps:$4 sm:$0xff]  }
 0x36f   : > { %5500 = vperm.xlu1 %7955, %v5246_v24   ;;  %v8136_v24 = vld [vmem:[%s11062_s3 + $0x38c] ss:$16 sps:$4 sm:$0xff]  }
 0x372   : > { %4839 = vmatmul.mubr.bf16.gmra.mrb[60].mxu0 %v8099_v35  ;;  %v8150_v35 = vld [vmem:[#allocation3 + $0x4] ss:$16 sps:$4 sm:$0xff]  }
 0x373   : > { %4846 = vmatprep.mubr.bf16.mxu0 %v8100_v31  ;;  %6255 = vmatprep.mubr.bf16.mxu1 %v8150_v35 }
 0x37a   : > { %4847 = vmatmul.mubr.bf16.gmra.mrb[64].mxu0 %v8102_v42 }
 0x37b   : > { %4854 = vmatprep.mubr.bf16.mxu0 %v8103_v15 }
 0x382   : > { %4855 = vmatmul.mubr.bf16.gmra.mrb[68].mxu0 %v8105_v7 }
 0x383   : > { %4862 = vmatprep.mubr.bf16.mxu0 %v8106_v40 }
 0x38a   : > { %4863 = vmatmul.mubr.bf16.gmra.mrb[72].mxu0 %v8108_v18 }
 0x38b   : > { %4870 = vmatprep.mubr.bf16.mxu0 %v8109_v53 }
 0x392   : > { %4871 = vmatmul.mubr.bf16.gmra.mrb[76].mxu0 %v8111_v61  ;;  %v8138_v61 = vld [vmem:[%s11062_s3 + $0x388] ss:$16 sps:$4 sm:$0xff]  }
 0x393   : > { %4878 = vmatprep.mubr.bf16.mxu0 %v8112_v23 }
 0x39a   : > { %4879 = vmatmul.mubr.bf16.gmra.mrb[80].mxu0 %v8114_v56 }
 0x39b   : > { %4886 = vmatprep.mubr.bf16.mxu0 %v8115_v39 }
 0x3a2   : > { %4887 = vmatmul.mubr.bf16.gmra.mrb[84].mxu0 %v8117_v58 }
 0x3a3   : > { %4894 = vmatprep.mubr.bf16.mxu0 %v8118_v54 }
 0x3aa   : > { %4895 = vmatmul.mubr.bf16.gmra.mrb[88].mxu0 %v8120_v19 }
 0x3ab   : > { %4902 = vmatprep.mubr.bf16.mxu0 %v8121_v27 }
 0x3b2   : > { %4903 = vmatmul.mubr.bf16.gmra.mrb[92].mxu0 %v8123_v62 }
 0x3b3   : > { %4910 = vmatprep.mubr.bf16.mxu0 %v8124_v11  ;;  %v8141_v11 = vld [vmem:[%s11062_s3 + $0x3a8] ss:$16 sps:$4 sm:$0xff]  }
 0x3ba   : > { %4911 = vmatmul.mubr.bf16.gmra.mrb[96].mxu0 %v8126_v8 }
 0x3bb   : > { %4918 = vmatprep.mubr.bf16.mxu0 %v8127_v32 }
 0x3c2   : > { %4919 = vmatmul.mubr.bf16.gmra.mrb[100].mxu0 %v8129_v57 }
 0x3c3   : > { %4926 = vmatprep.mubr.bf16.mxu0 %v8130_v4 }
 0x3ca   : > { %4927 = vmatmul.mubr.bf16.gmra.mrb[104].mxu0 %v8132_v36 }
 0x3cb   : > { %4934 = vmatprep.mubr.bf16.mxu0 %v8133_v9 }
 0x3cd   : > { %v4720_v3 = vpop.f32.mrb[0].mxu0 }
 0x3ce   : > { %v7448_v6 = vadd.f32 %v4720_v3, %v9672_v46  ;;  %v4722_v48 = vpop.f32.mrb[1].mxu0 }
 0x3cf   : > { %v4723_v50 = vpop.f32.mrb[2].mxu0  ;;  %v8144_v48 = vld [vmem:[%s11062_s3 + $0x3c8] ss:$16 sps:$4 sm:$0xff]  }
 0x3d0   : > { %v7449_v31 = vadd.f32 %v4723_v50, %v10464_v44  ;;  %v4725_v42 = vpop.f32.mrb[3].mxu0  ;;  %v4975_v15 = vmax.f32 %v7448_v6, 0.0  ;;  %v8139_v44 = vld [vmem:[%s11062_s3 + $0x3ac] ss:$16 sps:$4 sm:$0xff]  }
 0x3d2   : > { %v4976_v7 = vmax.f32 %v7449_v31, 0.0  ;;  %4935 = vmatmul.mubr.bf16.gmra.mrb[108].mxu0 %v8135_v20 }
 0x3d3   : > { %4942 = vmatprep.mubr.bf16.mxu0 %v8136_v24 }
 0x3d4   : > { %v5039_v46 = vpack.c.bf16 %v4976_v7, %v4975_v15 }
 0x3d5   : > { %v4728_v40 = vpop.f32.mrb[4].mxu0 }
 0x3d6   : > { %v7450_v18 = vadd.f32 %v4728_v40, %v9694_v28  ;;  %v4730_v53 = vpop.f32.mrb[5].mxu0  ;;  %6224 = vmatpush1.bf16.msra.mxu1 %v5039_v46  ;;  %v8147_v46 = vld [vmem:[%s11062_s3 + $0x3e8] ss:$16 sps:$4 sm:$0xff]  }
 0x3d7   : > { %v4731_v23 = vpop.f32.mrb[6].mxu0  ;;  %6225 = vmatprep.subr.bf16.mxu1 %v8458_v2 }
 0x3d8   : > { %v7451_v56 = vadd.f32 %v4731_v23, %v10478_v60  ;;  %v4733_v39 = vpop.f32.mrb[7].mxu0  ;;  %v4977_v58 = vmax.f32 %v7450_v18, 0.0  ;;  %v8142_v60 = vld [vmem:[%s11062_s3 + $0x3cc] ss:$16 sps:$4 sm:$0xff]  }
 0x3da   : > { %v4978_v54 = vmax.f32 %v7451_v56, 0.0  ;;  %4943 = vmatmul.mubr.bf16.gmra.mrb[112].mxu0 %v8138_v61 }
 0x3db   : > { %4950 = vmatprep.mubr.bf16.mxu0 %v8139_v44 }
 0x3dc   : > { %v5040_v28 = vpack.c.bf16 %v4978_v54, %v4977_v58 }
 0x3dd   : > { %v4736_v19 = vpop.f32.mrb[8].mxu0 }
 0x3de   : > { %v7452_v27 = vadd.f32 %v4736_v19, %v9721_v47  ;;  %v4738_v62 = vpop.f32.mrb[9].mxu0  ;;  %6226 = vmatpush1.bf16.msra.mxu1 %v5040_v28 }
 0x3df   : > { %v4739_v8 = vpop.f32.mrb[10].mxu0  ;;  %6227 = vmatprep.subr.bf16.mxu1 %v8458_v2 }
 0x3e0   : > { %v7453_v32 = vadd.f32 %v4739_v8, %v10486_v34  ;;  %v4741_v57 = vpop.f32.mrb[11].mxu0  ;;  %v4979_v4 = vmax.f32 %v7452_v27, 0.0  ;;  %v8145_v34 = vld [vmem:[%s11062_s3 + $0x3ec] ss:$16 sps:$4 sm:$0xff]  }
 0x3e2   : > { %v4980_v36 = vmax.f32 %v7453_v32, 0.0  ;;  %4951 = vmatmul.mubr.bf16.gmra.mrb[116].mxu0 %v8141_v11 }
 0x3e3   : > { %4958 = vmatprep.mubr.bf16.mxu0 %v8142_v60 }
 0x3e4   : > { %v5041_v47 = vpack.c.bf16 %v4980_v36, %v4979_v4 }
 0x3e5   : > { %v4744_v9 = vpop.f32.mrb[12].mxu0 }
 0x3e6   : > { %v7454_v3 = vadd.f32 %v4744_v9, %v9736_v21  ;;  %v4746_v6 = vpop.f32.mrb[13].mxu0  ;;  %6228 = vmatpush1.bf16.msra.mxu1 %v5041_v47 }
 0x3e7   : > { %v4747_v20 = vpop.f32.mrb[14].mxu0  ;;  %6229 = vmatprep.subr.bf16.mxu1 %v8458_v2 }
 0x3e8   : > { %v7455_v50 = vadd.f32 %v4747_v20, %v10497_v55  ;;  %v4749_v24 = vpop.f32.mrb[15].mxu0  ;;  %v4981_v35 = vmax.f32 %v7454_v3, 0.0 }
 0x3ea   : > { %v4982_v31 = vmax.f32 %v7455_v50, 0.0  ;;  %4959 = vmatmul.mubr.bf16.gmra.mrb[120].mxu0 %v8144_v48 }
 0x3eb   : > { %4966 = vmatprep.mubr.bf16.mxu0 %v8145_v34 }
 0x3ec   : > { %v5042_v21 = vpack.c.bf16 %v4982_v31, %v4981_v35 }
 0x3ed   : > { %v4752_v42 = vpop.f32.mrb[16].mxu0 }
 0x3ee   : > { %v7456_v15 = vadd.f32 %v4752_v42, %v9764_v45  ;;  %v4754_v7 = vpop.f32.mrb[17].mxu0  ;;  %6230 = vmatpush1.bf16.msra.mxu1 %v5042_v21 }
 0x3ef   : > { %v4755_v40 = vpop.f32.mrb[18].mxu0  ;;  %6231 = vmatprep.subr.bf16.mxu1 %v8458_v2 }
 0x3f0   : > { %v7457_v55 = vadd.f32 %v4755_v40, %v10508_v5  ;;  %v4757_v18 = vpop.f32.mrb[19].mxu0  ;;  %v4983_v53 = vmax.f32 %v7456_v15, 0.0 }
 0x3f2   : > { %v4984_v61 = vmax.f32 %v7457_v55, 0.0  ;;  %4967 = vmatmul.mubr.bf16.gmra.mrb[124].mxu0 %v8147_v46 }
 0x3f4   : > { %v5043_v23 = vpack.c.bf16 %v4984_v61, %v4983_v53 }
 0x3f5   : > { %v4760_v44 = vpop.f32.mrb[20].mxu0 }
 0x3f6   : > { %v7458_v56 = vadd.f32 %v4760_v44, %v9785_v63  ;;  %v4762_v45 = vpop.f32.mrb[21].mxu0  ;;  %6232 = vmatpush1.bf16.msra.mxu1 %v5043_v23 }
 0x3f7   : > { %v4763_v39 = vpop.f32.mrb[22].mxu0  ;;  %6233 = vmatprep.subr.bf16.mxu1 %v8458_v2 }
 0x3f8   : > { %v7459_v58 = vadd.f32 %v4763_v39, %v10522_v22  ;;  %v4765_v54 = vpop.f32.mrb[23].mxu0  ;;  %v4985_v28 = vmax.f32 %v7458_v56, 0.0 }
 0x3fa   : > { %v4986_v19 = vmax.f32 %v7459_v58, 0.0 }
 0x3fc   : > { %v5044_v27 = vpack.c.bf16 %v4986_v19, %v4985_v28 }
 0x3fd   : > { %v4768_v5 = vpop.f32.mrb[24].mxu0 }
 0x3fe   : > { %v7460_v62 = vadd.f32 %v4768_v5, %v9801_v25  ;;  %v4770_v11 = vpop.f32.mrb[25].mxu0  ;;  %6234 = vmatpush1.bf16.msra.mxu1 %v5044_v27 }
 0x3ff   : > { %v4771_v8 = vpop.f32.mrb[26].mxu0  ;;  %6235 = vmatprep.subr.bf16.mxu1 %v8458_v2 }
 0x400   : > { %v7461_v63 = vadd.f32 %v4771_v8, %v10530_v17  ;;  %v4773_v60 = vpop.f32.mrb[27].mxu0  ;;  %v4987_v32 = vmax.f32 %v7460_v62, 0.0 }
 0x402   : > { %v4988_v57 = vmax.f32 %v7461_v63, 0.0 }
 0x404   : > { %v5045_v4 = vpack.c.bf16 %v4988_v57, %v4987_v32 }
 0x405   : > { %v4776_v36 = vpop.f32.mrb[28].mxu0 }
 0x406   : > { %v7462_v22 = vadd.f32 %v4776_v36, %v9825_v29  ;;  %v4778_v47 = vpop.f32.mrb[29].mxu0  ;;  %6236 = vmatpush1.bf16.msra.mxu1 %v5045_v4 }
 0x407   : > { %v4779_v9 = vpop.f32.mrb[30].mxu0  ;;  %6237 = vmatprep.subr.bf16.mxu1 %v8458_v2 }
 0x408   : > { %v7463_v25 = vadd.f32 %v4779_v9, %v10541_v0  ;;  %v4781_v3 = vpop.f32.mrb[31].mxu0  ;;  %v4989_v6 = vmax.f32 %v7462_v22, 0.0 }
 0x40a   : > { %v4990_v48 = vmax.f32 %v7463_v25, 0.0 }
 0x40c   : > { %v5046_v20 = vpack.c.bf16 %v4990_v48, %v4989_v6 }
 0x40d   : > { %v4784_v34 = vpop.f32.mrb[32].mxu0 }
 0x40e   : > { %v7464_v17 = vadd.f32 %v4784_v34, %v9852_v10  ;;  %v4786_v50 = vpop.f32.mrb[33].mxu0  ;;  %6238 = vmatpush1.bf16.msra.mxu1 %v5046_v20 }
 0x40f   : > { %v4787_v24 = vpop.f32.mrb[34].mxu0  ;;  %6239 = vmatprep.subr.bf16.mxu1 %v8458_v2 }
 0x410   : > { %v7465_v29 = vadd.f32 %v4787_v24, %v10552_v26  ;;  %v4789_v35 = vpop.f32.mrb[35].mxu0  ;;  %v4991_v31 = vmax.f32 %v7464_v17, 0.0 }
 0x412   : > { %v4992_v21 = vmax.f32 %v7465_v29, 0.0 }
 0x414   : > { %v5047_v42 = vpack.c.bf16 %v4992_v21, %v4991_v31 }
 0x415   : > { %v4792_v15 = vpop.f32.mrb[36].mxu0 }
 0x416   : > { %v7466_v0 = vadd.f32 %v4792_v15, %v9863_v13  ;;  %v4794_v7 = vpop.f32.mrb[37].mxu0  ;;  %6240 = vmatpush1.bf16.msra.mxu1 %v5047_v42  ;;  %v3403_v42 = vpop.permute.xlu1 %3402 }
 0x417   : > { %v4795_v46 = vpop.f32.mrb[38].mxu0  ;;  %6241 = vmatprep.subr.bf16.mxu1 %v8458_v2 }
 0x418   : > { %v7467_v10 = vadd.f32 %v4795_v46, %v10566_v41  ;;  %v4797_v40 = vpop.f32.mrb[39].mxu0  ;;  %v4993_v55 = vmax.f32 %v7466_v0, 0.0 }
 0x419   : > { %v3408_v40 = vpop.permute.xlu0 %3407 }
 0x41a   : > { %v4994_v18 = vmax.f32 %v7467_v10, 0.0 }
 0x41c   : > { %v5048_v53 = vpack.c.bf16 %v4994_v18, %v4993_v55  ;;  %v8148_v55 = vld [vmem:[#allocation3] ss:$16 sps:$4 sm:$0xff]  }
 0x41d   : > { %v4800_v61 = vpop.f32.mrb[40].mxu0 }
 0x41e   : > { %v7468_v26 = vadd.f32 %v4800_v61, %v9890_v38  ;;  %v4802_v23 = vpop.f32.mrb[41].mxu0  ;;  %6242 = vmatpush1.bf16.msra.mxu1 %v5048_v53  ;;  %v8151_v61 = vld [vmem:[#allocation3 + $0x24] ss:$16 sps:$4 sm:$0xff]  }
 0x41f   : > { %v4803_v44 = vpop.f32.mrb[42].mxu0  ;;  %6243 = vmatprep.subr.bf16.mxu1 %v8458_v2 }
 0x420   : > { %v7469_v13 = vadd.f32 %v4803_v44, %v10574_v14  ;;  %v4805_v56 = vpop.f32.mrb[43].mxu0  ;;  %v4995_v45 = vmax.f32 %v7468_v26, 0.0  ;;  %v3413_v26 = vpop.permute.xlu1 %3412 }
 0x422   : > { %v4996_v39 = vmax.f32 %v7469_v13, 0.0 }
 0x424   : > { %v5049_v58 = vpack.c.bf16 %v4996_v39, %v4995_v45  ;;  %v3418_v39 = vpop.permute.xlu0 %3417 }
 0x425   : > { %v4808_v54 = vpop.f32.mrb[44].mxu0 }
 0x426   : > { %v7470_v41 = vadd.f32 %v4808_v54, %v9917_v33  ;;  %v4810_v28 = vpop.f32.mrb[45].mxu0  ;;  %6244 = vmatpush1.bf16.msra.mxu1 %v5049_v58  ;;  %v8153_v54 = vld [vmem:[#allocation3 + $0x20] ss:$16 sps:$4 sm:$0xff]  }
 0x427   : > { %v4811_v19 = vpop.f32.mrb[46].mxu0  ;;  %6245 = vmatprep.subr.bf16.mxu1 %v8458_v2 }
 0x428   : > { %v7471_v38 = vadd.f32 %v4811_v19, %v10585_v16  ;;  %v4813_v27 = vpop.f32.mrb[47].mxu0  ;;  %v4997_v5 = vmax.f32 %v7470_v41, 0.0  ;;  %v8154_v19 = vld [vmem:[#allocation3 + $0x44] ss:$16 sps:$4 sm:$0xff]  }
 0x42a   : > { %v4998_v62 = vmax.f32 %v7471_v38, 0.0  ;;  %v3423_v38 = vpop.permute.xlu1 %3422 }
 0x42c   : > { %v5050_v11 = vpack.c.bf16 %v4998_v62, %v4997_v5 }
 0x42d   : > { %v4816_v8 = vpop.f32.mrb[48].mxu0 }
 0x42e   : > { %v7472_v14 = vadd.f32 %v4816_v8, %v9931_v51  ;;  %v4818_v63 = vpop.f32.mrb[49].mxu0  ;;  %6246 = vmatpush1.bf16.msra.mxu1 %v5050_v11 }
 0x42f   : > { %v4819_v60 = vpop.f32.mrb[50].mxu0  ;;  %6247 = vmatprep.subr.bf16.mxu1 %v8458_v2  ;;  %v3428_v63 = vpop.permute.xlu0 %3427 }
 0x430   : > { %v7473_v33 = vadd.f32 %v4819_v60, %v10596_v49  ;;  %v4821_v32 = vpop.f32.mrb[51].mxu0  ;;  %v4999_v57 = vmax.f32 %v7472_v14, 0.0 }
 0x432   : > { %v5000_v4 = vmax.f32 %v7473_v33, 0.0  ;;  %v8156_v33 = vld [vmem:[#allocation3 + $0x40] ss:$16 sps:$4 sm:$0xff]  }
 0x434   : > { %v5051_v36 = vpack.c.bf16 %v5000_v4, %v4999_v57  ;;  %v8157_v4 = vld [vmem:[#allocation3 + $0x64] ss:$16 sps:$4 sm:$0xff]  }
 0x435   : > { %v4824_v22 = vpop.f32.mrb[52].mxu0 }
 0x436   : > { %v7474_v16 = vadd.f32 %v4824_v22, %v9952_v52  ;;  %v4826_v47 = vpop.f32.mrb[53].mxu0  ;;  %6248 = vmatpush1.bf16.msra.mxu1 %v5051_v36  ;;  %v3433_v36 = vpop.permute.xlu1 %3432 }
 0x437   : > { %v4827_v9 = vpop.f32.mrb[54].mxu0  ;;  %6249 = vmatprep.subr.bf16.mxu1 %v8458_v2 }
 0x438   : > { %v7475_v51 = vadd.f32 %v4827_v9, %v10610_v59  ;;  %v4829_v25 = vpop.f32.mrb[55].mxu0  ;;  %v5001_v3 = vmax.f32 %v7474_v16, 0.0 }
 0x43a   : > { %v5002_v6 = vmax.f32 %v7475_v51, 0.0 }
 0x43c   : > { %v5052_v48 = vpack.c.bf16 %v5002_v6, %v5001_v3  ;;  %v3438_v3 = vpop.permute.xlu0 %3437 }
 0x43d   : > { %v4832_v20 = vpop.f32.mrb[56].mxu0 }
 0x43e   : > { %v7476_v49 = vadd.f32 %v4832_v20, %v9982_v12  ;;  %v4834_v34 = vpop.f32.mrb[57].mxu0  ;;  %6250 = vmatpush1.bf16.msra.mxu1 %v5052_v48  ;;  %v8159_v48 = vld [vmem:[#allocation3 + $0x60] ss:$16 sps:$4 sm:$0xff]  }
 0x43f   : > { %v4835_v17 = vpop.f32.mrb[58].mxu0  ;;  %6251 = vmatprep.subr.bf16.mxu1 %v8458_v2  ;;  %v8160_v34 = vld [vmem:[#allocation3 + $0x84] ss:$16 sps:$4 sm:$0xff]  }
 0x440   : > { %v7477_v52 = vadd.f32 %v4835_v17, %v10618_v1  ;;  %v4837_v50 = vpop.f32.mrb[59].mxu0  ;;  %v5003_v24 = vmax.f32 %v7476_v49, 0.0  ;;  %v3443_v17 = vpop.permute.xlu1 %3442 }
 0x442   : > { %v5004_v29 = vmax.f32 %v7477_v52, 0.0 }
 0x444   : > { %v5053_v35 = vpack.c.bf16 %v5004_v29, %v5003_v24 }
 0x445   : > { %v4840_v31 = vpop.f32.mrb[60].mxu0 }
 0x446   : > { %v7478_v59 = vadd.f32 %v4840_v31, %v9993_v30  ;;  %v4842_v21 = vpop.f32.mrb[61].mxu0  ;;  %6252 = vmatpush1.bf16.msra.mxu1 %v5053_v35 }
 0x447   : > { %v4843_v15 = vpop.f32.mrb[62].mxu0  ;;  %6253 = vmatprep.subr.bf16.mxu1 %v8458_v2 }
 0x448   : > { %v7479_v12 = vadd.f32 %v4843_v15, %v3403_v42  ;;  %v4845_v0 = vpop.f32.mrb[63].mxu0  ;;  %v5005_v7 = vmax.f32 %v7478_v59, 0.0  ;;  %v3448_v59 = vpop.permute.xlu0 %3447  ;;  %v8162_v42 = vld [vmem:[#allocation3 + $0x80] ss:$16 sps:$4 sm:$0xff]  }
 0x449   : > { %v8163_v0 = vld [vmem:[#allocation3 + $0xa4] ss:$16 sps:$4 sm:$0xff]  }
 0x44a   : > { %v5006_v46 = vmax.f32 %v7479_v12, 0.0 }
 0x44c   : > { %v5054_v10 = vpack.c.bf16 %v5006_v46, %v5005_v7  ;;  %v3453_v7 = vpop.permute.xlu1 %3452 }
 0x44d   : > { %v4848_v1 = vpop.f32.mrb[64].mxu0 }
 0x44e   : > { %v7480_v18 = vadd.f32 %v4848_v1, %v3408_v40  ;;  %v4850_v53 = vpop.f32.mrb[65].mxu0  ;;  %6254 = vmatpush1.bf16.msra.mxu1 %v5054_v10 }
 0x44f   : > { %v4851_v30 = vpop.f32.mrb[66].mxu0  ;;  %6512 = vmatprep.subr.bf16.mxu1 %v8458_v2  ;;  %v3458_v53 = vpop.permute.xlu0 %3457 }
 0x450   : > { %v7481_v23 = vadd.f32 %v4851_v30, %v3413_v26  ;;  %v4853_v44 = vpop.f32.mrb[67].mxu0  ;;  %v5007_v13 = vmax.f32 %v7480_v18, 0.0  ;;  %v8165_v26 = vld [vmem:[#allocation3 + $0xa0] ss:$16 sps:$4 sm:$0xff]  }
 0x451   : > { %6256 = vmatmul.mubr.bf16.vlgmr.msra.gmra.mrb[0].mxu1 %v8148_v55  ;;  %v8166_v44 = vld [vmem:[#allocation3 + $0xc4] ss:$16 sps:$4 sm:$0xff]  }
 0x452   : > { %v5008_v56 = vmax.f32 %v7481_v23, 0.0  ;;  %6263 = vmatprep.mubr.bf16.mxu1 %v8151_v61 }
 0x454   : > { %v5055_v45 = vpack.c.bf16 %v5008_v56, %v5007_v13  ;;  %v3463_v13 = vpop.permute.xlu1 %3462 }
 0x455   : > { %v4856_v58 = vpop.f32.mrb[68].mxu0 }
 0x456   : > { %v7482_v41 = vadd.f32 %v4856_v58, %v3418_v39  ;;  %v4858_v28 = vpop.f32.mrb[69].mxu0  ;;  %6513 = vmatpush1.bf16.msra.mxu1 %v5055_v45 }
 0x457   : > { %v4859_v27 = vpop.f32.mrb[70].mxu0  ;;  %6514 = vmatprep.subr.bf16.mxu1 %v8458_v2  ;;  %v3468_v28 = vpop.permute.xlu0 %3467 }
 0x458   : > { %v7483_v5 = vadd.f32 %v4859_v27, %v3423_v38  ;;  %v4861_v62 = vpop.f32.mrb[71].mxu0  ;;  %v5009_v11 = vmax.f32 %v7482_v41, 0.0  ;;  %v8168_v38 = vld [vmem:[#allocation3 + $0xc0] ss:$16 sps:$4 sm:$0xff]  }
 0x459   : > { %6264 = vmatmul.mubr.bf16.gmra.mrb[4].mxu1 %v8153_v54  ;;  %v8169_v62 = vld [vmem:[#allocation3 + $0xe4] ss:$16 sps:$4 sm:$0xff]  }
 0x45a   : > { %v5010_v8 = vmax.f32 %v7483_v5, 0.0  ;;  %6271 = vmatprep.mubr.bf16.mxu1 %v8154_v19 }
 0x45c   : > { %v5056_v14 = vpack.c.bf16 %v5010_v8, %v5009_v11  ;;  %v3473_v11 = vpop.permute.xlu1 %3472 }
 0x45d   : > { %v4864_v60 = vpop.f32.mrb[72].mxu0 }
 0x45e   : > { %v7484_v32 = vadd.f32 %v4864_v60, %v3428_v63  ;;  %v4866_v57 = vpop.f32.mrb[73].mxu0  ;;  %6515 = vmatpush1.bf16.msra.mxu1 %v5056_v14 }
 0x45f   : > { %v4867_v22 = vpop.f32.mrb[74].mxu0  ;;  %6516 = vmatprep.subr.bf16.mxu1 %v8458_v2  ;;  %v3478_v57 = vpop.permute.xlu0 %3477 }
 0x460   : > { %v7485_v16 = vadd.f32 %v4867_v22, %v3433_v36  ;;  %v4869_v47 = vpop.f32.mrb[75].mxu0  ;;  %v5011_v9 = vmax.f32 %v7484_v32, 0.0  ;;  %v8171_v36 = vld [vmem:[#allocation3 + $0xe0] ss:$16 sps:$4 sm:$0xff]  }
 0x461   : > { %6272 = vmatmul.mubr.bf16.gmra.mrb[8].mxu1 %v8156_v33  ;;  %v8172_v47 = vld [vmem:[#allocation3 + $0x104] ss:$16 sps:$4 sm:$0xff]  }
 0x462   : > { %v5012_v51 = vmax.f32 %v7485_v16, 0.0  ;;  %6279 = vmatprep.mubr.bf16.mxu1 %v8157_v4 }
 0x464   : > { %v5057_v25 = vpack.c.bf16 %v5012_v51, %v5011_v9  ;;  %v3483_v9 = vpop.permute.xlu1 %3482 }
 0x465   : > { %v4872_v6 = vpop.f32.mrb[76].mxu0 }
 0x466   : > { %v7486_v20 = vadd.f32 %v4872_v6, %v3438_v3  ;;  %v4874_v49 = vpop.f32.mrb[77].mxu0  ;;  %6517 = vmatpush1.bf16.msra.mxu1 %v5057_v25 }
 0x467   : > { %v4875_v52 = vpop.f32.mrb[78].mxu0  ;;  %6518 = vmatprep.subr.bf16.mxu1 %v8458_v2  ;;  %v3488_v49 = vpop.permute.xlu0 %3487 }
 0x468   : > { %v7487_v50 = vadd.f32 %v4875_v52, %v3443_v17  ;;  %v4877_v24 = vpop.f32.mrb[79].mxu0  ;;  %v5013_v29 = vmax.f32 %v7486_v20, 0.0  ;;  %v8174_v17 = vld [vmem:[#allocation3 + $0x100] ss:$16 sps:$4 sm:$0xff]  }
 0x469   : > { %6280 = vmatmul.mubr.bf16.gmra.mrb[12].mxu1 %v8159_v48  ;;  %v8175_v24 = vld [vmem:[#allocation3 + $0x124] ss:$16 sps:$4 sm:$0xff]  }
 0x46a   : > { %v5014_v35 = vmax.f32 %v7487_v50, 0.0  ;;  %6287 = vmatprep.mubr.bf16.mxu1 %v8160_v34 }
 0x46c   : > { %v5058_v31 = vpack.c.bf16 %v5014_v35, %v5013_v29  ;;  %v3493_v29 = vpop.permute.xlu1 %3492 }
 0x46d   : > { %v4880_v21 = vpop.f32.mrb[80].mxu0 }
 0x46e   : > { %v7488_v15 = vadd.f32 %v4880_v21, %v3448_v59  ;;  %v4882_v12 = vpop.f32.mrb[81].mxu0  ;;  %6519 = vmatpush1.bf16.msra.mxu1 %v5058_v31 }
 0x46f   : > { %v4883_v46 = vpop.f32.mrb[82].mxu0  ;;  %6520 = vmatprep.subr.bf16.mxu1 %v8458_v2  ;;  %v3498_v12 = vpop.permute.xlu0 %3497 }
 0x470   : > { %v7489_v10 = vadd.f32 %v4883_v46, %v3453_v7  ;;  %v4885_v40 = vpop.f32.mrb[83].mxu0  ;;  %v5015_v1 = vmax.f32 %v7488_v15, 0.0  ;;  %v8177_v7 = vld [vmem:[#allocation3 + $0x120] ss:$16 sps:$4 sm:$0xff]  }
 0x471   : > { %6288 = vmatmul.mubr.bf16.gmra.mrb[16].mxu1 %v8162_v42  ;;  %v8178_v40 = vld [vmem:[#allocation3 + $0x144] ss:$16 sps:$4 sm:$0xff]  }
 0x472   : > { %v5016_v55 = vmax.f32 %v7489_v10, 0.0  ;;  %6295 = vmatprep.mubr.bf16.mxu1 %v8163_v0 }
 0x474   : > { %v5059_v18 = vpack.c.bf16 %v5016_v55, %v5015_v1  ;;  %v3503_v1 = vpop.permute.xlu1 %3502 }
 0x475   : > { %v4888_v61 = vpop.f32.mrb[84].mxu0 }
 0x476   : > { %v7490_v30 = vadd.f32 %v4888_v61, %v3458_v53  ;;  %v4890_v23 = vpop.f32.mrb[85].mxu0  ;;  %6521 = vmatpush1.bf16.msra.mxu1 %v5059_v18 }
 0x477   : > { %v4891_v56 = vpop.f32.mrb[86].mxu0  ;;  %6522 = vmatprep.subr.bf16.mxu1 %v8458_v2  ;;  %v3508_v23 = vpop.permute.xlu0 %3507 }
 0x478   : > { %v7491_v45 = vadd.f32 %v4891_v56, %v3463_v13  ;;  %v4893_v39 = vpop.f32.mrb[87].mxu0  ;;  %v5017_v58 = vmax.f32 %v7490_v30, 0.0  ;;  %v8180_v13 = vld [vmem:[#allocation3 + $0x140] ss:$16 sps:$4 sm:$0xff]  }
 0x479   : > { %6296 = vmatmul.mubr.bf16.gmra.mrb[20].mxu1 %v8165_v26  ;;  %v8181_v39 = vld [vmem:[#allocation3 + $0x164] ss:$16 sps:$4 sm:$0xff]  }
 0x47a   : > { %v5018_v54 = vmax.f32 %v7491_v45, 0.0  ;;  %6303 = vmatprep.mubr.bf16.mxu1 %v8166_v44 }
 0x47c   : > { %v5060_v41 = vpack.c.bf16 %v5018_v54, %v5017_v58  ;;  %v3513_v58 = vpop.permute.xlu1 %3512 }
 0x47d   : > { %v4896_v19 = vpop.f32.mrb[88].mxu0 }
 0x47e   : > { %v7492_v27 = vadd.f32 %v4896_v19, %v3468_v28  ;;  %v4898_v5 = vpop.f32.mrb[89].mxu0  ;;  %6523 = vmatpush1.bf16.msra.mxu1 %v5060_v41 }
 0x47f   : > { %v4899_v8 = vpop.f32.mrb[90].mxu0  ;;  %6524 = vmatprep.subr.bf16.mxu1 %v8458_v2  ;;  %v3518_v5 = vpop.permute.xlu0 %3517 }
 0x480   : > { %v7493_v14 = vadd.f32 %v4899_v8, %v3473_v11  ;;  %v4901_v63 = vpop.f32.mrb[91].mxu0  ;;  %v5019_v60 = vmax.f32 %v7492_v27, 0.0  ;;  %v8183_v11 = vld [vmem:[#allocation3 + $0x160] ss:$16 sps:$4 sm:$0xff]  }
 0x481   : > { %6304 = vmatmul.mubr.bf16.gmra.mrb[24].mxu1 %v8168_v38  ;;  %v8184_v63 = vld [vmem:[#allocation3 + $0x184] ss:$16 sps:$4 sm:$0xff]  }
 0x482   : > { %v5020_v33 = vmax.f32 %v7493_v14, 0.0  ;;  %6311 = vmatprep.mubr.bf16.mxu1 %v8169_v62 }
 0x484   : > { %v5061_v32 = vpack.c.bf16 %v5020_v33, %v5019_v60  ;;  %v3523_v60 = vpop.permute.xlu1 %3522 }
 0x485   : > { %v4904_v4 = vpop.f32.mrb[92].mxu0 }
 0x486   : > { %v7494_v22 = vadd.f32 %v4904_v4, %v3478_v57  ;;  %v4906_v16 = vpop.f32.mrb[93].mxu0  ;;  %6525 = vmatpush1.bf16.msra.mxu1 %v5061_v32 }
 0x487   : > { %v4907_v51 = vpop.f32.mrb[94].mxu0  ;;  %6526 = vmatprep.subr.bf16.mxu1 %v8458_v2  ;;  %v3528_v16 = vpop.permute.xlu0 %3527 }
 0x488   : > { %v7495_v25 = vadd.f32 %v4907_v51, %v3483_v9  ;;  %v4909_v3 = vpop.f32.mrb[95].mxu0  ;;  %v5021_v6 = vmax.f32 %v7494_v22, 0.0  ;;  %v8186_v9 = vld [vmem:[#allocation3 + $0x180] ss:$16 sps:$4 sm:$0xff]  }
 0x489   : > { %6312 = vmatmul.mubr.bf16.gmra.mrb[28].mxu1 %v8171_v36  ;;  %v8187_v3 = vld [vmem:[#allocation3 + $0x1a4] ss:$16 sps:$4 sm:$0xff]  }
 0x48a   : > { %v5022_v48 = vmax.f32 %v7495_v25, 0.0  ;;  %6319 = vmatprep.mubr.bf16.mxu1 %v8172_v47 }
 0x48c   : > { %v5062_v20 = vpack.c.bf16 %v5022_v48, %v5021_v6  ;;  %v3533_v6 = vpop.permute.xlu1 %3532 }
 0x48d   : > { %v4912_v34 = vpop.f32.mrb[96].mxu0 }
 0x48e   : > { %v7496_v52 = vadd.f32 %v4912_v34, %v3488_v49  ;;  %v4914_v50 = vpop.f32.mrb[97].mxu0  ;;  %6527 = vmatpush1.bf16.msra.mxu1 %v5062_v20 }
 0x48f   : > { %v4915_v35 = vpop.f32.mrb[98].mxu0  ;;  %6528 = vmatprep.subr.bf16.mxu1 %v8458_v2  ;;  %v3538_v50 = vpop.permute.xlu0 %3537 }
 0x490   : > { %v7497_v31 = vadd.f32 %v4915_v35, %v3493_v29  ;;  %v4917_v59 = vpop.f32.mrb[99].mxu0  ;;  %v5023_v21 = vmax.f32 %v7496_v52, 0.0  ;;  %v8189_v29 = vld [vmem:[#allocation3 + $0x1a0] ss:$16 sps:$4 sm:$0xff]  }
 0x491   : > { %6320 = vmatmul.mubr.bf16.gmra.mrb[32].mxu1 %v8174_v17  ;;  %v8190_v59 = vld [vmem:[#allocation3 + $0x1c4] ss:$16 sps:$4 sm:$0xff]  }
 0x492   : > { %v5024_v42 = vmax.f32 %v7497_v31, 0.0  ;;  %6327 = vmatprep.mubr.bf16.mxu1 %v8175_v24 }
 0x494   : > { %v5063_v15 = vpack.c.bf16 %v5024_v42, %v5023_v21  ;;  %v3543_v21 = vpop.permute.xlu1 %3542 }
 0x495   : > { %v4920_v0 = vpop.f32.mrb[100].mxu0 }
 0x496   : > { %v7498_v46 = vadd.f32 %v4920_v0, %v3498_v12  ;;  %v4922_v10 = vpop.f32.mrb[101].mxu0  ;;  %6529 = vmatpush1.bf16.msra.mxu1 %v5063_v15 }
 0x497   : > { %v4923_v55 = vpop.f32.mrb[102].mxu0  ;;  %6530 = vmatprep.subr.bf16.mxu1 %v8458_v2  ;;  %v3548_v10 = vpop.permute.xlu0 %3547 }
 0x498   : > { %v7499_v18 = vadd.f32 %v4923_v55, %v3503_v1  ;;  %v4925_v53 = vpop.f32.mrb[103].mxu0  ;;  %v5025_v61 = vmax.f32 %v7498_v46, 0.0  ;;  %v8192_v1 = vld [vmem:[#allocation3 + $0x1c0] ss:$16 sps:$4 sm:$0xff]  }
 0x499   : > { %6328 = vmatmul.mubr.bf16.gmra.mrb[36].mxu1 %v8177_v7  ;;  %v8193_v53 = vld [vmem:[#allocation3 + $0x1e4] ss:$16 sps:$4 sm:$0xff]  }
 0x49a   : > { %v5026_v26 = vmax.f32 %v7499_v18, 0.0  ;;  %6335 = vmatprep.mubr.bf16.mxu1 %v8178_v40 }
 0x49c   : > { %v5064_v30 = vpack.c.bf16 %v5026_v26, %v5025_v61  ;;  %v3553_v61 = vpop.permute.xlu1 %3552 }
 0x49d   : > { %v4928_v44 = vpop.f32.mrb[104].mxu0 }
 0x49e   : > { %v7500_v56 = vadd.f32 %v4928_v44, %v3508_v23  ;;  %v4930_v45 = vpop.f32.mrb[105].mxu0  ;;  %6531 = vmatpush1.bf16.msra.mxu1 %v5064_v30 }
 0x49f   : > { %v4931_v54 = vpop.f32.mrb[106].mxu0  ;;  %6532 = vmatprep.subr.bf16.mxu1 %v8458_v2  ;;  %v3558_v45 = vpop.permute.xlu0 %3557 }
 0x4a0   : > { %v7501_v41 = vadd.f32 %v4931_v54, %v3513_v58  ;;  %v4933_v28 = vpop.f32.mrb[107].mxu0  ;;  %v5027_v19 = vmax.f32 %v7500_v56, 0.0  ;;  %v8195_v58 = vld [vmem:[#allocation3 + $0x1e0] ss:$16 sps:$4 sm:$0xff]  }
 0x4a1   : > { %6336 = vmatmul.mubr.bf16.gmra.mrb[40].mxu1 %v8180_v13  ;;  %v8196_v28 = vld [vmem:[#allocation3 + $0x204] ss:$16 sps:$4 sm:$0xff]  }
 0x4a2   : > { %v5028_v38 = vmax.f32 %v7501_v41, 0.0  ;;  %6343 = vmatprep.mubr.bf16.mxu1 %v8181_v39 }
 0x4a4   : > { %v5065_v27 = vpack.c.bf16 %v5028_v38, %v5027_v19  ;;  %v3563_v19 = vpop.permute.xlu1 %3562 }
 0x4a5   : > { %v4936_v62 = vpop.f32.mrb[108].mxu0 }
 0x4a6   : > { %v7502_v8 = vadd.f32 %v4936_v62, %v3518_v5  ;;  %v4938_v14 = vpop.f32.mrb[109].mxu0  ;;  %6533 = vmatpush1.bf16.msra.mxu1 %v5065_v27 }
 0x4a7   : > { %v4939_v33 = vpop.f32.mrb[110].mxu0  ;;  %6534 = vmatprep.subr.bf16.mxu1 %v8458_v2  ;;  %v8198_v14 = vld [vmem:[#allocation3 + $0x200] ss:$16 sps:$4 sm:$0xff]  }
 0x4a8   : > { %v7503_v32 = vadd.f32 %v4939_v33, %v3523_v60  ;;  %v4941_v57 = vpop.f32.mrb[111].mxu0  ;;  %v5029_v4 = vmax.f32 %v7502_v8, 0.0  ;;  %v8201_v60 = vld [vmem:[#allocation3 + $0x220] ss:$16 sps:$4 sm:$0xff]   ;;  %v8202_v33 = vld [vmem:[#allocation3 + $0x244] ss:$16 sps:$4 sm:$0xff]  }
 0x4a9   : > { %6344 = vmatmul.mubr.bf16.gmra.mrb[44].mxu1 %v8183_v11  ;;  %v8205_v57 = vld [vmem:[#allocation3 + $0x264] ss:$16 sps:$4 sm:$0xff]  }
 0x4aa   : > { %v5030_v36 = vmax.f32 %v7503_v32, 0.0  ;;  %6351 = vmatprep.mubr.bf16.mxu1 %v8184_v63  ;;  %v8199_v63 = vld [vmem:[#allocation3 + $0x224] ss:$16 sps:$4 sm:$0xff]   ;;  %v8204_v32 = vld [vmem:[#allocation3 + $0x240] ss:$16 sps:$4 sm:$0xff]  }
 0x4ac   : > { %v5066_v22 = vpack.c.bf16 %v5030_v36, %v5029_v4  ;;  %v8208_v4 = vld [vmem:[#allocation3 + $0x284] ss:$16 sps:$4 sm:$0xff]   ;;  %v8210_v36 = vld [vmem:[#allocation3 + $0x280] ss:$16 sps:$4 sm:$0xff]  }
 0x4ad   : > { %v4944_v47 = vpop.f32.mrb[112].mxu0 }
 0x4ae   : > { %v7504_v51 = vadd.f32 %v4944_v47, %v3528_v16  ;;  %v4946_v25 = vpop.f32.mrb[113].mxu0  ;;  %6535 = vmatpush1.bf16.msra.mxu1 %v5066_v22  ;;  %v8211_v22 = vld [vmem:[#allocation3 + $0x2a4] ss:$16 sps:$4 sm:$0xff]   ;;  %v8213_v16 = vld [vmem:[#allocation3 + $0x2a0] ss:$16 sps:$4 sm:$0xff]  }
 0x4af   : > { %v4947_v48 = vpop.f32.mrb[114].mxu0  ;;  %6536 = vmatprep.subr.bf16.mxu1 %v8458_v2  ;;  %v8214_v47 = vld [vmem:[#allocation3 + $0x2c4] ss:$16 sps:$4 sm:$0xff]   ;;  %v8219_v25 = vld [vmem:[#allocation3 + $0x2e0] ss:$16 sps:$4 sm:$0xff]  }
 0x4b0   : > { %v7505_v20 = vadd.f32 %v4947_v48, %v3533_v6  ;;  %v4949_v49 = vpop.f32.mrb[115].mxu0  ;;  %v5031_v34 = vmax.f32 %v7504_v51, 0.0  ;;  %v8217_v51 = vld [vmem:[#allocation3 + $0x2e4] ss:$16 sps:$4 sm:$0xff]   ;;  %v8222_v6 = vld [vmem:[#allocation3 + $0x300] ss:$16 sps:$4 sm:$0xff]  }
 0x4b1   : > { %6352 = vmatmul.mubr.bf16.gmra.mrb[48].mxu1 %v8186_v9  ;;  %v8216_v9 = vld [vmem:[#allocation3 + $0x2c0] ss:$16 sps:$4 sm:$0xff]   ;;  %v8223_v48 = vld [vmem:[#allocation3 + $0x324] ss:$16 sps:$4 sm:$0xff]  }
 0x4b2   : > { %v5032_v17 = vmax.f32 %v7505_v20, 0.0  ;;  %6359 = vmatprep.mubr.bf16.mxu1 %v8187_v3  ;;  %v8220_v3 = vld [vmem:[#allocation3 + $0x304] ss:$16 sps:$4 sm:$0xff]   ;;  %v8225_v20 = vld [vmem:[#allocation3 + $0x320] ss:$16 sps:$4 sm:$0xff]  }
 0x4b3   : > { %v8226_v49 = vld [vmem:[#allocation3 + $0x344] ss:$16 sps:$4 sm:$0xff]  }
 0x4b4   : > { %v5067_v52 = vpack.c.bf16 %v5032_v17, %v5031_v34  ;;  %v8228_v34 = vld [vmem:[#allocation3 + $0x340] ss:$16 sps:$4 sm:$0xff]   ;;  %v8229_v17 = vld [vmem:[#allocation3 + $0x364] ss:$16 sps:$4 sm:$0xff]  }
 0x4b5   : > { %v4952_v24 = vpop.f32.mrb[116].mxu0 }
 0x4b6   : > { %v7506_v35 = vadd.f32 %v4952_v24, %v3538_v50  ;;  %v4954_v31 = vpop.f32.mrb[117].mxu0  ;;  %6537 = vmatpush1.bf16.msra.mxu1 %v5067_v52  ;;  %v8231_v52 = vld [vmem:[#allocation3 + $0x360] ss:$16 sps:$4 sm:$0xff]   ;;  %v8232_v50 = vld [vmem:[#allocation3 + $0x384] ss:$16 sps:$4 sm:$0xff]  }
 0x4b7   : > { %v4955_v42 = vpop.f32.mrb[118].mxu0  ;;  %6538 = vmatprep.subr.bf16.mxu1 %v8458_v2  ;;  %v8234_v24 = vld [vmem:[#allocation3 + $0x380] ss:$16 sps:$4 sm:$0xff]   ;;  %v8238_v31 = vld [vmem:[#allocation3 + $0x3c4] ss:$16 sps:$4 sm:$0xff]  }
 0x4b8   : > { %v7507_v15 = vadd.f32 %v4955_v42, %v3543_v21  ;;  %v4957_v12 = vpop.f32.mrb[119].mxu0  ;;  %v5033_v0 = vmax.f32 %v7506_v35, 0.0  ;;  %v8237_v35 = vld [vmem:[#allocation3 + $0x3a0] ss:$16 sps:$4 sm:$0xff]   ;;  %v8241_v21 = vld [vmem:[#allocation3 + $0x3e4] ss:$16 sps:$4 sm:$0xff]  }
 0x4b9   : > { %6360 = vmatmul.mubr.bf16.gmra.mrb[52].mxu1 %v8189_v29  ;;  %v8235_v29 = vld [vmem:[#allocation3 + $0x3a4] ss:$16 sps:$4 sm:$0xff]   ;;  %v8243_v42 = vld [vmem:[#allocation3 + $0x3e0] ss:$16 sps:$4 sm:$0xff]   ;;  %v8244_v12 = vld [vmem:[#allocation3 + $0x8] ss:$16 sps:$4 sm:$0xff]  }
 0x4ba   : > { %v5034_v7 = vmax.f32 %v7507_v15, 0.0  ;;  %6367 = vmatprep.mubr.bf16.mxu1 %v8190_v59  ;;  %v8240_v59 = vld [vmem:[#allocation3 + $0x3c0] ss:$16 sps:$4 sm:$0xff]   ;;  %v8246_v15 = vld [vmem:[#allocation3 + $0xc] ss:$16 sps:$4 sm:$0xff]  }
 0x4bc   : > { %v5068_v46 = vpack.c.bf16 %v5034_v7, %v5033_v0  ;;  %v8247_v0 = vld [vmem:[#allocation3 + $0x2c] ss:$16 sps:$4 sm:$0xff]   ;;  %v8249_v7 = vld [vmem:[#allocation3 + $0x28] ss:$16 sps:$4 sm:$0xff]  }
 0x4bd   : > { %v4960_v40 = vpop.f32.mrb[120].mxu0 }
 0x4be   : > { %v7508_v55 = vadd.f32 %v4960_v40, %v3548_v10  ;;  %v4962_v18 = vpop.f32.mrb[121].mxu0  ;;  %6539 = vmatpush1.bf16.msra.mxu1 %v5068_v46  ;;  %v8250_v46 = vld [vmem:[#allocation3 + $0x4c] ss:$16 sps:$4 sm:$0xff]   ;;  %v8252_v10 = vld [vmem:[#allocation3 + $0x48] ss:$16 sps:$4 sm:$0xff]  }
 0x4bf   : > { %v4963_v26 = vpop.f32.mrb[122].mxu0  ;;  %6540 = vmatprep.subr.bf16.mxu1 %v8458_v2  ;;  %v8253_v40 = vld [vmem:[#allocation3 + $0x6c] ss:$16 sps:$4 sm:$0xff]   ;;  %v8258_v18 = vld [vmem:[#allocation3 + $0x88] ss:$16 sps:$4 sm:$0xff]  }
 0x4c0   : > { %v7509_v30 = vadd.f32 %v4963_v26, %v3553_v61  ;;  %v4965_v23 = vpop.f32.mrb[123].mxu0  ;;  %v5035_v44 = vmax.f32 %v7508_v55, 0.0  ;;  %v8256_v55 = vld [vmem:[#allocation3 + $0x8c] ss:$16 sps:$4 sm:$0xff]   ;;  %v8261_v61 = vld [vmem:[#allocation3 + $0xa8] ss:$16 sps:$4 sm:$0xff]  }
 0x4c1   : > { %6368 = vmatmul.mubr.bf16.gmra.mrb[56].mxu1 %v8192_v1  ;;  %v8255_v1 = vld [vmem:[#allocation3 + $0x68] ss:$16 sps:$4 sm:$0xff]   ;;  %v8262_v26 = vld [vmem:[#allocation3 + $0xcc] ss:$16 sps:$4 sm:$0xff]  }
 0x4c2   : > { %v5036_v13 = vmax.f32 %v7509_v30, 0.0  ;;  %6375 = vmatprep.mubr.bf16.mxu1 %v8193_v53  ;;  %v8259_v53 = vld [vmem:[#allocation3 + $0xac] ss:$16 sps:$4 sm:$0xff]   ;;  %v8264_v30 = vld [vmem:[#allocation3 + $0xc8] ss:$16 sps:$4 sm:$0xff]  }
 0x4c3   : > { %v8265_v23 = vld [vmem:[#allocation3 + $0xec] ss:$16 sps:$4 sm:$0xff]  }
 0x4c4   : > { %v5069_v56 = vpack.c.bf16 %v5036_v13, %v5035_v44  ;;  %v8267_v44 = vld [vmem:[#allocation3 + $0xe8] ss:$16 sps:$4 sm:$0xff]   ;;  %v8268_v13 = vld [vmem:[#allocation3 + $0x10c] ss:$16 sps:$4 sm:$0xff]  }
 0x4c5   : > { %v4968_v39 = vpop.f32.mrb[124].mxu0 }
 0x4c6   : > { %v7510_v54 = vadd.f32 %v4968_v39, %v3558_v45  ;;  %v4970_v41 = vpop.f32.mrb[125].mxu0  ;;  %6541 = vmatpush1.bf16.msra.mxu1 %v5069_v56  ;;  %v8270_v56 = vld [vmem:[#allocation3 + $0x108] ss:$16 sps:$4 sm:$0xff]   ;;  %v8271_v45 = vld [vmem:[#allocation3 + $0x12c] ss:$16 sps:$4 sm:$0xff]  }
 0x4c7   : > { %v4971_v38 = vpop.f32.mrb[126].mxu0  ;;  %6542 = vmatprep.subr.bf16.mxu1 %v8458_v2  ;;  %v8207_v2 = vld [vmem:[#allocation3 + $0x260] ss:$16 sps:$4 sm:$0xff]   ;;  %v8273_v39 = vld [vmem:[#allocation3 + $0x128] ss:$16 sps:$4 sm:$0xff]  }
 0x4c8   : > { %v7511_v27 = vadd.f32 %v4971_v38, %v3563_v19  ;;  %v4973_v5 = vpop.f32.mrb[127].mxu0  ;;  %v5037_v62 = vmax.f32 %v7510_v54, 0.0  ;;  %v8276_v54 = vld [vmem:[#allocation3 + $0x148] ss:$16 sps:$4 sm:$0xff]   ;;  %v8277_v41 = vld [vmem:[#allocation3 + $0x16c] ss:$16 sps:$4 sm:$0xff]  }
 0x4c9   : > { %6376 = vmatmul.mubr.bf16.gmra.mrb[60].mxu1 %v8195_v58  ;;  %v8274_v58 = vld [vmem:[#allocation3 + $0x14c] ss:$16 sps:$4 sm:$0xff]   ;;  %v8282_v38 = vld [vmem:[#allocation3 + $0x188] ss:$16 sps:$4 sm:$0xff]  }
 0x4ca   : > { %v5038_v11 = vmax.f32 %v7511_v27, 0.0  ;;  %6383 = vmatprep.mubr.bf16.mxu1 %v8196_v28  ;;  %v8279_v28 = vld [vmem:[#allocation3 + $0x168] ss:$16 sps:$4 sm:$0xff]   ;;  %v8280_v19 = vld [vmem:[#allocation3 + $0x18c] ss:$16 sps:$4 sm:$0xff]   ;;  %v10778_v27 = vpop.permute.xlu0 %5345 }
 0x4cb   : > { %v8283_v5 = vld [vmem:[#allocation3 + $0x1ac] ss:$16 sps:$4 sm:$0xff]  }
 0x4cc   : > { %v5070_v8 = vpack.c.bf16 %v5038_v11, %v5037_v62  ;;  %v10780_v62 = vpop.permute.xlu1 %5350 }
 0x4ce   : > { %6543 = vmatpush1.bf16.msra.mxu1 %v5070_v8  ;;  %v10782_v11 = vpop.permute.xlu0 %5265  ;;  %v8285_v8 = vld [vmem:[#allocation3 + $0x1a8] ss:$16 sps:$4 sm:$0xff]  }
 0x4d1   : > { %6384 = vmatmul.mubr.bf16.gmra.mrb[64].mxu1 %v8198_v14  ;;  %v10784_v14 = vpop.permute.xlu1 %5270 }
 0x4d2   : > { %6391 = vmatprep.mubr.bf16.mxu1 %v8199_v63  ;;  %v8286_v63 = vld [vmem:[#allocation3 + $0x1cc] ss:$16 sps:$4 sm:$0xff]  }
 0x4d9   : > { %6392 = vmatmul.mubr.bf16.gmra.mrb[68].mxu1 %v8201_v60  ;;  %v10786_v60 = vpop.permute.xlu0 %5505 }
 0x4da   : > { %6399 = vmatprep.mubr.bf16.mxu1 %v8202_v33  ;;  %v10788_v33 = vpop.permute.xlu1 %5510 }
 0x4e1   : > { %6400 = vmatmul.mubr.bf16.gmra.mrb[72].mxu1 %v8204_v32  ;;  %v8288_v32 = vld [vmem:[#allocation3 + $0x1c8] ss:$16 sps:$4 sm:$0xff]  }
 0x4e2   : > { %6407 = vmatprep.mubr.bf16.mxu1 %v8205_v57  ;;  %v8289_v57 = vld [vmem:[#allocation3 + $0x1ec] ss:$16 sps:$4 sm:$0xff]  }
 0x4e9   : > { %6408 = vmatmul.mubr.bf16.gmra.mrb[76].mxu1 %v8207_v2  ;;  %v10790_v2 = vpop.permute.xlu0 %5425 }
 0x4ea   : > { %6415 = vmatprep.mubr.bf16.mxu1 %v8208_v4  ;;  %v10792_v4 = vpop.permute.xlu1 %5430 }
 0x4f1   : > { %6416 = vmatmul.mubr.bf16.gmra.mrb[80].mxu1 %v8210_v36  ;;  %v8291_v36 = vld [vmem:[#allocation3 + $0x1e8] ss:$16 sps:$4 sm:$0xff]  }
 0x4f2   : > { %6423 = vmatprep.mubr.bf16.mxu1 %v8211_v22  ;;  %v10794_v22 = vpop.permute.xlu0 %5355 }
 0x4f9   : > { %6424 = vmatmul.mubr.bf16.gmra.mrb[84].mxu1 %v8213_v16  ;;  %v8292_v16 = vld [vmem:[#allocation3 + $0x20c] ss:$16 sps:$4 sm:$0xff]  }
 0x4fa   : > { %6431 = vmatprep.mubr.bf16.mxu1 %v8214_v47  ;;  %v10796_v47 = vpop.permute.xlu1 %5360 }
 0x501   : > { %6432 = vmatmul.mubr.bf16.gmra.mrb[88].mxu1 %v8216_v9  ;;  %v10798_v9 = vpop.permute.xlu0 %5275 }
 0x502   : > { %6439 = vmatprep.mubr.bf16.mxu1 %v8217_v51  ;;  %v8294_v51 = vld [vmem:[#allocation3 + $0x208] ss:$16 sps:$4 sm:$0xff]  }
 0x509   : > { %6440 = vmatmul.mubr.bf16.gmra.mrb[92].mxu1 %v8219_v25  ;;  %v10800_v25 = vpop.permute.xlu1 %5280 }
 0x50a   : > { %6447 = vmatprep.mubr.bf16.mxu1 %v8220_v3  ;;  %v8295_v3 = vld [vmem:[#allocation3 + $0x22c] ss:$16 sps:$4 sm:$0xff]  }
 0x511   : > { %6448 = vmatmul.mubr.bf16.gmra.mrb[96].mxu1 %v8222_v6  ;;  %v10802_v6 = vpop.permute.xlu0 %5515 }
 0x512   : > { %6455 = vmatprep.mubr.bf16.mxu1 %v8223_v48  ;;  %v10804_v48 = vpop.permute.xlu1 %5520 }
 0x519   : > { %6456 = vmatmul.mubr.bf16.gmra.mrb[100].mxu1 %v8225_v20  ;;  %v8297_v20 = vld [vmem:[#allocation3 + $0x228] ss:$16 sps:$4 sm:$0xff]  }
 0x51a   : > { %6463 = vmatprep.mubr.bf16.mxu1 %v8226_v49  ;;  %v8298_v49 = vld [vmem:[#allocation3 + $0x24c] ss:$16 sps:$4 sm:$0xff]  }
 0x521   : > { %6464 = vmatmul.mubr.bf16.gmra.mrb[104].mxu1 %v8228_v34  ;;  %v10806_v34 = vpop.permute.xlu0 %5435 }
 0x522   : > { %6471 = vmatprep.mubr.bf16.mxu1 %v8229_v17  ;;  %v10808_v17 = vpop.permute.xlu1 %5440 }
 0x529   : > { %6472 = vmatmul.mubr.bf16.gmra.mrb[108].mxu1 %v8231_v52  ;;  %v8300_v52 = vld [vmem:[#allocation3 + $0x248] ss:$16 sps:$4 sm:$0xff]  }
 0x52a   : > { %6479 = vmatprep.mubr.bf16.mxu1 %v8232_v50  ;;  %v10810_v50 = vpop.permute.xlu0 %5365 }
 0x531   : > { %6480 = vmatmul.mubr.bf16.gmra.mrb[112].mxu1 %v8234_v24  ;;  %v8301_v24 = vld [vmem:[#allocation3 + $0x26c] ss:$16 sps:$4 sm:$0xff]  }
 0x532   : > { %6487 = vmatprep.mubr.bf16.mxu1 %v8235_v29  ;;  %v10812_v29 = vpop.permute.xlu1 %5370 }
 0x539   : > { %6488 = vmatmul.mubr.bf16.gmra.mrb[116].mxu1 %v8237_v35  ;;  %v10814_v35 = vpop.permute.xlu0 %5285 }
 0x53a   : > { %6495 = vmatprep.mubr.bf16.mxu1 %v8238_v31  ;;  %v8303_v31 = vld [vmem:[#allocation3 + $0x268] ss:$16 sps:$4 sm:$0xff]  }
 0x541   : > { %6496 = vmatmul.mubr.bf16.gmra.mrb[120].mxu1 %v8240_v59  ;;  %v10816_v59 = vpop.permute.xlu1 %5290 }
 0x542   : > { %6503 = vmatprep.mubr.bf16.mxu1 %v8241_v21  ;;  %v8304_v21 = vld [vmem:[#allocation3 + $0x28c] ss:$16 sps:$4 sm:$0xff]  }
 0x549   : > { %6504 = vmatmul.mubr.bf16.gmra.mrb[124].mxu1 %v8243_v42  ;;  %v10818_v42 = vpop.permute.xlu0 %5525 }
 0x54a   : > { %6544 = vmatprep.mubr.bf16.mxu1 %v8246_v15  ;;  %v10820_v15 = vpop.permute.xlu1 %5530 }
 0x551   : > { %6545 = vmatmul.mubr.bf16.vlgmr.msra.gmra.mrb[0].mxu1 %v8244_v12  ;;  %v8306_v12 = vld [vmem:[#allocation3 + $0x288] ss:$16 sps:$4 sm:$0xff]  }
 0x552   : > { %6552 = vmatprep.mubr.bf16.mxu1 %v8247_v0  ;;  %v8307_v0 = vld [vmem:[#allocation3 + $0x2ac] ss:$16 sps:$4 sm:$0xff]  }
 0x559   : > { %6553 = vmatmul.mubr.bf16.gmra.mrb[4].mxu1 %v8249_v7  ;;  %v10822_v7 = vpop.permute.xlu0 %5445 }
 0x55a   : > { %6560 = vmatprep.mubr.bf16.mxu1 %v8250_v46  ;;  %v10824_v46 = vpop.permute.xlu1 %5450 }
 0x561   : > { %6561 = vmatmul.mubr.bf16.gmra.mrb[8].mxu1 %v8252_v10  ;;  %v8309_v10 = vld [vmem:[#allocation3 + $0x2a8] ss:$16 sps:$4 sm:$0xff]  }
 0x562   : > { %6568 = vmatprep.mubr.bf16.mxu1 %v8253_v40  ;;  %v10826_v40 = vpop.permute.xlu0 %5375 }
 0x569   : > { %6569 = vmatmul.mubr.bf16.gmra.mrb[12].mxu1 %v8255_v1  ;;  %v8310_v1 = vld [vmem:[#allocation3 + $0x2cc] ss:$16 sps:$4 sm:$0xff]  }
 0x56a   : > { %6576 = vmatprep.mubr.bf16.mxu1 %v8256_v55  ;;  %v10828_v55 = vpop.permute.xlu1 %5380 }
 0x571   : > { %6577 = vmatmul.mubr.bf16.gmra.mrb[16].mxu1 %v8258_v18  ;;  %v10830_v18 = vpop.permute.xlu0 %5295 }
 0x572   : > { %6584 = vmatprep.mubr.bf16.mxu1 %v8259_v53  ;;  %v8312_v53 = vld [vmem:[#allocation3 + $0x2c8] ss:$16 sps:$4 sm:$0xff]  }
 0x579   : > { %6585 = vmatmul.mubr.bf16.gmra.mrb[20].mxu1 %v8261_v61  ;;  %v10832_v61 = vpop.permute.xlu1 %5300 }
 0x57a   : > { %6592 = vmatprep.mubr.bf16.mxu1 %v8262_v26  ;;  %v8313_v26 = vld [vmem:[#allocation3 + $0x2ec] ss:$16 sps:$4 sm:$0xff]  }
 0x581   : > { %6593 = vmatmul.mubr.bf16.gmra.mrb[24].mxu1 %v8264_v30  ;;  %v10834_v30 = vpop.permute.xlu0 %5535 }
 0x582   : > { %6600 = vmatprep.mubr.bf16.mxu1 %v8265_v23  ;;  %11081 = vst [vmem:[#allocation10_spill] sm:$0xff] %v10834_v30  ;;  %v10836_v23 = vpop.permute.xlu1 %5540 }
 0x583   : > { %11082 = vst [vmem:[#allocation11_spill] sm:$0xff] %v10836_v23 }
 0x589   : > { %6601 = vmatmul.mubr.bf16.gmra.mrb[28].mxu1 %v8267_v44  ;;  %v8315_v44 = vld [vmem:[#allocation3 + $0x2e8] ss:$16 sps:$4 sm:$0xff]  }
 0x58a   : > { %6608 = vmatprep.mubr.bf16.mxu1 %v8268_v13  ;;  %v8316_v13 = vld [vmem:[#allocation3 + $0x30c] ss:$16 sps:$4 sm:$0xff]  }
 0x591   : > { %6609 = vmatmul.mubr.bf16.gmra.mrb[32].mxu1 %v8270_v56  ;;  %v10838_v56 = vpop.permute.xlu0 %5455 }
 0x592   : > { %6616 = vmatprep.mubr.bf16.mxu1 %v8271_v45  ;;  %v10840_v45 = vpop.permute.xlu1 %5460 }
 0x599   : > { %6617 = vmatmul.mubr.bf16.gmra.mrb[36].mxu1 %v8273_v39  ;;  %v8318_v39 = vld [vmem:[#allocation3 + $0x308] ss:$16 sps:$4 sm:$0xff]  }
 0x59a   : > { %6624 = vmatprep.mubr.bf16.mxu1 %v8274_v58  ;;  %v10842_v58 = vpop.permute.xlu0 %5385 }
 0x5a1   : > { %6625 = vmatmul.mubr.bf16.gmra.mrb[40].mxu1 %v8276_v54  ;;  %v8319_v54 = vld [vmem:[#allocation3 + $0x32c] ss:$16 sps:$4 sm:$0xff]  }
 0x5a2   : > { %6632 = vmatprep.mubr.bf16.mxu1 %v8277_v41  ;;  %v10844_v41 = vpop.permute.xlu1 %5390 }
 0x5a9   : > { %6633 = vmatmul.mubr.bf16.gmra.mrb[44].mxu1 %v8279_v28  ;;  %v10846_v28 = vpop.permute.xlu0 %5305 }
 0x5aa   : > { %6640 = vmatprep.mubr.bf16.mxu1 %v8280_v19  ;;  %v8321_v19 = vld [vmem:[#allocation3 + $0x328] ss:$16 sps:$4 sm:$0xff]  }
 0x5b1   : > { %6641 = vmatmul.mubr.bf16.gmra.mrb[48].mxu1 %v8282_v38  ;;  %v10848_v38 = vpop.permute.xlu1 %5310 }
 0x5b2   : > { %6648 = vmatprep.mubr.bf16.mxu1 %v8283_v5  ;;  %v8322_v5 = vld [vmem:[#allocation3 + $0x34c] ss:$16 sps:$4 sm:$0xff]  }
 0x5b9   : > { %6649 = vmatmul.mubr.bf16.gmra.mrb[52].mxu1 %v8285_v8  ;;  %v10850_v8 = vpop.permute.xlu0 %5545 }
 0x5ba   : > { %6656 = vmatprep.mubr.bf16.mxu1 %v8286_v63  ;;  %11083 = vst [vmem:[#allocation12_spill] sm:$0xff] %v10850_v8  ;;  %v10852_v63 = vpop.permute.xlu1 %5550 }
 0x5bb   : > { %11084 = vst [vmem:[#allocation13_spill] sm:$0xff] %v10852_v63 }
 0x5c1   : > { %6657 = vmatmul.mubr.bf16.gmra.mrb[56].mxu1 %v8288_v32  ;;  %v8324_v32 = vld [vmem:[#allocation3 + $0x348] ss:$16 sps:$4 sm:$0xff]  }
 0x5c2   : > { %6664 = vmatprep.mubr.bf16.mxu1 %v8289_v57  ;;  %v8325_v57 = vld [vmem:[#allocation3 + $0x36c] ss:$16 sps:$4 sm:$0xff]  }
 0x5c9   : > { %6665 = vmatmul.mubr.bf16.gmra.mrb[60].mxu1 %v8291_v36  ;;  %v10854_v36 = vpop.permute.xlu0 %5465 }
 0x5ca   : > { %6672 = vmatprep.mubr.bf16.mxu1 %v8292_v16  ;;  %v8460_v16 = vmov 1966171168  }
 0x5d1   : > { %6673 = vmatmul.mubr.bf16.gmra.mrb[64].mxu1 %v8294_v51  ;;  %v6918_v51 = vunpack.c.l.s4 %v8460_v16  ;;  %v8330_v16 = vld [vmem:[#allocation3 + $0x388] ss:$16 sps:$4 sm:$0xff]  }
 0x5d2   : > { %6680 = vmatprep.mubr.bf16.mxu1 %v8295_v3  ;;  %v10856_v3 = vpop.permute.xlu1 %5470 }
 0x5d9   : > { %6681 = vmatmul.mubr.bf16.gmra.mrb[68].mxu1 %v8297_v20  ;;  %v6919_v20 = vunpack.c.0.s8 %v6918_v51 }
 0x5da   : > { %6688 = vmatprep.mubr.bf16.mxu1 %v8298_v49 }
 0x5e1   : > { %6689 = vmatmul.mubr.bf16.gmra.mrb[72].mxu1 %v8300_v52  ;;  %v7400_v52 = vld.sshfl [vmem:[%s11066_s7] sm:$0x33 pattern:$0x75316420] }
 0x5e2   : > { %6696 = vmatprep.mubr.bf16.mxu1 %v8301_v24 }
 0x5e9   : > { %6697 = vmatmul.mubr.bf16.gmra.mrb[76].mxu1 %v8303_v31 }
 0x5ea   : > { %6704 = vmatprep.mubr.bf16.mxu1 %v8304_v21  ;;  %v8327_v21 = vld [vmem:[#allocation3 + $0x368] ss:$16 sps:$4 sm:$0xff]  }
 0x5f1   : > { %6705 = vmatmul.mubr.bf16.gmra.mrb[80].mxu1 %v8306_v12  ;;  %v6916_v12 = vcombine.high %v7400_v52, %v7400_v52 }
 0x5f2   : > { %6712 = vmatprep.mubr.bf16.mxu1 %v8307_v0  ;;  %v6922_v0 = vsub.s32 %v6919_v20, %v8913_v37 }
 0x5f9   : > { %6713 = vmatmul.mubr.bf16.gmra.mrb[84].mxu1 %v8309_v10  ;;  %v10863_v10 = vpop.permute.xlu0 %5395 }
 0x5fa   : > { %6720 = vmatprep.mubr.bf16.mxu1 %v8310_v1 }
 0x601   : > { %6721 = vmatmul.mubr.bf16.gmra.mrb[88].mxu1 %v8312_v53  ;;  %v8328_v53 = vld [vmem:[#allocation3 + $0x38c] ss:$16 sps:$4 sm:$0xff]  }
 0x602   : > { %6728 = vmatprep.mubr.bf16.mxu1 %v8313_v26 }
 0x609   : > { %6729 = vmatmul.mubr.bf16.gmra.mrb[92].mxu1 %v8315_v44 }
 0x60a   : > { %6736 = vmatprep.mubr.bf16.mxu1 %v8316_v13  ;;  %v10866_v13 = vrot.slane %v6916_v12, %v6922_v0 }
 0x60c   : > { %6969 = vmatprep.mubr.bf16.mxu0 %v10866_v13 }
 0x611   : > { %6737 = vmatmul.mubr.bf16.gmra.mrb[96].mxu1 %v8318_v39  ;;  %v10868_v39 = vpop.permute.xlu1 %5400 }
 0x612   : > { %6744 = vmatprep.mubr.bf16.mxu1 %v8319_v54  ;;  %v10870_v54 = vrot.slane %v7400_v52, %v6922_v0 }
 0x615   : > { %v5321_v51 = vpop.permute.xlu1 %5320 }
 0x619   : > { %6745 = vmatmul.mubr.bf16.gmra.mrb[100].mxu1 %v8321_v19 }
 0x61a   : > { %6752 = vmatprep.mubr.bf16.mxu1 %v8322_v5  ;;  %v10875_v5 = vpop.permute.xlu0 %5315 }
 0x61e   : > { %v10879_v12 = vpop.permute.xlu0 %5555 }
 0x61f   : > { %11085 = vst [vmem:[#allocation14_spill] sm:$0xff] %v10879_v12 }
 0x621   : > { %6753 = vmatmul.mubr.bf16.gmra.mrb[104].mxu1 %v8324_v32 }
 0x622   : > { %6760 = vmatprep.mubr.bf16.mxu1 %v8325_v57 }
 0x624   : > { %v6546_v49 = vpop.f32.mrb[0].mxu1 }
 0x625   : > { %v7512_v24 = vadd.f32 %v6546_v49, %v10782_v11  ;;  %v6548_v31 = vpop.f32.mrb[1].mxu1  ;;  %v8331_v49 = vld [vmem:[#allocation3 + $0x3ac] ss:$16 sps:$4 sm:$0xff]  }
 0x626   : > { %v6549_v1 = vpop.f32.mrb[2].mxu1 }
 0x627   : > { %v7513_v26 = vadd.f32 %v6549_v1, %v10784_v14  ;;  %v6551_v44 = vpop.f32.mrb[3].mxu1  ;;  %v6801_v19 = vmax.f32 %v7512_v24, 0.0  ;;  %v10883_v1 = vpop.permute.xlu1 %5560 }
 0x628   : > { %11086 = vst [vmem:[#allocation15_spill] sm:$0xff] %v10883_v1  ;;  %v8333_v44 = vld [vmem:[#allocation3 + $0x3a8] ss:$16 sps:$4 sm:$0xff]  }
 0x629   : > { %v6802_v11 = vmax.f32 %v7513_v26, 0.0  ;;  %6761 = vmatmul.mubr.bf16.gmra.mrb[108].mxu1 %v8327_v21 }
 0x62a   : > { %6768 = vmatprep.mubr.bf16.mxu1 %v8328_v53 }
 0x62b   : > { %v10873_v37 = vpack.c.bf16 %v6802_v11, %v6801_v19  ;;  %v8334_v11 = vld [vmem:[#allocation3 + $0x3cc] ss:$16 sps:$4 sm:$0xff]  }
 0x62c   : > { %v6554_v32 = vpop.f32.mrb[4].mxu1 }
 0x62d   : > { %v7514_v14 = vadd.f32 %v6554_v32, %v10798_v9  ;;  %v6556_v57 = vpop.f32.mrb[5].mxu1 }
 0x62e   : > { %v6557_v20 = vpop.f32.mrb[6].mxu1 }
 0x62f   : > { %v7515_v52 = vadd.f32 %v6557_v20, %v10800_v25  ;;  %v6559_v24 = vpop.f32.mrb[7].mxu1  ;;  %v6803_v31 = vmax.f32 %v7514_v14, 0.0  ;;  %v10887_v14 = vpop.permute.xlu0 %5475 }
 0x630   : > { %v10889_v20 = vpop.permute.xlu1 %5480 }
 0x631   : > { %v6804_v21 = vmax.f32 %v7515_v52, 0.0  ;;  %6769 = vmatmul.mubr.bf16.gmra.mrb[112].mxu1 %v8330_v16 }
 0x632   : > { %6776 = vmatprep.mubr.bf16.mxu1 %v8331_v49 }
 0x633   : > { %v10881_v0 = vpack.c.bf16 %v6804_v21, %v6803_v31  ;;  %v8336_v31 = vld [vmem:[#allocation3 + $0x3c8] ss:$16 sps:$4 sm:$0xff]   ;;  %v10894_v21 = vpop.permute.xlu0 %5405 }
 0x634   : > { %v6562_v53 = vpop.f32.mrb[8].mxu1 }
 0x635   : > { %v7516_v9 = vadd.f32 %v6562_v53, %v10814_v35  ;;  %v6564_v26 = vpop.f32.mrb[9].mxu1 }
 0x636   : > { %v6565_v19 = vpop.f32.mrb[10].mxu1 }
 0x637   : > { %v7517_v25 = vadd.f32 %v6565_v19, %v10816_v59  ;;  %v6567_v32 = vpop.f32.mrb[11].mxu1  ;;  %v6805_v57 = vmax.f32 %v7516_v9, 0.0  ;;  %v8337_v59 = vld [vmem:[#allocation3 + $0x3ec] ss:$16 sps:$4 sm:$0xff]   ;;  %v10897_v9 = vpop.permute.xlu1 %5410 }
 0x638   : > { %v5326_v32 = vpop.permute.xlu0 %5325 }
 0x639   : > { %v6806_v16 = vmax.f32 %v7517_v25, 0.0  ;;  %6777 = vmatmul.mubr.bf16.gmra.mrb[116].mxu1 %v8333_v44 }
 0x63a   : > { %6784 = vmatprep.mubr.bf16.mxu1 %v8334_v11 }
 0x63b   : > { %v10891_v49 = vpack.c.bf16 %v6806_v16, %v6805_v57 }
 0x63c   : > { %v6570_v52 = vpop.f32.mrb[12].mxu1 }
 0x63d   : > { %v7518_v35 = vadd.f32 %v6570_v52, %v10830_v18  ;;  %v6572_v24 = vpop.f32.mrb[13].mxu1  ;;  %v8339_v52 = vld [vmem:[#allocation3 + $0x3e8] ss:$16 sps:$4 sm:$0xff]  }
 0x63e   : > { %v6573_v53 = vpop.f32.mrb[14].mxu1  ;;  %v5331_v24 = vpop.permute.xlu1 %5330 }
 0x63f   : > { %v7519_v26 = vadd.f32 %v6573_v53, %v10832_v61  ;;  %v6575_v19 = vpop.f32.mrb[15].mxu1  ;;  %v6807_v44 = vmax.f32 %v7518_v35, 0.0  ;;  %v10903_v35 = vpop.permute.xlu0 %5565 }
 0x640   : > { %11087 = vst [vmem:[#allocation16_spill] sm:$0xff] %v10903_v35 }
 0x641   : > { %v6808_v25 = vmax.f32 %v7519_v26, 0.0  ;;  %6785 = vmatmul.mubr.bf16.gmra.mrb[120].mxu1 %v8336_v31 }
 0x642   : > { %6792 = vmatprep.mubr.bf16.mxu1 %v8337_v59  ;;  %v10907_v59 = vpop.permute.xlu1 %5570 }
 0x643   : > { %v10899_v11 = vpack.c.bf16 %v6808_v25, %v6807_v44  ;;  %11088 = vst [vmem:[#allocation17_spill] sm:$0xff] %v10907_v59  ;;  %v10910_v12 = vpop.permute.xlu0 %5485 }
 0x644   : > { %v6578_v57 = vpop.f32.mrb[16].mxu1 }
 0x645   : > { %v7520_v18 = vadd.f32 %v6578_v57, %v10846_v28  ;;  %v6580_v16 = vpop.f32.mrb[17].mxu1 }
 0x646   : > { %v6581_v43 = vpop.f32.mrb[18].mxu1 }
 0x647   : > { %v7521_v1 = vadd.f32 %v6581_v43, %v10848_v38  ;;  %v6583_v61 = vpop.f32.mrb[19].mxu1  ;;  %v6809_v53 = vmax.f32 %v7520_v18, 0.0  ;;  %v10912_v18 = vpop.permute.xlu1 %5490 }
 0x649   : > { %v6810_v19 = vmax.f32 %v7521_v1, 0.0  ;;  %6793 = vmatmul.mubr.bf16.gmra.mrb[124].mxu1 %v8339_v52 }
 0x64b   : > { %v10905_v31 = vpack.c.bf16 %v6810_v19, %v6809_v53  ;;  %v10916_v19 = vpop.permute.xlu0 %5415 }
 0x64c   : > { %v6586_v26 = vpop.f32.mrb[20].mxu1 }
 0x64d   : > { %v7522_v44 = vadd.f32 %v6586_v26, %v10875_v5  ;;  %v6588_v28 = vpop.f32.mrb[21].mxu1  ;;  %v10918_v26 = vpop.permute.xlu1 %5420 }
 0x64e   : > { %v6589_v25 = vpop.f32.mrb[22].mxu1 }
 0x64f   : > { %v7523_v57 = vadd.f32 %v6589_v25, %v5321_v51  ;;  %v6591_v16 = vpop.f32.mrb[23].mxu1  ;;  %v6811_v43 = vmax.f32 %v7522_v44, 0.0  ;;  %v5336_v44 = vpop.permute.xlu0 %5335 }
 0x651   : > { %v6812_v38 = vmax.f32 %v7523_v57, 0.0 }
 0x653   : > { %v10914_v1 = vpack.c.bf16 %v6812_v38, %v6811_v43  ;;  %v5341_v43 = vpop.permute.xlu1 %5340 }
 0x654   : > { %v6594_v52 = vpop.f32.mrb[24].mxu1 }
 0x655   : > { %v7524_v61 = vadd.f32 %v6594_v52, %v5326_v32  ;;  %v6596_v53 = vpop.f32.mrb[25].mxu1 }
 0x656   : > { %v6597_v59 = vpop.f32.mrb[26].mxu1 }
 0x657   : > { %v7525_v35 = vadd.f32 %v6597_v59, %v5331_v24  ;;  %v6599_v5 = vpop.f32.mrb[27].mxu1  ;;  %v6813_v51 = vmax.f32 %v7524_v61, 0.0 }
 0x659   : > { %v6814_v28 = vmax.f32 %v7525_v35, 0.0 }
 0x65b   : > { %v10920_v25 = vpack.c.bf16 %v6814_v28, %v6813_v51 }
 0x65c   : > { %v6602_v57 = vpop.f32.mrb[28].mxu1 }
 0x65d   : > { %v7526_v16 = vadd.f32 %v6602_v57, %v5336_v44  ;;  %v6604_v63 = vpop.f32.mrb[29].mxu1 }
 0x65e   : > { %v6605_v38 = vpop.f32.mrb[30].mxu1 }
 0x65f   : > { %v7527_v8 = vadd.f32 %v6605_v38, %v5341_v43  ;;  %v6607_v32 = vpop.f32.mrb[31].mxu1  ;;  %v6815_v52 = vmax.f32 %v7526_v16, 0.0 }
 0x661   : > { %v6816_v53 = vmax.f32 %v7527_v8, 0.0 }
 0x663   : > { %v10922_v23 = vpack.c.bf16 %v6816_v53, %v6815_v52 }
 0x664   : > { %v6610_v24 = vpop.f32.mrb[32].mxu1 }
 0x665   : > { %v7528_v59 = vadd.f32 %v6610_v24, %v10778_v27  ;;  %v6612_v5 = vpop.f32.mrb[33].mxu1 }
 0x666   : > { %v6613_v61 = vpop.f32.mrb[34].mxu1 }
 0x667   : > { %v7529_v35 = vadd.f32 %v6613_v61, %v10780_v62  ;;  %v6615_v51 = vpop.f32.mrb[35].mxu1  ;;  %v6817_v28 = vmax.f32 %v7528_v59, 0.0 }
 0x669   : > { %v6818_v30 = vmax.f32 %v7529_v35, 0.0 }
 0x66b   : > { %v6873_v44 = vpack.c.bf16 %v6818_v30, %v6817_v28 }
 0x66c   : > { %v6618_v63 = vpop.f32.mrb[36].mxu1 }
 0x66d   : > { %v7530_v57 = vadd.f32 %v6618_v63, %v10794_v22  ;;  %v6620_v43 = vpop.f32.mrb[37].mxu1  ;;  %7404 = vmatprep.subr.bf16.mxu0 %v6873_v44 }
 0x66e   : > { %v6621_v16 = vpop.f32.mrb[38].mxu1  ;;  %7405 = vmatpush3.bf16.msra.mxu0 %v10873_v37 }
 0x66f   : > { %v7531_v8 = vadd.f32 %v6621_v16, %v10796_v47  ;;  %v6623_v38 = vpop.f32.mrb[39].mxu1  ;;  %v6819_v27 = vmax.f32 %v7530_v57, 0.0 }
 0x671   : > { %v6820_v32 = vmax.f32 %v7531_v8, 0.0 }
 0x673   : > { %v6874_v52 = vpack.c.bf16 %v6820_v32, %v6819_v27 }
 0x674   : > { %v6626_v53 = vpop.f32.mrb[40].mxu1 }
 0x675   : > { %v7532_v62 = vadd.f32 %v6626_v53, %v10810_v50  ;;  %v6628_v24 = vpop.f32.mrb[41].mxu1  ;;  %7406 = vmatprep.subr.bf16.mxu0 %v6874_v52 }
 0x676   : > { %v6629_v30 = vpop.f32.mrb[42].mxu1  ;;  %7407 = vmatpush3.bf16.msra.mxu0 %v10881_v0 }
 0x677   : > { %v7533_v22 = vadd.f32 %v6629_v30, %v10812_v29  ;;  %v6631_v59 = vpop.f32.mrb[43].mxu1  ;;  %v6821_v5 = vmax.f32 %v7532_v62, 0.0 }
 0x679   : > { %v6822_v61 = vmax.f32 %v7533_v22, 0.0 }
 0x67b   : > { %v6875_v37 = vpack.c.bf16 %v6822_v61, %v6821_v5 }
 0x67c   : > { %v6634_v35 = vpop.f32.mrb[44].mxu1 }
 0x67d   : > { %v7534_v47 = vadd.f32 %v6634_v35, %v10826_v40  ;;  %v6636_v51 = vpop.f32.mrb[45].mxu1  ;;  %7408 = vmatprep.subr.bf16.mxu0 %v6875_v37 }
 0x67e   : > { %v6637_v28 = vpop.f32.mrb[46].mxu1  ;;  %7409 = vmatpush3.bf16.msra.mxu0 %v10891_v49 }
 0x67f   : > { %v7535_v50 = vadd.f32 %v6637_v28, %v10828_v55  ;;  %v6639_v44 = vpop.f32.mrb[47].mxu1  ;;  %v6823_v63 = vmax.f32 %v7534_v47, 0.0 }
 0x681   : > { %v6824_v57 = vmax.f32 %v7535_v50, 0.0 }
 0x683   : > { %v6876_v0 = vpack.c.bf16 %v6824_v57, %v6823_v63 }
 0x684   : > { %v6642_v43 = vpop.f32.mrb[48].mxu1 }
 0x685   : > { %v7536_v29 = vadd.f32 %v6642_v43, %v10842_v58  ;;  %v6644_v16 = vpop.f32.mrb[49].mxu1  ;;  %7410 = vmatprep.subr.bf16.mxu0 %v6876_v0 }
 0x686   : > { %v6645_v8 = vpop.f32.mrb[50].mxu1  ;;  %7411 = vmatpush3.bf16.msra.mxu0 %v10899_v11 }
 0x687   : > { %v7537_v40 = vadd.f32 %v6645_v8, %v10844_v41  ;;  %v6647_v38 = vpop.f32.mrb[51].mxu1  ;;  %v6825_v27 = vmax.f32 %v7536_v29, 0.0 }
 0x689   : > { %v6826_v32 = vmax.f32 %v7537_v40, 0.0 }
 0x68b   : > { %v6877_v49 = vpack.c.bf16 %v6826_v32, %v6825_v27 }
 0x68c   : > { %v6650_v52 = vpop.f32.mrb[52].mxu1 }
 0x68d   : > { %v7538_v55 = vadd.f32 %v6650_v52, %v10863_v10  ;;  %v6652_v53 = vpop.f32.mrb[53].mxu1  ;;  %7412 = vmatprep.subr.bf16.mxu0 %v6877_v49 }
 0x68e   : > { %v6653_v62 = vpop.f32.mrb[54].mxu1  ;;  %7413 = vmatpush3.bf16.msra.mxu0 %v10905_v31 }
 0x68f   : > { %v7539_v58 = vadd.f32 %v6653_v62, %v10868_v39  ;;  %v6655_v24 = vpop.f32.mrb[55].mxu1  ;;  %v6827_v30 = vmax.f32 %v7538_v55, 0.0 }
 0x691   : > { %v6828_v22 = vmax.f32 %v7539_v58, 0.0 }
 0x693   : > { %v6878_v11 = vpack.c.bf16 %v6828_v22, %v6827_v30 }
 0x694   : > { %v6658_v59 = vpop.f32.mrb[56].mxu1 }
 0x695   : > { %v7540_v41 = vadd.f32 %v6658_v59, %v10894_v21  ;;  %v6660_v5 = vpop.f32.mrb[57].mxu1  ;;  %7414 = vmatprep.subr.bf16.mxu0 %v6878_v11 }
 0x696   : > { %v6661_v61 = vpop.f32.mrb[58].mxu1  ;;  %7415 = vmatpush3.bf16.msra.mxu0 %v10914_v1 }
 0x697   : > { %v7541_v10 = vadd.f32 %v6661_v61, %v10897_v9  ;;  %v6663_v37 = vpop.f32.mrb[59].mxu1  ;;  %v6829_v35 = vmax.f32 %v7540_v41, 0.0 }
 0x699   : > { %v6830_v47 = vmax.f32 %v7541_v10, 0.0 }
 0x69b   : > { %v6879_v31 = vpack.c.bf16 %v6830_v47, %v6829_v35 }
 0x69c   : > { %v6666_v51 = vpop.f32.mrb[60].mxu1 }
 0x69d   : > { %v7542_v39 = vadd.f32 %v6666_v51, %v10916_v19  ;;  %v6668_v28 = vpop.f32.mrb[61].mxu1  ;;  %7416 = vmatprep.subr.bf16.mxu0 %v6879_v31  ;;  %v6932_v19 = vcombine.high %v10866_v13, %v10866_v13 }
 0x69e   : > { %v6669_v50 = vpop.f32.mrb[62].mxu1  ;;  %7417 = vmatpush3.bf16.msra.mxu0 %v10920_v25 }
 0x69f   : > { %v7543_v21 = vadd.f32 %v6669_v50, %v10918_v26  ;;  %v6671_v44 = vpop.f32.mrb[63].mxu1  ;;  %v6831_v63 = vmax.f32 %v7542_v39, 0.0  ;;  %7009 = vmatprep.mubr.bf16.mxu1 %v6932_v19 }
 0x6a1   : > { %v6832_v57 = vmax.f32 %v7543_v21, 0.0 }
 0x6a3   : > { %v6880_v1 = vpack.c.bf16 %v6832_v57, %v6831_v63 }
 0x6a4   : > { %v6674_v0 = vpop.f32.mrb[64].mxu1 }
 0x6a5   : > { %v7544_v9 = vadd.f32 %v6674_v0, %v10790_v2  ;;  %v6676_v43 = vpop.f32.mrb[65].mxu1  ;;  %7418 = vmatprep.subr.bf16.mxu0 %v6880_v1 }
 0x6a6   : > { %v6677_v29 = vpop.f32.mrb[66].mxu1  ;;  %7419 = vmatpush3.bf16.msra.mxu0 %v10922_v23 }
 0x6a7   : > { %v7545_v16 = vadd.f32 %v6677_v29, %v10792_v4  ;;  %v6679_v25 = vpop.f32.mrb[67].mxu1  ;;  %v6833_v26 = vmax.f32 %v7544_v9, 0.0 }
 0x6a9   : > { %v6834_v8 = vmax.f32 %v7545_v16, 0.0  ;;  %6970 = vmatmul.mubr.bf16.vlgmr.msra.gmra.mrb[128].mxu0 %v10870_v54  ;;  %v10976_v16 = vpop.permute.xlu0 %5575 }
 0x6ab   : > { %v10953_v40 = vpack.c.bf16 %v6834_v8, %v6833_v26 }
 0x6ac   : > { %v6682_v38 = vpop.f32.mrb[68].mxu1 }
 0x6ad   : > { %v7546_v2 = vadd.f32 %v6682_v38, %v10806_v34  ;;  %v6684_v27 = vpop.f32.mrb[69].mxu1 }
 0x6ae   : > { %v6685_v32 = vpop.f32.mrb[70].mxu1  ;;  %v5496_v27 = vpop.permute.xlu0 %5495 }
 0x6af   : > { %v7547_v23 = vadd.f32 %v6685_v32, %v10808_v17  ;;  %v6687_v49 = vpop.f32.mrb[71].mxu1  ;;  %v6835_v52 = vmax.f32 %v7546_v2, 0.0 }
 0x6b1   : > { %v6836_v13 = vmax.f32 %v7547_v23, 0.0 }
 0x6b3   : > { %v10957_v55 = vpack.c.bf16 %v6836_v13, %v6835_v52 }
 0x6b4   : > { %v6690_v4 = vpop.f32.mrb[72].mxu1 }
 0x6b5   : > { %v7548_v53 = vadd.f32 %v6690_v4, %v10822_v7  ;;  %v6692_v62 = vpop.f32.mrb[73].mxu1 }
 0x6b6   : > { %v6693_v58 = vpop.f32.mrb[74].mxu1 }
 0x6b7   : > { %v7549_v24 = vadd.f32 %v6693_v58, %v10824_v46  ;;  %v6695_v30 = vpop.f32.mrb[75].mxu1  ;;  %v6837_v22 = vmax.f32 %v7548_v53, 0.0 }
 0x6b9   : > { %v6838_v11 = vmax.f32 %v7549_v24, 0.0 }
 0x6bb   : > { %v10961_v34 = vpack.c.bf16 %v6838_v11, %v6837_v22 }
 0x6bc   : > { %v6698_v59 = vpop.f32.mrb[76].mxu1 }
 0x6bd   : > { %v7550_v17 = vadd.f32 %v6698_v59, %v10838_v56  ;;  %v6700_v41 = vpop.f32.mrb[77].mxu1 }
 0x6be   : > { %v6701_v5 = vpop.f32.mrb[78].mxu1 }
 0x6bf   : > { %v7551_v61 = vadd.f32 %v6701_v5, %v10840_v45  ;;  %v6703_v10 = vpop.f32.mrb[79].mxu1  ;;  %v6839_v37 = vmax.f32 %v7550_v17, 0.0 }
 0x6c1   : > { %v6840_v35 = vmax.f32 %v7551_v61, 0.0 }
 0x6c3   : > { %v10965_v7 = vpack.c.bf16 %v6840_v35, %v6839_v37 }
 0x6c4   : > { %v6706_v47 = vpop.f32.mrb[80].mxu1 }
 0x6c5   : > { %v7552_v46 = vadd.f32 %v6706_v47, %v10854_v36  ;;  %v6708_v31 = vpop.f32.mrb[81].mxu1 }
 0x6c6   : > { %v6709_v51 = vpop.f32.mrb[82].mxu1 }
 0x6c7   : > { %v7553_v39 = vadd.f32 %v6709_v51, %v10856_v3  ;;  %v6711_v28 = vpop.f32.mrb[83].mxu1  ;;  %v6841_v50 = vmax.f32 %v7552_v46, 0.0 }
 0x6c9   : > { %v6842_v21 = vmax.f32 %v7553_v39, 0.0 }
 0x6cb   : > { %v10969_v56 = vpack.c.bf16 %v6842_v21, %v6841_v50 }
 0x6cc   : > { %v6714_v44 = vpop.f32.mrb[84].mxu1 }
 0x6cd   : > { %v7554_v45 = vadd.f32 %v6714_v44, %v10887_v14  ;;  %v6716_v63 = vpop.f32.mrb[85].mxu1  ;;  %v10979_v14 = vpop.permute.xlu1 %5580 }
 0x6ce   : > { %v6717_v57 = vpop.f32.mrb[86].mxu1 }
 0x6cf   : > { %v7555_v1 = vadd.f32 %v6717_v57, %v10889_v20  ;;  %v6719_v0 = vpop.f32.mrb[87].mxu1  ;;  %v6843_v9 = vmax.f32 %v7554_v45, 0.0 }
 0x6d1   : > { %v6844_v43 = vmax.f32 %v7555_v1, 0.0  ;;  %v5501_v52 = vpop.permute.xlu1 %5500 }
 0x6d3   : > { %v10973_v36 = vpack.c.bf16 %v6844_v43, %v6843_v9 }
 0x6d4   : > { %v6722_v29 = vpop.f32.mrb[88].mxu1 }
 0x6d5   : > { %v7556_v3 = vadd.f32 %v6722_v29, %v10910_v12  ;;  %v6724_v19 = vpop.f32.mrb[89].mxu1 }
 0x6d6   : > { %v6725_v25 = vpop.f32.mrb[90].mxu1 }
 0x6d7   : > { %v7557_v26 = vadd.f32 %v6725_v25, %v10912_v18  ;;  %v6727_v8 = vpop.f32.mrb[91].mxu1  ;;  %v6845_v38 = vmax.f32 %v7556_v3, 0.0 }
 0x6d9   : > { %v6846_v2 = vmax.f32 %v7557_v26, 0.0 }
 0x6db   : > { %v10981_v20 = vpack.c.bf16 %v6846_v2, %v6845_v38  ;;  %v11092_v38 = vld [vmem:[#allocation13_spill] sm:$0xff] }
 0x6dc   : > { %v6730_v32 = vpop.f32.mrb[92].mxu1 }
 0x6dd   : > { %v7558_v23 = vadd.f32 %v6730_v32, %v5496_v27  ;;  %v6732_v49 = vpop.f32.mrb[93].mxu1 }
 0x6de   : > { %v6733_v13 = vpop.f32.mrb[94].mxu1 }
 0x6df   : > { %v7559_v12 = vadd.f32 %v6733_v13, %v5501_v52  ;;  %v6735_v4 = vpop.f32.mrb[95].mxu1  ;;  %v6847_v53 = vmax.f32 %v7558_v23, 0.0  ;;  %v11093_v52 = vld [vmem:[#allocation14_spill] sm:$0xff] }
 0x6e1   : > { %v6848_v62 = vmax.f32 %v7559_v12, 0.0 }
 0x6e3   : > { %v10983_v58 = vpack.c.bf16 %v6848_v62, %v6847_v53  ;;  %v11094_v53 = vld [vmem:[#allocation15_spill] sm:$0xff] }
 0x6e4   : > { %v6738_v18 = vpop.f32.mrb[96].mxu1 }
 0x6e5   : > { %v7560_v24 = vadd.f32 %v6738_v18, %v10786_v60  ;;  %v6740_v30 = vpop.f32.mrb[97].mxu1 }
 0x6e6   : > { %v6741_v22 = vpop.f32.mrb[98].mxu1 }
 0x6e7   : > { %v7561_v11 = vadd.f32 %v6741_v22, %v10788_v33  ;;  %v6743_v59 = vpop.f32.mrb[99].mxu1  ;;  %v6849_v17 = vmax.f32 %v7560_v24, 0.0 }
 0x6e9   : > { %v6850_v41 = vmax.f32 %v7561_v11, 0.0  ;;  %v11095_v11 = vld [vmem:[#allocation16_spill] sm:$0xff] }
 0x6eb   : > { %v6889_v5 = vpack.c.bf16 %v6850_v41, %v6849_v17 }
 0x6ec   : > { %v6746_v61 = vpop.f32.mrb[100].mxu1 }
 0x6ed   : > { %v7562_v10 = vadd.f32 %v6746_v61, %v10802_v6  ;;  %v6748_v37 = vpop.f32.mrb[101].mxu1  ;;  %7426 = vmatprep.subr.bf16.mxu1 %v6889_v5  ;;  %v11096_v5 = vld [vmem:[#allocation17_spill] sm:$0xff] }
 0x6ee   : > { %v6749_v35 = vpop.f32.mrb[102].mxu1  ;;  %7427 = vmatpush3.bf16.msra.mxu1 %v10953_v40 }
 0x6ef   : > { %v7563_v47 = vadd.f32 %v6749_v35, %v10804_v48  ;;  %v6751_v46 = vpop.f32.mrb[103].mxu1  ;;  %v6851_v60 = vmax.f32 %v7562_v10, 0.0  ;;  %v11089_v48 = vld [vmem:[#allocation10_spill] sm:$0xff] }
 0x6f1   : > { %v6852_v31 = vmax.f32 %v7563_v47, 0.0 }
 0x6f3   : > { %v6890_v51 = vpack.c.bf16 %v6852_v31, %v6851_v60 }
 0x6f4   : > { %v6754_v39 = vpop.f32.mrb[104].mxu1 }
 0x6f5   : > { %v7564_v33 = vadd.f32 %v6754_v39, %v10818_v42  ;;  %v6756_v28 = vpop.f32.mrb[105].mxu1  ;;  %7428 = vmatprep.subr.bf16.mxu1 %v6890_v51  ;;  %v11090_v42 = vld [vmem:[#allocation11_spill] sm:$0xff] }
 0x6f6   : > { %v6757_v50 = vpop.f32.mrb[106].mxu1  ;;  %7429 = vmatpush3.bf16.msra.mxu1 %v10957_v55 }
 0x6f7   : > { %v7565_v6 = vadd.f32 %v6757_v50, %v10820_v15  ;;  %v6759_v21 = vpop.f32.mrb[107].mxu1  ;;  %v6853_v44 = vmax.f32 %v7564_v33, 0.0  ;;  %v11091_v15 = vld [vmem:[#allocation12_spill] sm:$0xff]  ;;  %v6931_v50 = vcombine.high %v10870_v54, %v10870_v54 }
 0x6f9   : > { %v6854_v45 = vmax.f32 %v7565_v6, 0.0 }
 0x6fb   : > { %v6891_v40 = vpack.c.bf16 %v6854_v45, %v6853_v44 }
 0x6fc   : > { %v6762_v63 = vpop.f32.mrb[108].mxu1 }
 0x6fd   : > { %v7566_v57 = vadd.f32 %v6762_v63, %v11089_v48  ;;  %v6764_v1 = vpop.f32.mrb[109].mxu1  ;;  %7430 = vmatprep.subr.bf16.mxu1 %v6891_v40  ;;  %v6902_v40 = vpop.permute.xlu0 %6901 }
 0x6fe   : > { %v6765_v0 = vpop.f32.mrb[110].mxu1  ;;  %7431 = vmatpush3.bf16.msra.mxu1 %v10961_v34 }
 0x6ff   : > { %v7567_v9 = vadd.f32 %v6765_v0, %v11090_v42  ;;  %v6767_v43 = vpop.f32.mrb[111].mxu1  ;;  %v6855_v29 = vmax.f32 %v7566_v57, 0.0 }
 0x701   : > { %v6856_v3 = vmax.f32 %v7567_v9, 0.0 }
 0x703   : > { %v6892_v55 = vpack.c.bf16 %v6856_v3, %v6855_v29 }
 0x704   : > { %v6770_v19 = vpop.f32.mrb[112].mxu1 }
 0x705   : > { %v7568_v25 = vadd.f32 %v6770_v19, %v11091_v15  ;;  %v6772_v26 = vpop.f32.mrb[113].mxu1  ;;  %7432 = vmatprep.subr.bf16.mxu1 %v6892_v55 }
 0x706   : > { %v6773_v8 = vpop.f32.mrb[114].mxu1  ;;  %7433 = vmatpush3.bf16.msra.mxu1 %v10965_v7 }
 0x707   : > { %v7569_v2 = vadd.f32 %v6773_v8, %v11092_v38  ;;  %v6775_v27 = vpop.f32.mrb[115].mxu1  ;;  %v6857_v32 = vmax.f32 %v7568_v25, 0.0 }
 0x709   : > { %v6858_v23 = vmax.f32 %v7569_v2, 0.0 }
 0x70b   : > { %v6893_v34 = vpack.c.bf16 %v6858_v23, %v6857_v32 }
 0x70c   : > { %v6778_v49 = vpop.f32.mrb[116].mxu1 }
 0x70d   : > { %v7570_v13 = vadd.f32 %v6778_v49, %v11093_v52  ;;  %v6780_v12 = vpop.f32.mrb[117].mxu1  ;;  %7434 = vmatprep.subr.bf16.mxu1 %v6893_v34 }
 0x70e   : > { %v6781_v4 = vpop.f32.mrb[118].mxu1  ;;  %7435 = vmatpush3.bf16.msra.mxu1 %v10969_v56 }
 0x70f   : > { %v7571_v62 = vadd.f32 %v6781_v4, %v11094_v53  ;;  %v6783_v18 = vpop.f32.mrb[119].mxu1  ;;  %v6859_v24 = vmax.f32 %v7570_v13, 0.0 }
 0x711   : > { %v6860_v30 = vmax.f32 %v7571_v62, 0.0 }
 0x713   : > { %v6894_v7 = vpack.c.bf16 %v6860_v30, %v6859_v24 }
 0x714   : > { %v6786_v22 = vpop.f32.mrb[120].mxu1 }
 0x715   : > { %v7572_v59 = vadd.f32 %v6786_v22, %v11095_v11  ;;  %v6788_v17 = vpop.f32.mrb[121].mxu1  ;;  %7436 = vmatprep.subr.bf16.mxu1 %v6894_v7 }
 0x716   : > { %v6789_v41 = vpop.f32.mrb[122].mxu1  ;;  %7437 = vmatpush3.bf16.msra.mxu1 %v10973_v36 }
 0x717   : > { %v7573_v61 = vadd.f32 %v6789_v41, %v11096_v5  ;;  %v6791_v10 = vpop.f32.mrb[123].mxu1  ;;  %v6861_v37 = vmax.f32 %v7572_v59, 0.0 }
 0x719   : > { %v6862_v35 = vmax.f32 %v7573_v61, 0.0 }
 0x71b   : > { %v6895_v56 = vpack.c.bf16 %v6862_v35, %v6861_v37 }
 0x71c   : > { %v6794_v47 = vpop.f32.mrb[124].mxu1 }
 0x71d   : > { %v7574_v46 = vadd.f32 %v6794_v47, %v10976_v16  ;;  %v6796_v60 = vpop.f32.mrb[125].mxu1  ;;  %7438 = vmatprep.subr.bf16.mxu1 %v6895_v56 }
 0x71e   : > { %v6797_v31 = vpop.f32.mrb[126].mxu1  ;;  %7439 = vmatpush3.bf16.msra.mxu1 %v10981_v20  ;;  %v11097_v20 = vld [vmem:[#allocation9_spill] sm:$0xff] }
 0x71f   : > { %v7575_v51 = vadd.f32 %v6797_v31, %v10979_v14  ;;  %v6799_v39 = vpop.f32.mrb[127].mxu1  ;;  %v6863_v33 = vmax.f32 %v7574_v46, 0.0  ;;  %v6907_v14 = vrot.slane %v6902_v40, %v11097_v20 }
 0x721   : > { %v6864_v28 = vmax.f32 %v7575_v51, 0.0 }
 0x723   : > { %v6896_v36 = vpack.c.bf16 %v6864_v28, %v6863_v33 }
 0x725   : > { %7440 = vmatprep.subr.bf16.mxu1 %v6896_v36 }
 0x726   : > { %7441 = vmatpush3.bf16.msra.mxu1 %v10983_v58 }
 0x729   : > { %7010 = vmatmul.mubr.bf16.vlgmr.msra.gmra.mrb[128].mxu1 %v6931_v50 }
 0x77c   : > { %v7420_v6 = vpop.f32.mrb[128].mxu0 }
 0x77d   : > { %v7421_v16 = vpop.f32.mrb[129].mxu0 }
 0x77e   : > { %v7422_v21 = vadd.f32 %v7421_v16, %v7420_v6  ;;  %v7423_v44 = vpop.f32.mrb[130].mxu0 }
 0x77f   : > { %v7424_v45 = vpop.f32.mrb[131].mxu0 }
 0x780   : > { %v6972_v57 = vadd.f32 %v7422_v21, %v6907_v14 }
 0x7fc   : > { %v7442_v63 = vpop.f32.mrb[128].mxu1 }
 0x7fd   : > { %v7443_v48 = vpop.f32.mrb[129].mxu1 }
 0x7fe   : > { %v7444_v1 = vadd.f32 %v7443_v48, %v7442_v63  ;;  %v7445_v0 = vpop.f32.mrb[130].mxu1 }
 0x7ff   : > { %v7446_v54 = vpop.f32.mrb[131].mxu1 }
 0x800   : > { %v7012_v42 = vadd.f32 %v7444_v1, %v6972_v57 }
 0x802   : > { %v7017_v9 = vand.u32 2147483647, %v7012_v42  ;;  %vm7023_vm0 = vcmp.ge.f32.partialorder %v7012_v42, 0.0 }
 0x804   : > { %v7018_v58 = vsub.f32 0.0, %v7017_v9 }
 0x806   : > { %v7019_v43 = vmul.f32 1.442695, %v7018_v58 }
 0x808   : > { %8340 = vpow2.f32 %v7019_v43 }
 0x812   : > { %v8341_v29 = vpop.eup %8340 }
 0x813   : > { %v7021_v3 = vadd.f32 1.0, %v8341_v29 }
 0x815   : > { %8342 = vrcp.f32 %v7021_v3 }
 0x81f   : > { %v8343_v55 = vpop.eup %8342 }
 0x820   : > { %v7024_v19 = vmul.f32 %v8343_v55, %v8341_v29 }
 0x822   : > { %v7025_v15 = vsel %vm7023_vm0, %v8343_v55, %v7024_v19 }
 0x823   : > { %7026 = vst [vmem:[%s337_s26] sm:$0x1] %v7025_v15 }
 0x824   : > { %8399 = shalt.err (!%p8396_p7)
}
 0x825   : > { %s8400_s15 = scalar_lea.hbm %s11017_s22, 16  ;;  %s8404_s23 = scalar_lea.hbm %s11068_s9, 32 }
 0x826   : > { %p8401_p8 = scmp.ne.s32.totalorder %s11017_s22, %s8400_s15  ;;  %p8405_p1 = scmp.lt.u32.totalorder %s11017_s22, %s11068_s9 }
 0x827   : > { %p8406_p0 = scmp.lt.u32.totalorder %s8404_s23, %s8400_s15  ;;  %p8408_p6 = scmp.lt.u32.totalorder %s8400_s15, %s11017_s22 }
 0x828   : > { %p8402_p11 = pnand %p8401_p8, %p11098_p9 }
 0x829   : > { %p8407_p5 = por %p8406_p0, %p8405_p1 }
 0x82a   : > { %p8403_p13 = pneg %p8402_p11 }
 0x82b   : > { %p8409_p10 = por %p8408_p6, %p8407_p5 }
 0x82d   : > { %p8410_p12 = pnand %p8409_p10, %p8403_p13 }
 0x82f   : > { %8413 = shalt.err (!%p8410_p12)
}
 0x830   : > { %7836 = dma.vmem_to_hbm [thread:$0]  (%p11098_p9), %s11019_s27, 16, %s11017_s22, %s7028_s28  }
 0x831 PF: > { %p7848_p2 = scmp.ge.s32.totalorder %s8452_s14, 2  ;;  %s7052_s25 = sand.u32 1, %s8440_s11  }
 0x832   : > { %p11099_p3 = scmp.ne.s32.totalorder %s11074_s21, 0  ;;  %s7053_s29 = scalar_lea.sflag [#allocation5], %s7052_s25 }
 0x834   : > { %p7843_p4 = pnand %p7848_p2, %p11099_p3 }
 0x836   : > { %8435 = dma.done.wait (!%p7843_p4), %s7053_s29, 16  }
 0x837   : > { %8437 = vsyncadd (!%p7843_p4), %s7053_s29, 4294967280  ;;  %p22_p7 = scmp.ge.s32.totalorder %s8540_s16, 4   ;;  %s11100_s11 = smov %s8444_s12 }
 0x838   : > { %s11101_s12 = smov %s8448_s13  ;;  %s11102_s13 = smov %s8551_s19 }
 0x839   : > { %s11103_s14 = smov %s8540_s16  ;;  %24 = sbr.rel (!%p22_p7) target bundleno = 7 (0x7), region = 96 }
 0x840   :  { %7057 = vsyncpa [#allocation4], 1 }
 0x841   :  { %7059 = vsyncpa [#allocation4 + $0x1], 1 }
 0x842   :  { %7060 = vsyncpa [#allocation5], 1 }
 0x843   :  { %7062 = vsyncpa [#allocation5 + $0x1], 1 }

</bundles_post_ra>
